<compile_context>
chip_gen: v7x
topology: tpu7x:2x2x1
jax: 0.10.0
libtpu: 0.0.40
codegen_flags: <defaults>
</compile_context>

<pallas_src>
import functools

import jax
import jax.numpy as jnp
from jax import lax
from jax.experimental import pallas as pl
from jax.experimental.pallas import tpu as pltpu


def _round_up(x, m):
    return (x + m - 1) // m * m


# ---------------------------------------------------------------------------
# Pallas kernel: fused ConvTranspose2d (+ folded BN bias) (+ residual) (+ ReLU)
# ---------------------------------------------------------------------------
def _convt_kernel(x_ref, w_ref, b_ref, *rest, k, t_rows, wo, relu, has_residual):
    """One (batch-element, output-row-tile) grid step.

    x_ref : (hp, wp, cin8)        bf16  zero-dilated + zero-padded input image
    w_ref : (k*k*cin8, c8)        bf16  BN-scale-folded, im2col-flattened weights
    b_ref : (1, c8)               f32   folded BN bias
    r_ref : (t_rows, wo, c8)      bf16  optional residual tile (if has_residual)
    o_ref : (t_rows, wo, c8)            compact output tile (c8 = round_up(cout, 8))
    """
    if has_residual:
        r_ref, o_ref = rest
    else:
        r_ref = None
        (o_ref,) = rest

    cin = x_ref.shape[-1]
    m_t = t_rows * wo
    row0 = pl.program_id(1) * t_rows          # first output row of this tile

    # Fused im2col: the k*k shifted windows of this row tile, concatenated along
    # the lane axis -> a single (m_t, k*k*cin) LHS and ONE MXU matmul.
    cols = []
    for kh in range(k):
        for kw in range(k):
            win = x_ref[pl.ds(row0 + kh, t_rows), pl.ds(kw, wo), :]   # (t_rows, wo, cin)
            cols.append(win.reshape(m_t, cin))
    lhs = cols[0] if len(cols) == 1 else jnp.concatenate(cols, axis=-1)

    acc = jnp.dot(lhs, w_ref[...], preferred_element_type=jnp.float32)  # (m_t, c8)
    acc = acc + b_ref[...]                                              # folded BN bias
    if has_residual:
        acc = acc + r_ref[...].reshape(m_t, -1).astype(jnp.float32)
    if relu:
        acc = jnp.maximum(acc, 0.0)
    o_ref[...] = acc.reshape(t_rows, wo, -1).astype(o_ref.dtype)


# ---------------------------------------------------------------------------
# Wrapper: BN folding + dilation/padding glue + pallas_call
# ---------------------------------------------------------------------------
def _fold_bn_into_weight(w_t, gamma, beta, mean, var, *, cin8, c8, eps=1e-5):
    """PyTorch ConvTranspose2d weight (Cin, Cout, k, k) -> im2col-flattened
    correlation weight (k*k*cin8, c8) in bf16 with the BN scale folded in,
    plus the f32 folded BN bias (1, c8)."""
    cin, cout, k, _ = w_t.shape
    scale = gamma / jnp.sqrt(var + eps)                                 # (cout,)
    bias = beta - mean * scale                                          # (cout,)
    # equivalent correlation weight: spatial flip + swap in/out channel axes
    w_conv = jnp.transpose(jnp.flip(w_t, (2, 3)), (2, 3, 0, 1))         # (k,k,cin,cout)
    w_conv = w_conv * scale[None, None, None, :]                        # fold BN scale
    w_conv = jnp.pad(w_conv, ((0, 0), (0, 0), (0, cin8 - cin), (0, c8 - cout)))
    w_flat = w_conv.reshape(k * k * cin8, c8)                           # (tap, cin) major
    bias = jnp.pad(bias, (0, c8 - cout)).reshape(1, c8)
    return w_flat.astype(jnp.bfloat16), bias.astype(jnp.float32)


def convtranspose_bn(x_nhwc, w_t, bn, *, stride, padding, output_padding,
                     residual=None, relu, out_dtype):
    """Fused ConvTranspose2d + folded BatchNorm (+ residual add) (+ ReLU).

    Returns a compact NHWC tensor (N, ho, wo, c8) with c8 = round_up(cout, 8)."""
    n, h, w, cin0 = x_nhwc.shape
    cin_w, cout, k, _ = w_t.shape
    cin8 = _round_up(max(cin0, cin_w), 8)      # sublane-aligned contraction chunk
    c8 = _round_up(cout, 8)                    # compact output channels

    ho = (h - 1) * stride - 2 * padding + k + output_padding
    wo = (w - 1) * stride - 2 * padding + k + output_padding
    plo = k - 1 - padding
    phi = k - 1 - padding + output_padding
    assert plo >= 0 and phi >= 0

    # Single lax.pad performs the transposed-conv zero-dilation, the spatial
    # padding and the channel padding in one pass.
    xb = x_nhwc.astype(jnp.bfloat16)
    x_pad = lax.pad(xb, jnp.zeros((), jnp.bfloat16),
                    ((0, 0, 0),
                     (plo, phi, stride - 1),
                     (plo, phi, stride - 1),
                     (0, cin8 - cin0, 0)))
    hp, wp = x_pad.shape[1], x_pad.shape[2]
    assert hp == ho + k - 1 and wp == wo + k - 1

    w_flat, bias = _fold_bn_into_weight(w_t, *bn, cin8=cin8, c8=c8)

    # Output-row tile: largest divisor of ho giving ~<=128 flattened rows per step.
    t_rows = 1
    for t in range(min(ho, max(1, 128 // wo)), 0, -1):
        if ho % t == 0:
            t_rows = t
            break

    has_res = residual is not None
    kern = functools.partial(_convt_kernel, k=k, t_rows=t_rows, wo=wo,
                             relu=relu, has_residual=has_res)

    in_specs = [
        # full padded image per batch element; constant along the row axis so it
        # stays resident (no re-DMA) across the row-tile grid steps
        pl.BlockSpec((None, hp, wp, cin8), lambda i, s: (i, 0, 0, 0)),
        pl.BlockSpec((k * k * cin8, c8), lambda i, s: (0, 0)),
        pl.BlockSpec((1, c8), lambda i, s: (0, 0)),
    ]
    args = [x_pad, w_flat, bias]
    if has_res:
        in_specs.append(pl.BlockSpec((None, t_rows, wo, c8), lambda i, s: (i, s, 0, 0)))
        args.append(residual.astype(jnp.bfloat16))

    out = pl.pallas_call(
        kern,
        out_shape=jax.ShapeDtypeStruct((n, ho, wo, c8), out_dtype),
        grid=(n, ho // t_rows),
        in_specs=in_specs,
        out_specs=pl.BlockSpec((None, t_rows, wo, c8), lambda i, s: (i, s, 0, 0)),
        compiler_params=pltpu.CompilerParams(
            dimension_semantics=("parallel", "parallel"),
            # per-step footprint is well under 1 MiB at these shapes; 32 MiB is
            # safe on v5e/v6e (128 MiB VMEM) and v7x (64 MiB).
            vmem_limit_bytes=32 * 1024 * 1024,
        ),
    )(*args)
    return out


# ---------------------------------------------------------------------------
# TransBlock forward (Pallas)
# ---------------------------------------------------------------------------
@functools.partial(jax.jit, static_argnames=("stride",))
def trans_block_forward(x_nchw, params, stride):
    x = jnp.transpose(x_nchw, (0, 2, 3, 1)).astype(jnp.float32)   # NCHW -> NHWC
    n, h, w, cin = x.shape
    cout = params["w1"].shape[1]
    c8 = _round_up(cout, 8)

    # transconv1: ConvTranspose2d(k=3, stride, pad=1, out_pad=1 if stride==2) + BN + ReLU
    op1 = 1 if stride == 2 else 0
    y1 = convtranspose_bn(x, params["w1"], params["bn1"], stride=stride, padding=1,
                          output_padding=op1, relu=True, out_dtype=jnp.bfloat16)

    # shortcut (ConvTranspose2d 1x1 + BN, or identity), compact bf16 NHWC
    if stride != 1:
        x_p = convtranspose_bn(x, params["ws"], params["bns"], stride=stride, padding=0,
                               output_padding=1, relu=False, out_dtype=jnp.bfloat16)
    elif cin != cout:
        x_p = convtranspose_bn(x, params["ws"], params["bns"], stride=1, padding=0,
                               output_padding=0, relu=False, out_dtype=jnp.bfloat16)
    else:
        x_p = jnp.pad(x, ((0, 0), (0, 0), (0, 0), (0, c8 - cin))).astype(jnp.bfloat16)

    # transconv2: ConvTranspose2d(k=3, stride=1, pad=1) + BN + Dropout(p=0);
    # shortcut add and final ReLU fused into the same kernel via the residual input.
    out = convtranspose_bn(y1, params["w2"], params["bn2"], stride=1, padding=1,
                           output_padding=0, residual=x_p, relu=True,
                           out_dtype=jnp.float32)

    out = out[..., :cout]                                # no-op when cout % 8 == 0
    return jnp.transpose(out, (0, 3, 1, 2))              # NHWC -> NCHW


# ---------------------------------------------------------------------------
# Pure-JAX f32 reference (lax.conv_general_dilated) for verification
# ---------------------------------------------------------------------------
def _bn_fold(gamma, beta, mean, var, eps=1e-5):
    scale = gamma / jnp.sqrt(var + eps)
    return scale, beta - mean * scale


def ref_convtranspose(x_nhwc, w_t, stride, padding, output_padding):
    k = w_t.shape[2]
    w_conv = jnp.transpose(jnp.flip(w_t, (2, 3)), (2, 3, 0, 1))   # HWIO
    lo = k - 1 - padding
    hi = k - 1 - padding + output_padding
    return lax.conv_general_dilated(
        x_nhwc, w_conv, window_strides=(1, 1),
        padding=((lo, hi), (lo, hi)),
        lhs_dilation=(stride, stride),
        dimension_numbers=("NHWC", "HWIO", "NHWC"))


@functools.partial(jax.jit, static_argnames=("stride",))
def ref_forward(x_nchw, params, stride):
    x = jnp.transpose(x_nchw, (0, 2, 3, 1)).astype(jnp.float32)

    def bn(y, p):
        s, b = _bn_fold(*p)
        return y * s.reshape(1, 1, 1, -1) + b.reshape(1, 1, 1, -1)

    op1 = 1 if stride == 2 else 0
    y1 = jnp.maximum(bn(ref_convtranspose(x, params["w1"], stride, 1, op1), params["bn1"]), 0.0)
    x_d = bn(ref_convtranspose(y1, params["w2"], 1, 1, 0), params["bn2"])
    if stride != 1:
        x_p = bn(ref_convtranspose(x, params["ws"], stride, 0, 1), params["bns"])
    elif x.shape[-1] != params["w1"].shape[1]:
        x_p = bn(ref_convtranspose(x, params["ws"], 1, 0, 0), params["bns"])
    else:
        x_p = x
    out = jnp.maximum(x_d + x_p, 0.0)
    return jnp.transpose(out, (0, 3, 1, 2))


# ---------------------------------------------------------------------------
if __name__ == "__main__":
    def make_bn(key, c):
        k1, k2, k3, k4 = jax.random.split(key, 4)
        return (1.0 + 0.1 * jax.random.normal(k1, (c,), jnp.float32),
                0.1 * jax.random.normal(k2, (c,), jnp.float32),
                0.05 * jax.random.normal(k3, (c,), jnp.float32),
                0.5 + jax.random.uniform(k4, (c,), jnp.float32))

    root = jax.random.PRNGKey(0)
    k_p1, k_p2, k_x1, k_x2 = jax.random.split(root, 4)

    # --- test 1: stride=2, Cin != Cout (1x1 transposed-conv shortcut) -------
    N, Cin, Cout, H, W = 2, 4, 8, 8, 8
    ks = jax.random.split(k_p1, 6)
    params1 = {
        "w1": jax.random.normal(ks[0], (Cin, Cout, 3, 3), jnp.float32) * 0.1,
        "w2": jax.random.normal(ks[1], (Cout, Cout, 3, 3), jnp.float32) * 0.1,
        "ws": jax.random.normal(ks[2], (Cin, Cout, 1, 1), jnp.float32) * 0.1,
        "bn1": make_bn(ks[3], Cout),
        "bn2": make_bn(ks[4], Cout),
        "bns": make_bn(ks[5], Cout),
    }
    x1 = jax.random.normal(k_x1, (N, Cin, H, W), jnp.float32)
    out1 = jax.block_until_ready(trans_block_forward(x1, params1, stride=2))
    ref1 = jax.block_until_ready(ref_forward(x1, params1, stride=2))
    assert out1.shape == (N, Cout, 2 * H, 2 * W), out1.shape
    err1 = float(jnp.max(jnp.abs(out1 - ref1)))
    assert err1 < 7.5e-2, err1   # bf16 operands / f32 accumulation tolerance

    # --- test 2: stride=1, Cin == Cout (identity shortcut) ------------------
    C2, H2, W2 = 8, 16, 16
    ks = jax.random.split(k_p2, 4)
    params2 = {
        "w1": jax.random.normal(ks[0], (C2, C2, 3, 3), jnp.float32) * 0.1,
        "w2": jax.random.normal(ks[1], (C2, C2, 3, 3), jnp.float32) * 0.1,
        "bn1": make_bn(ks[2], C2),
        "bn2": make_bn(ks[3], C2),
    }
    x2 = jax.random.normal(k_x2, (N, C2, H2, W2), jnp.float32)
    out2 = jax.block_until_ready(trans_block_forward(x2, params2, stride=1))
    ref2 = jax.block_until_ready(ref_forward(x2, params2, stride=1))
    assert out2.shape == (N, C2, H2, W2), out2.shape
    err2 = float(jnp.max(jnp.abs(out2 - ref2)))
    assert err2 < 7.5e-2, err2

    print("KERNEL_OK")
</pallas_src>

<mosaic_0001>
module attributes {stable_mosaic.version = 11 : i64} {
  func.func @_convt_kernel(%arg0: i32, %arg1: i32, %arg2: memref<1x16x16x8xbf16, #tpu.memory_space<vmem>>, %arg3: memref<8x8xbf16, #tpu.memory_space<vmem>>, %arg4: memref<1x8xf32, #tpu.memory_space<vmem>>, %arg5: memref<1x8x16x8xbf16, #tpu.memory_space<vmem>>) attributes {dimension_semantics = [#tpu.dimension_semantics<parallel>, #tpu.dimension_semantics<parallel>], iteration_bounds = array<i64: 2, 2>, scalar_prefetch = 0 : i64, scratch_operands = 0 : i64, tpu.core_type = #tpu.core_type<tc>, window_params = [{transform_indices = @transform_0, window_bounds = array<i64: 1, 16, 16, 8>}, {pipeline_mode = #tpu.pipeline_mode<synchronous>, transform_indices = @transform_1, window_bounds = array<i64: 8, 8>}, {pipeline_mode = #tpu.pipeline_mode<synchronous>, transform_indices = @transform_2, window_bounds = array<i64: 1, 8>}, {transform_indices = @transform_3, window_bounds = array<i64: 1, 8, 16, 8>}]} {
    %c8_i32 = arith.constant 8 : i32
    %0 = arith.muli %arg1, %c8_i32 : i32
    %c0_i32 = arith.constant 0 : i32
    %1 = arith.addi %0, %c0_i32 : i32
    %c0 = arith.constant 0 : index
    %2 = arith.index_cast %1 : i32 to index
    %c0_0 = arith.constant 0 : index
    %c0_1 = arith.constant 0 : index
    %3 = vector.load %arg2[%c0, %2, %c0_0, %c0_1] : memref<1x16x16x8xbf16, #tpu.memory_space<vmem>>, vector<1x8x16x8xbf16>
    %4 = vector.shape_cast %3 : vector<1x8x16x8xbf16> to vector<8x16x8xbf16>
    %5 = vector.shape_cast %4 : vector<8x16x8xbf16> to vector<128x8xbf16>
    %c0_2 = arith.constant 0 : index
    %c0_3 = arith.constant 0 : index
    %6 = vector.load %arg3[%c0_2, %c0_3] : memref<8x8xbf16, #tpu.memory_space<vmem>>, vector<8x8xbf16>
    %cst = arith.constant dense<0.000000e+00> : vector<128x8xf32>
    %7 = tpu.matmul %5, %6, %cst {dimension_numbers = #tpu.dot_dimension_numbers<[1], [0], [0], [1], [0, 0, 1, 1], [], []>} : vector<128x8xbf16>, vector<8x8xbf16>, vector<128x8xf32> -> vector<128x8xf32>
    %c0_4 = arith.constant 0 : index
    %c0_5 = arith.constant 0 : index
    %8 = vector.load %arg4[%c0_4, %c0_5] : memref<1x8xf32, #tpu.memory_space<vmem>>, vector<1x8xf32>
    %9 = vector.broadcast %8 : vector<1x8xf32> to vector<128x8xf32>
    %10 = arith.addf %7, %9 : vector<128x8xf32>
    %11 = vector.shape_cast %10 : vector<128x8xf32> to vector<8x16x8xf32>
    %12 = arith.truncf %11 : vector<8x16x8xf32> to vector<8x16x8xbf16>
    %c0_6 = arith.constant 0 : index
    %c0_7 = arith.constant 0 : index
    %c0_8 = arith.constant 0 : index
    %c0_9 = arith.constant 0 : index
    %13 = vector.load %arg5[%c0_6, %c0_7, %c0_8, %c0_9] : memref<1x8x16x8xbf16, #tpu.memory_space<vmem>>, vector<1x8x16x8xbf16>
    %14 = vector.shape_cast %13 : vector<1x8x16x8xbf16> to vector<8x16x8xbf16>
    %15 = vector.shape_cast %12 : vector<8x16x8xbf16> to vector<1x8x16x8xbf16>
    tpu.vector_store %arg5[%c0_6, %c0_7, %c0_8, %c0_9], %15 {strides = array<i32>} : memref<1x8x16x8xbf16, #tpu.memory_space<vmem>>, vector<1x8x16x8xbf16>,
    return
  }
  func.func @transform_0(%arg0: i32, %arg1: i32) -> (i32, i32, i32, i32) {
    %c0_i32 = arith.constant 0 : i32
    %c0_i32_0 = arith.constant 0 : i32
    %c0_i32_1 = arith.constant 0 : i32
    %c0_i32_2 = arith.constant 0 : i32
    return %arg0, %c0_i32, %c0_i32_0, %c0_i32_1 : i32, i32, i32, i32
  }
  func.func @transform_1(%arg0: i32, %arg1: i32) -> (i32, i32) {
    %c0_i32 = arith.constant 0 : i32
    %c0_i32_0 = arith.constant 0 : i32
    %c0_i32_1 = arith.constant 0 : i32
    return %c0_i32, %c0_i32_0 : i32, i32
  }
  func.func @transform_2(%arg0: i32, %arg1: i32) -> (i32, i32) {
    %c0_i32 = arith.constant 0 : i32
    %c0_i32_0 = arith.constant 0 : i32
    %c0_i32_1 = arith.constant 0 : i32
    return %c0_i32, %c0_i32_0 : i32, i32
  }
  func.func @transform_3(%arg0: i32, %arg1: i32) -> (i32, i32, i32, i32) {
    %c0_i32 = arith.constant 0 : i32
    %c0_i32_0 = arith.constant 0 : i32
    %c0_i32_1 = arith.constant 0 : i32
    return %arg0, %arg1, %c0_i32, %c0_i32_0 : i32, i32, i32, i32
  }
}

module attributes {stable_mosaic.version = 11 : i64} {
  func.func @_convt_kernel(%arg0: i32, %arg1: i32, %arg2: memref<1x18x18x8xbf16, #tpu.memory_space<vmem>>, %arg3: memref<72x8xbf16, #tpu.memory_space<vmem>>, %arg4: memref<1x8xf32, #tpu.memory_space<vmem>>, %arg5: memref<1x8x16x8xbf16, #tpu.memory_space<vmem>>) attributes {dimension_semantics = [#tpu.dimension_semantics<parallel>, #tpu.dimension_semantics<parallel>], iteration_bounds = array<i64: 2, 2>, scalar_prefetch = 0 : i64, scratch_operands = 0 : i64, tpu.core_type = #tpu.core_type<tc>, window_params = [{transform_indices = @transform_0, window_bounds = array<i64: 1, 18, 18, 8>}, {pipeline_mode = #tpu.pipeline_mode<synchronous>, transform_indices = @transform_1, window_bounds = array<i64: 72, 8>}, {pipeline_mode = #tpu.pipeline_mode<synchronous>, transform_indices = @transform_2, window_bounds = array<i64: 1, 8>}, {transform_indices = @transform_3, window_bounds = array<i64: 1, 8, 16, 8>}]} {
    %c8_i32 = arith.constant 8 : i32
    %0 = arith.muli %arg1, %c8_i32 : i32
    %c0_i32 = arith.constant 0 : i32
    %1 = arith.addi %0, %c0_i32 : i32
    %c0 = arith.constant 0 : index
    %2 = arith.index_cast %1 : i32 to index
    %c0_0 = arith.constant 0 : index
    %c0_1 = arith.constant 0 : index
    %3 = vector.load %arg2[%c0, %2, %c0_0, %c0_1] : memref<1x18x18x8xbf16, #tpu.memory_space<vmem>>, vector<1x8x16x8xbf16>
    %4 = vector.shape_cast %3 : vector<1x8x16x8xbf16> to vector<8x16x8xbf16>
    %5 = vector.shape_cast %4 : vector<8x16x8xbf16> to vector<128x8xbf16>
    %c0_i32_2 = arith.constant 0 : i32
    %6 = arith.addi %0, %c0_i32_2 : i32
    %c0_3 = arith.constant 0 : index
    %7 = arith.index_cast %6 : i32 to index
    %c1 = arith.constant 1 : index
    %c0_4 = arith.constant 0 : index
    %8 = vector.load %arg2[%c0_3, %7, %c1, %c0_4] : memref<1x18x18x8xbf16, #tpu.memory_space<vmem>>, vector<1x8x16x8xbf16>
    %9 = vector.shape_cast %8 : vector<1x8x16x8xbf16> to vector<8x16x8xbf16>
    %10 = vector.shape_cast %9 : vector<8x16x8xbf16> to vector<128x8xbf16>
    %c0_i32_5 = arith.constant 0 : i32
    %11 = arith.addi %0, %c0_i32_5 : i32
    %c0_6 = arith.constant 0 : index
    %12 = arith.index_cast %11 : i32 to index
    %c2 = arith.constant 2 : index
    %c0_7 = arith.constant 0 : index
    %13 = vector.load %arg2[%c0_6, %12, %c2, %c0_7] : memref<1x18x18x8xbf16, #tpu.memory_space<vmem>>, vector<1x8x16x8xbf16>
    %14 = vector.shape_cast %13 : vector<1x8x16x8xbf16> to vector<8x16x8xbf16>
    %15 = vector.shape_cast %14 : vector<8x16x8xbf16> to vector<128x8xbf16>
    %c1_i32 = arith.constant 1 : i32
    %16 = arith.addi %0, %c1_i32 : i32
    %c0_8 = arith.constant 0 : index
    %17 = arith.index_cast %16 : i32 to index
    %c0_9 = arith.constant 0 : index
    %c0_10 = arith.constant 0 : index
    %18 = vector.load %arg2[%c0_8, %17, %c0_9, %c0_10] : memref<1x18x18x8xbf16, #tpu.memory_space<vmem>>, vector<1x8x16x8xbf16>
    %19 = vector.shape_cast %18 : vector<1x8x16x8xbf16> to vector<8x16x8xbf16>
    %20 = vector.shape_cast %19 : vector<8x16x8xbf16> to vector<128x8xbf16>
    %c1_i32_11 = arith.constant 1 : i32
    %21 = arith.addi %0, %c1_i32_11 : i32
    %c0_12 = arith.constant 0 : index
    %22 = arith.index_cast %21 : i32 to index
    %c1_13 = arith.constant 1 : index
    %c0_14 = arith.constant 0 : index
    %23 = vector.load %arg2[%c0_12, %22, %c1_13, %c0_14] : memref<1x18x18x8xbf16, #tpu.memory_space<vmem>>, vector<1x8x16x8xbf16>
    %24 = vector.shape_cast %23 : vector<1x8x16x8xbf16> to vector<8x16x8xbf16>
    %25 = vector.shape_cast %24 : vector<8x16x8xbf16> to vector<128x8xbf16>
    %c1_i32_15 = arith.constant 1 : i32
    %26 = arith.addi %0, %c1_i32_15 : i32
    %c0_16 = arith.constant 0 : index
    %27 = arith.index_cast %26 : i32 to index
    %c2_17 = arith.constant 2 : index
    %c0_18 = arith.constant 0 : index
    %28 = vector.load %arg2[%c0_16, %27, %c2_17, %c0_18] : memref<1x18x18x8xbf16, #tpu.memory_space<vmem>>, vector<1x8x16x8xbf16>
    %29 = vector.shape_cast %28 : vector<1x8x16x8xbf16> to vector<8x16x8xbf16>
    %30 = vector.shape_cast %29 : vector<8x16x8xbf16> to vector<128x8xbf16>
    %c2_i32 = arith.constant 2 : i32
    %31 = arith.addi %0, %c2_i32 : i32
    %c0_19 = arith.constant 0 : index
    %32 = arith.index_cast %31 : i32 to index
    %c0_20 = arith.constant 0 : index
    %c0_21 = arith.constant 0 : index
    %33 = vector.load %arg2[%c0_19, %32, %c0_20, %c0_21] : memref<1x18x18x8xbf16, #tpu.memory_space<vmem>>, vector<1x8x16x8xbf16>
    %34 = vector.shape_cast %33 : vector<1x8x16x8xbf16> to vector<8x16x8xbf16>
    %35 = vector.shape_cast %34 : vector<8x16x8xbf16> to vector<128x8xbf16>
    %c2_i32_22 = arith.constant 2 : i32
    %36 = arith.addi %0, %c2_i32_22 : i32
    %c0_23 = arith.constant 0 : index
    %37 = arith.index_cast %36 : i32 to index
    %c1_24 = arith.constant 1 : index
    %c0_25 = arith.constant 0 : index
    %38 = vector.load %arg2[%c0_23, %37, %c1_24, %c0_25] : memref<1x18x18x8xbf16, #tpu.memory_space<vmem>>, vector<1x8x16x8xbf16>
    %39 = vector.shape_cast %38 : vector<1x8x16x8xbf16> to vector<8x16x8xbf16>
    %40 = vector.shape_cast %39 : vector<8x16x8xbf16> to vector<128x8xbf16>
    %c2_i32_26 = arith.constant 2 : i32
    %41 = arith.addi %0, %c2_i32_26 : i32
    %c0_27 = arith.constant 0 : index
    %42 = arith.index_cast %41 : i32 to index
    %c2_28 = arith.constant 2 : index
    %c0_29 = arith.constant 0 : index
    %43 = vector.load %arg2[%c0_27, %42, %c2_28, %c0_29] : memref<1x18x18x8xbf16, #tpu.memory_space<vmem>>, vector<1x8x16x8xbf16>
    %44 = vector.shape_cast %43 : vector<1x8x16x8xbf16> to vector<8x16x8xbf16>
    %45 = vector.shape_cast %44 : vector<8x16x8xbf16> to vector<128x8xbf16>
    %46 = tpu.concatenate %5, %10, %15, %20, %25, %30, %35, %40, %45 in 1 : vector<128x8xbf16>, vector<128x8xbf16>, vector<128x8xbf16>, vector<128x8xbf16>, vector<128x8xbf16>, vector<128x8xbf16>, vector<128x8xbf16>, vector<128x8xbf16>, vector<128x8xbf16> -> vector<128x72xbf16>
    %c0_30 = arith.constant 0 : index
    %c0_31 = arith.constant 0 : index
    %47 = vector.load %arg3[%c0_30, %c0_31] : memref<72x8xbf16, #tpu.memory_space<vmem>>, vector<72x8xbf16>
    %cst = arith.constant dense<0.000000e+00> : vector<128x8xf32>
    %48 = tpu.matmul %46, %47, %cst {dimension_numbers = #tpu.dot_dimension_numbers<[1], [0], [0], [1], [0, 0, 1, 1], [], []>} : vector<128x72xbf16>, vector<72x8xbf16>, vector<128x8xf32> -> vector<128x8xf32>
    %c0_32 = arith.constant 0 : index
    %c0_33 = arith.constant 0 : index
    %49 = vector.load %arg4[%c0_32, %c0_33] : memref<1x8xf32, #tpu.memory_space<vmem>>, vector<1x8xf32>
    %50 = vector.broadcast %49 : vector<1x8xf32> to vector<128x8xf32>
    %51 = arith.addf %48, %50 : vector<128x8xf32>
    %cst_34 = arith.constant 0.000000e+00 : f32
    %52 = vector.broadcast %cst_34 : f32 to vector<128x8xf32>
    %53 = arith.maximumf %51, %52 : vector<128x8xf32>
    %54 = vector.shape_cast %53 : vector<128x8xf32> to vector<8x16x8xf32>
    %55 = arith.truncf %54 : vector<8x16x8xf32> to vector<8x16x8xbf16>
    %c0_35 = arith.constant 0 : index
    %c0_36 = arith.constant 0 : index
    %c0_37 = arith.constant 0 : index
    %c0_38 = arith.constant 0 : index
    %56 = vector.load %arg5[%c0_35, %c0_36, %c0_37, %c0_38] : memref<1x8x16x8xbf16, #tpu.memory_space<vmem>>, vector<1x8x16x8xbf16>
    %57 = vector.shape_cast %56 : vector<1x8x16x8xbf16> to vector<8x16x8xbf16>
    %58 = vector.shape_cast %55 : vector<8x16x8xbf16> to vector<1x8x16x8xbf16>
    tpu.vector_store %arg5[%c0_35, %c0_36, %c0_37, %c0_38], %58 {strides = array<i32>} : memref<1x8x16x8xbf16, #tpu.memory_space<vmem>>, vector<1x8x16x8xbf16>,
    return
  }
  func.func @transform_0(%arg0: i32, %arg1: i32) -> (i32, i32, i32, i32) {
    %c0_i32 = arith.constant 0 : i32
    %c0_i32_0 = arith.constant 0 : i32
    %c0_i32_1 = arith.constant 0 : i32
    %c0_i32_2 = arith.constant 0 : i32
    return %arg0, %c0_i32, %c0_i32_0, %c0_i32_1 : i32, i32, i32, i32
  }
  func.func @transform_1(%arg0: i32, %arg1: i32) -> (i32, i32) {
    %c0_i32 = arith.constant 0 : i32
    %c0_i32_0 = arith.constant 0 : i32
    %c0_i32_1 = arith.constant 0 : i32
    return %c0_i32, %c0_i32_0 : i32, i32
  }
  func.func @transform_2(%arg0: i32, %arg1: i32) -> (i32, i32) {
    %c0_i32 = arith.constant 0 : i32
    %c0_i32_0 = arith.constant 0 : i32
    %c0_i32_1 = arith.constant 0 : i32
    return %c0_i32, %c0_i32_0 : i32, i32
  }
  func.func @transform_3(%arg0: i32, %arg1: i32) -> (i32, i32, i32, i32) {
    %c0_i32 = arith.constant 0 : i32
    %c0_i32_0 = arith.constant 0 : i32
    %c0_i32_1 = arith.constant 0 : i32
    return %arg0, %arg1, %c0_i32, %c0_i32_0 : i32, i32, i32, i32
  }
}

module attributes {stable_mosaic.version = 11 : i64} {
  func.func @_convt_kernel(%arg0: i32, %arg1: i32, %arg2: memref<1x18x18x8xbf16, #tpu.memory_space<vmem>>, %arg3: memref<72x8xbf16, #tpu.memory_space<vmem>>, %arg4: memref<1x8xf32, #tpu.memory_space<vmem>>, %arg5: memref<1x8x16x8xbf16, #tpu.memory_space<vmem>>, %arg6: memref<1x8x16x8xf32, #tpu.memory_space<vmem>>) attributes {dimension_semantics = [#tpu.dimension_semantics<parallel>, #tpu.dimension_semantics<parallel>], iteration_bounds = array<i64: 2, 2>, scalar_prefetch = 0 : i64, scratch_operands = 0 : i64, tpu.core_type = #tpu.core_type<tc>, window_params = [{transform_indices = @transform_0, window_bounds = array<i64: 1, 18, 18, 8>}, {pipeline_mode = #tpu.pipeline_mode<synchronous>, transform_indices = @transform_1, window_bounds = array<i64: 72, 8>}, {pipeline_mode = #tpu.pipeline_mode<synchronous>, transform_indices = @transform_2, window_bounds = array<i64: 1, 8>}, {transform_indices = @transform_3, window_bounds = array<i64: 1, 8, 16, 8>}, {transform_indices = @transform_4, window_bounds = array<i64: 1, 8, 16, 8>}]} {
    %c8_i32 = arith.constant 8 : i32
    %0 = arith.muli %arg1, %c8_i32 : i32
    %c0_i32 = arith.constant 0 : i32
    %1 = arith.addi %0, %c0_i32 : i32
    %c0 = arith.constant 0 : index
    %2 = arith.index_cast %1 : i32 to index
    %c0_0 = arith.constant 0 : index
    %c0_1 = arith.constant 0 : index
    %3 = vector.load %arg2[%c0, %2, %c0_0, %c0_1] : memref<1x18x18x8xbf16, #tpu.memory_space<vmem>>, vector<1x8x16x8xbf16>
    %4 = vector.shape_cast %3 : vector<1x8x16x8xbf16> to vector<8x16x8xbf16>
    %5 = vector.shape_cast %4 : vector<8x16x8xbf16> to vector<128x8xbf16>
    %c0_i32_2 = arith.constant 0 : i32
    %6 = arith.addi %0, %c0_i32_2 : i32
    %c0_3 = arith.constant 0 : index
    %7 = arith.index_cast %6 : i32 to index
    %c1 = arith.constant 1 : index
    %c0_4 = arith.constant 0 : index
    %8 = vector.load %arg2[%c0_3, %7, %c1, %c0_4] : memref<1x18x18x8xbf16, #tpu.memory_space<vmem>>, vector<1x8x16x8xbf16>
    %9 = vector.shape_cast %8 : vector<1x8x16x8xbf16> to vector<8x16x8xbf16>
    %10 = vector.shape_cast %9 : vector<8x16x8xbf16> to vector<128x8xbf16>
    %c0_i32_5 = arith.constant 0 : i32
    %11 = arith.addi %0, %c0_i32_5 : i32
    %c0_6 = arith.constant 0 : index
    %12 = arith.index_cast %11 : i32 to index
    %c2 = arith.constant 2 : index
    %c0_7 = arith.constant 0 : index
    %13 = vector.load %arg2[%c0_6, %12, %c2, %c0_7] : memref<1x18x18x8xbf16, #tpu.memory_space<vmem>>, vector<1x8x16x8xbf16>
    %14 = vector.shape_cast %13 : vector<1x8x16x8xbf16> to vector<8x16x8xbf16>
    %15 = vector.shape_cast %14 : vector<8x16x8xbf16> to vector<128x8xbf16>
    %c1_i32 = arith.constant 1 : i32
    %16 = arith.addi %0, %c1_i32 : i32
    %c0_8 = arith.constant 0 : index
    %17 = arith.index_cast %16 : i32 to index
    %c0_9 = arith.constant 0 : index
    %c0_10 = arith.constant 0 : index
    %18 = vector.load %arg2[%c0_8, %17, %c0_9, %c0_10] : memref<1x18x18x8xbf16, #tpu.memory_space<vmem>>, vector<1x8x16x8xbf16>
    %19 = vector.shape_cast %18 : vector<1x8x16x8xbf16> to vector<8x16x8xbf16>
    %20 = vector.shape_cast %19 : vector<8x16x8xbf16> to vector<128x8xbf16>
    %c1_i32_11 = arith.constant 1 : i32
    %21 = arith.addi %0, %c1_i32_11 : i32
    %c0_12 = arith.constant 0 : index
    %22 = arith.index_cast %21 : i32 to index
    %c1_13 = arith.constant 1 : index
    %c0_14 = arith.constant 0 : index
    %23 = vector.load %arg2[%c0_12, %22, %c1_13, %c0_14] : memref<1x18x18x8xbf16, #tpu.memory_space<vmem>>, vector<1x8x16x8xbf16>
    %24 = vector.shape_cast %23 : vector<1x8x16x8xbf16> to vector<8x16x8xbf16>
    %25 = vector.shape_cast %24 : vector<8x16x8xbf16> to vector<128x8xbf16>
    %c1_i32_15 = arith.constant 1 : i32
    %26 = arith.addi %0, %c1_i32_15 : i32
    %c0_16 = arith.constant 0 : index
    %27 = arith.index_cast %26 : i32 to index
    %c2_17 = arith.constant 2 : index
    %c0_18 = arith.constant 0 : index
    %28 = vector.load %arg2[%c0_16, %27, %c2_17, %c0_18] : memref<1x18x18x8xbf16, #tpu.memory_space<vmem>>, vector<1x8x16x8xbf16>
    %29 = vector.shape_cast %28 : vector<1x8x16x8xbf16> to vector<8x16x8xbf16>
    %30 = vector.shape_cast %29 : vector<8x16x8xbf16> to vector<128x8xbf16>
    %c2_i32 = arith.constant 2 : i32
    %31 = arith.addi %0, %c2_i32 : i32
    %c0_19 = arith.constant 0 : index
    %32 = arith.index_cast %31 : i32 to index
    %c0_20 = arith.constant 0 : index
    %c0_21 = arith.constant 0 : index
    %33 = vector.load %arg2[%c0_19, %32, %c0_20, %c0_21] : memref<1x18x18x8xbf16, #tpu.memory_space<vmem>>, vector<1x8x16x8xbf16>
    %34 = vector.shape_cast %33 : vector<1x8x16x8xbf16> to vector<8x16x8xbf16>
    %35 = vector.shape_cast %34 : vector<8x16x8xbf16> to vector<128x8xbf16>
    %c2_i32_22 = arith.constant 2 : i32
    %36 = arith.addi %0, %c2_i32_22 : i32
    %c0_23 = arith.constant 0 : index
    %37 = arith.index_cast %36 : i32 to index
    %c1_24 = arith.constant 1 : index
    %c0_25 = arith.constant 0 : index
    %38 = vector.load %arg2[%c0_23, %37, %c1_24, %c0_25] : memref<1x18x18x8xbf16, #tpu.memory_space<vmem>>, vector<1x8x16x8xbf16>
    %39 = vector.shape_cast %38 : vector<1x8x16x8xbf16> to vector<8x16x8xbf16>
    %40 = vector.shape_cast %39 : vector<8x16x8xbf16> to vector<128x8xbf16>
    %c2_i32_26 = arith.constant 2 : i32
    %41 = arith.addi %0, %c2_i32_26 : i32
    %c0_27 = arith.constant 0 : index
    %42 = arith.index_cast %41 : i32 to index
    %c2_28 = arith.constant 2 : index
    %c0_29 = arith.constant 0 : index
    %43 = vector.load %arg2[%c0_27, %42, %c2_28, %c0_29] : memref<1x18x18x8xbf16, #tpu.memory_space<vmem>>, vector<1x8x16x8xbf16>
    %44 = vector.shape_cast %43 : vector<1x8x16x8xbf16> to vector<8x16x8xbf16>
    %45 = vector.shape_cast %44 : vector<8x16x8xbf16> to vector<128x8xbf16>
    %46 = tpu.concatenate %5, %10, %15, %20, %25, %30, %35, %40, %45 in 1 : vector<128x8xbf16>, vector<128x8xbf16>, vector<128x8xbf16>, vector<128x8xbf16>, vector<128x8xbf16>, vector<128x8xbf16>, vector<128x8xbf16>, vector<128x8xbf16>, vector<128x8xbf16> -> vector<128x72xbf16>
    %c0_30 = arith.constant 0 : index
    %c0_31 = arith.constant 0 : index
    %47 = vector.load %arg3[%c0_30, %c0_31] : memref<72x8xbf16, #tpu.memory_space<vmem>>, vector<72x8xbf16>
    %cst = arith.constant dense<0.000000e+00> : vector<128x8xf32>
    %48 = tpu.matmul %46, %47, %cst {dimension_numbers = #tpu.dot_dimension_numbers<[1], [0], [0], [1], [0, 0, 1, 1], [], []>} : vector<128x72xbf16>, vector<72x8xbf16>, vector<128x8xf32> -> vector<128x8xf32>
    %c0_32 = arith.constant 0 : index
    %c0_33 = arith.constant 0 : index
    %49 = vector.load %arg4[%c0_32, %c0_33] : memref<1x8xf32, #tpu.memory_space<vmem>>, vector<1x8xf32>
    %50 = vector.broadcast %49 : vector<1x8xf32> to vector<128x8xf32>
    %51 = arith.addf %48, %50 : vector<128x8xf32>
    %c0_34 = arith.constant 0 : index
    %c0_35 = arith.constant 0 : index
    %c0_36 = arith.constant 0 : index
    %c0_37 = arith.constant 0 : index
    %52 = vector.load %arg5[%c0_34, %c0_35, %c0_36, %c0_37] : memref<1x8x16x8xbf16, #tpu.memory_space<vmem>>, vector<1x8x16x8xbf16>
    %53 = vector.shape_cast %52 : vector<1x8x16x8xbf16> to vector<8x16x8xbf16>
    %54 = vector.shape_cast %53 : vector<8x16x8xbf16> to vector<128x8xbf16>
    %55 = arith.extf %54 : vector<128x8xbf16> to vector<128x8xf32>
    %56 = arith.addf %51, %55 : vector<128x8xf32>
    %cst_38 = arith.constant 0.000000e+00 : f32
    %57 = vector.broadcast %cst_38 : f32 to vector<128x8xf32>
    %58 = arith.maximumf %56, %57 : vector<128x8xf32>
    %59 = vector.shape_cast %58 : vector<128x8xf32> to vector<8x16x8xf32>
    %c0_39 = arith.constant 0 : index
    %c0_40 = arith.constant 0 : index
    %c0_41 = arith.constant 0 : index
    %c0_42 = arith.constant 0 : index
    %60 = vector.load %arg6[%c0_39, %c0_40, %c0_41, %c0_42] : memref<1x8x16x8xf32, #tpu.memory_space<vmem>>, vector<1x8x16x8xf32>
    %61 = vector.shape_cast %60 : vector<1x8x16x8xf32> to vector<8x16x8xf32>
    %62 = vector.shape_cast %59 : vector<8x16x8xf32> to vector<1x8x16x8xf32>
    tpu.vector_store %arg6[%c0_39, %c0_40, %c0_41, %c0_42], %62 {strides = array<i32>} : memref<1x8x16x8xf32, #tpu.memory_space<vmem>>, vector<1x8x16x8xf32>,
    return
  }
  func.func @transform_0(%arg0: i32, %arg1: i32) -> (i32, i32, i32, i32) {
    %c0_i32 = arith.constant 0 : i32
    %c0_i32_0 = arith.constant 0 : i32
    %c0_i32_1 = arith.constant 0 : i32
    %c0_i32_2 = arith.constant 0 : i32
    return %arg0, %c0_i32, %c0_i32_0, %c0_i32_1 : i32, i32, i32, i32
  }
  func.func @transform_1(%arg0: i32, %arg1: i32) -> (i32, i32) {
    %c0_i32 = arith.constant 0 : i32
    %c0_i32_0 = arith.constant 0 : i32
    %c0_i32_1 = arith.constant 0 : i32
    return %c0_i32, %c0_i32_0 : i32, i32
  }
  func.func @transform_2(%arg0: i32, %arg1: i32) -> (i32, i32) {
    %c0_i32 = arith.constant 0 : i32
    %c0_i32_0 = arith.constant 0 : i32
    %c0_i32_1 = arith.constant 0 : i32
    return %c0_i32, %c0_i32_0 : i32, i32
  }
  func.func @transform_3(%arg0: i32, %arg1: i32) -> (i32, i32, i32, i32) {
    %c0_i32 = arith.constant 0 : i32
    %c0_i32_0 = arith.constant 0 : i32
    %c0_i32_1 = arith.constant 0 : i32
    return %arg0, %arg1, %c0_i32, %c0_i32_0 : i32, i32, i32, i32
  }
  func.func @transform_4(%arg0: i32, %arg1: i32) -> (i32, i32, i32, i32) {
    %c0_i32 = arith.constant 0 : i32
    %c0_i32_0 = arith.constant 0 : i32
    %c0_i32_1 = arith.constant 0 : i32
    return %arg0, %arg1, %c0_i32, %c0_i32_0 : i32, i32, i32, i32
  }
}

</mosaic_0001>

<bundles_post_ra>
// kernel: trans_block_forward.4
= control target key start
LH: loop header
LB: loop body
LE: loop exit
PB: predicated region body
PF: predicated region fallthrough
CT: control target
= control target key end

     0   :  { %s771_s12 = smov 0   ;;  %s773_s13 = smov 0   ;;  %s874_s0 = inlined_call_operand.vmem [shape: bf16[2,16,16,8], index: 0, kind: input, shape index: {}]   ;;  %s875_s1 = inlined_call_operand.vmem [shape: bf16[8,8], index: 1, kind: input, shape index: {}]   ;;  %s876_s2 = inlined_call_operand.vmem [shape: f32[1,8], index: 2, kind: input, shape index: {}]   ;;  %s877_s3 = inlined_call_operand.vmem [shape: bf16[2,16,16,8], index: 3, kind: output, shape index: {}]  }
   0x1   :  { %s775_s14 = smov 0   ;;  %s777_s15 = smov 0  }
   0x2   :  { %s779_s16 = smov 0  }
   0x3 LB: > { %s22_s17 = sadd.s32 1, %s741_s14  ;;  %s25_s18 = sadd.s32 1, %s745_s15  ;;  %s749_s16 = sphi %s779_s16, %s13_s16   ;;  %s745_s15 = sphi %s777_s15, %s881_s15   ;;  %s741_s14 = sphi %s775_s14, %s880_s14   ;;  %s737_s13 = sphi %s773_s13, %s879_s13   ;;  %s733_s12 = sphi %s771_s12, %s878_s12  }
   0x4   : > { %p23_p0 = scmp.ge.s32.totalorder %s22_s17, 2  ;;  %p568_p1 = scmp.ge.s32.totalorder %s749_s16, 1 }
   0x5   : > { %p151_p2 = scmp.lt.s32.totalorder %s749_s16, 5 }
   0x6   : > { %s883_s17 = smov (%p23_p0, %s22_s17), 0  ;;  %s885_s18 = smov (!%p23_p0, %s25_s18), %s745_s15 }
   0x7   : > { %p152_p3 = pnand %p568_p1, %p151_p2  ;;  %p27_p4 = scmp.ge.s32.totalorder %s885_s18, 2 }
   0x8   : > { %v217_v0 = vld [vmem:[%s875_s1] sm:$0xf] (!%p152_p3)  ;;  %vm290_vm0 = vcmask (!%p152_p3), 1043456   ;;  %p180_p5 = scmp.lt.s32.totalorder (!%p152_p3), %s737_s13, 1  ;;  %s615_s21 = sshll.u32 (!%p152_p3), %s733_s12, 6  ;;  %vm265_vm1 = vcmask (!%p152_p3), 64512  }
   0x9   : > { %s887_s18 = smov (%p27_p4, %s885_s18), 0  ;;  %155 = sbr.rel (%p152_p3) target bundleno = 251 (0xfb), region = 32 }
   0xa   : > { %661 = vmatprep.subr.msk.bf16.mxu0 (!%p152_p3), %vm290_vm0, %v217_v0  ;;  %662 = vmatprep.subr.msk.bf16.mxu1 (!%p152_p3), %vm290_vm0, %v217_v0  ;;  %v292_v1 = vsel (!%p152_p3), %vm290_vm0, %v217_v0, 0  ;;  %s571_s27 = sshll.u32 (!%p152_p3), %s733_s12, 3  ;;  %v578_v10 = vld [vmem:[%s876_s2] ss:$0 sm:$0xff] (!%p152_p3)  ;;  %vm455_vm2 = vcmask (!%p152_p3), 60416  }
   0xb   : > { %642 = vmatpush3.bf16.msra.mxu0 (!%p152_p3), %v292_v1  ;;  %660 = vmatpush3.bf16.msra.mxu1 (!%p152_p3), %v292_v1  ;;  %p188_p6 = scmp.lt.s32.totalorder (!%p152_p3), %s571_s27, 15 }
  0x10   : > { %s889_s13 = smov (!%p180_p5, %s737_s13), 1  ;;  %s891_s27 = smov (!%p188_p6, %s571_s27), 15 }
  0x11   : > { %s613_s22 = sshll.u32 %s889_s13, 7  ;;  %s572_s28 = sshll.u32 %s891_s27, 1 }
  0x12   : > { %s184_s25 = scalar_lea.vmem %s874_s0, %s613_s22  ;;  %s573_s29 = sshll.u32 %s889_s13, 5 }
  0x13   : > { %s200_s26 = scalar_lea.vmem %s184_s25, %s615_s21  ;;  %s192_s30 = sadd.s32 %s573_s29, %s572_s28 }
  0x14   : > { %v703_v2 = vld [vmem:[%s200_s26] sm:$0xff]   ;;  %v705_v4 = vld [vmem:[%s200_s26 + $0x8] sm:$0xff]   ;;  %v707_v6 = vld [vmem:[%s200_s26 + $0x10] sm:$0xff]   ;;  %s574_s6 = sshll.u32 %s192_s30, 2 }
  0x15   : > { %v704_v3 = vld [vmem:[%s200_s26 + $0x20] sm:$0xff]   ;;  %643 = vmatprep.mubr.msk.bf16.mxu0 %vm265_vm1, %v703_v2  ;;  %v706_v5 = vld [vmem:[%s200_s26 + $0x28] sm:$0xff]   ;;  %v708_v7 = vld [vmem:[%s200_s26 + $0x30] sm:$0xff]   ;;  %s825_s9 = scalar_lea.vmem %s877_s3, %s574_s6 }
  0x16   : > { %651 = vmatprep.mubr.msk.bf16.mxu1 %vm265_vm1, %v704_v3  ;;  %644 = vmatmul.mubr.msk.bf16.vlgmr.msra.gmra.mrb[0].mxu0 %vm265_vm1, %v705_v4  ;;  %v709_v8 = vld [vmem:[%s200_s26 + $0x18] sm:$0xff]  }
  0x17   : > { %652 = vmatmul.mubr.msk.bf16.vlgmr.msra.gmra.mrb[0].mxu1 %vm265_vm1, %v706_v5  ;;  %647 = vmatprep.mubr.msk.bf16.mxu0 %vm265_vm1, %v707_v6  ;;  %v710_v9 = vld [vmem:[%s200_s26 + $0x38] sm:$0xff]  }
  0x18   : > { %655 = vmatprep.mubr.msk.bf16.mxu1 %vm265_vm1, %v708_v7 }
  0x1e   : > { %648 = vmatmul.mubr.msk.bf16.gmra.mrb[4].mxu0 %vm265_vm1, %v709_v8 }
  0x1f   : > { %656 = vmatmul.mubr.msk.bf16.gmra.mrb[4].mxu1 %vm265_vm1, %v710_v9 }
  0xe9   : > { %v645_v11 = vpop.f32.mrb[0].mxu0 }
  0xea   : > { %v337_v12 = vadd.f32 %v645_v11, %v578_v10  ;;  %v653_v13 = vpop.f32.mrb[0].mxu1  ;;  %v328_v14 = vpop.f32.mrb[1].mxu0 }
  0xeb   : > { %v369_v15 = vadd.f32 %v653_v13, %v578_v10  ;;  %v329_v16 = vadd.f32 %v578_v10, %v328_v14  ;;  %v360_v17 = vpop.f32.mrb[1].mxu1  ;;  %v646_v18 = vpop.f32.mrb[2].mxu0 }
  0xec   : > { %v618_v19 = vpack.c.bf16 %v337_v12, %v337_v12  ;;  %v361_v20 = vadd.f32 %v578_v10, %v360_v17  ;;  %v340_v21 = vadd.f32 %v646_v18, %v578_v10  ;;  %v654_v22 = vpop.f32.mrb[2].mxu1  ;;  %v331_v23 = vpop.f32.mrb[3].mxu0 }
  0xed   : > { %v626_v24 = vpack.c.bf16 %v369_v15, %v369_v15  ;;  %v616_v25 = vpack.c.bf16 %v329_v16, %v329_v16  ;;  %v372_v26 = vadd.f32 %v654_v22, %v578_v10  ;;  %v332_v27 = vadd.f32 %v578_v10, %v331_v23  ;;  %v363_v28 = vpop.f32.mrb[3].mxu1 }
  0xee   : > { %458 = vst.msk [vmem:[%s825_s9 + $0x8] sm:$0xf] %vm455_vm2, %v618_v19  ;;  %v624_v29 = vpack.c.bf16 %v361_v20, %v361_v20  ;;  %v619_v30 = vpack.c.bf16 %v340_v21, %v340_v21  ;;  %v364_v31 = vadd.f32 %v578_v10, %v363_v28 }
  0xef   : > { %466 = vst.msk [vmem:[%s825_s9 + $0x28] sm:$0xf] %vm455_vm2, %v626_v24  ;;  %456 = vst.msk [vmem:[%s825_s9] sm:$0xf] %vm455_vm2, %v616_v25  ;;  %v627_v32 = vpack.c.bf16 %v372_v26, %v372_v26  ;;  %v617_v33 = vpack.c.bf16 %v332_v27, %v332_v27 }
  0xf0   : > { %464 = vst.msk [vmem:[%s825_s9 + $0x20] sm:$0xf] %vm455_vm2, %v624_v29  ;;  %459 = vst.msk [vmem:[%s825_s9 + $0xc] sm:$0xf] %vm455_vm2, %v619_v30  ;;  %v625_v34 = vpack.c.bf16 %v364_v31, %v364_v31 }
  0xf1   : > { %467 = vst.msk [vmem:[%s825_s9 + $0x2c] sm:$0xf] %vm455_vm2, %v627_v32  ;;  %457 = vst.msk [vmem:[%s825_s9 + $0x4] sm:$0xf] %vm455_vm2, %v617_v33  ;;  %v649_v35 = vpop.f32.mrb[4].mxu0 }
  0xf2   : > { %465 = vst.msk [vmem:[%s825_s9 + $0x24] sm:$0xf] %vm455_vm2, %v625_v34  ;;  %v353_v36 = vadd.f32 %v649_v35, %v578_v10  ;;  %v657_v37 = vpop.f32.mrb[4].mxu1  ;;  %v344_v38 = vpop.f32.mrb[5].mxu0 }
  0xf3   : > { %v385_v39 = vadd.f32 %v657_v37, %v578_v10  ;;  %v345_v40 = vadd.f32 %v578_v10, %v344_v38  ;;  %v376_v41 = vpop.f32.mrb[5].mxu1  ;;  %v650_v42 = vpop.f32.mrb[6].mxu0 }
  0xf4   : > { %v622_v43 = vpack.c.bf16 %v353_v36, %v353_v36  ;;  %v377_v44 = vadd.f32 %v578_v10, %v376_v41  ;;  %v356_v45 = vadd.f32 %v650_v42, %v578_v10  ;;  %v658_v46 = vpop.f32.mrb[6].mxu1  ;;  %v347_v47 = vpop.f32.mrb[7].mxu0 }
  0xf5   : > { %v630_v48 = vpack.c.bf16 %v385_v39, %v385_v39  ;;  %v620_v49 = vpack.c.bf16 %v345_v40, %v345_v40  ;;  %v388_v50 = vadd.f32 %v658_v46, %v578_v10  ;;  %v348_v51 = vadd.f32 %v578_v10, %v347_v47  ;;  %v379_v52 = vpop.f32.mrb[7].mxu1 }
  0xf6   : > { %462 = vst.msk [vmem:[%s825_s9 + $0x18] sm:$0xf] %vm455_vm2, %v622_v43  ;;  %v628_v53 = vpack.c.bf16 %v377_v44, %v377_v44  ;;  %v623_v54 = vpack.c.bf16 %v356_v45, %v356_v45  ;;  %v380_v55 = vadd.f32 %v578_v10, %v379_v52 }
  0xf7   : > { %470 = vst.msk [vmem:[%s825_s9 + $0x38] sm:$0xf] %vm455_vm2, %v630_v48  ;;  %460 = vst.msk [vmem:[%s825_s9 + $0x10] sm:$0xf] %vm455_vm2, %v620_v49  ;;  %v631_v56 = vpack.c.bf16 %v388_v50, %v388_v50  ;;  %v621_v57 = vpack.c.bf16 %v348_v51, %v348_v51 }
  0xf8   : > { %468 = vst.msk [vmem:[%s825_s9 + $0x30] sm:$0xf] %vm455_vm2, %v628_v53  ;;  %463 = vst.msk [vmem:[%s825_s9 + $0x1c] sm:$0xf] %vm455_vm2, %v623_v54  ;;  %v629_v58 = vpack.c.bf16 %v380_v55, %v380_v55 }
  0xf9   : > { %471 = vst.msk [vmem:[%s825_s9 + $0x3c] sm:$0xf] %vm455_vm2, %v631_v56  ;;  %461 = vst.msk [vmem:[%s825_s9 + $0x14] sm:$0xf] %vm455_vm2, %v621_v57 }
  0xfa   : > { %469 = vst.msk [vmem:[%s825_s9 + $0x34] sm:$0xf] %vm455_vm2, %v629_v58 }
  0xfb PF: > { %s13_s16 = sadd.s32 1, %s749_s16   ;;  %s878_s12 = smov %s741_s14 }
  0xfc   : > { %p10_p7 = scmp.ge.s32.totalorder %s13_s16, 6   ;;  %s879_s13 = smov %s745_s15 }
  0xfd   : > { %s880_s14 = smov %s883_s17  ;;  %s881_s15 = smov %s887_s18 }
  0xfe   :  { %12 = sbr.rel (!%p10_p7) target bundleno = 3 (0x3), region = 63 }

// kernel: trans_block_forward.3
= control target key start
LH: loop header
LB: loop body
LE: loop exit
PB: predicated region body
PF: predicated region fallthrough
CT: control target
= control target key end

     0   :  { %s2431_s12 = smov 0   ;;  %s2433_s13 = smov 0   ;;  %s3374_s0 = inlined_call_operand.vmem [shape: bf16[2,18,18,8], index: 0, kind: input, shape index: {}]   ;;  %s3375_s1 = inlined_call_operand.vmem [shape: bf16[72,8], index: 1, kind: input, shape index: {}]   ;;  %s3376_s2 = inlined_call_operand.vmem [shape: f32[1,8], index: 2, kind: input, shape index: {}]   ;;  %s3377_s3 = inlined_call_operand.vmem [shape: bf16[2,16,16,8], index: 3, kind: output, shape index: {}]  }
   0x1   :  { %s2435_s14 = smov 0   ;;  %s2437_s15 = smov 0  }
   0x2   :  { %s2439_s16 = smov 0  }
   0x3 LB: > { %s22_s17 = sadd.s32 1, %s2393_s14  ;;  %s25_s18 = sadd.s32 1, %s2397_s15  ;;  %s2401_s16 = sphi %s2439_s16, %s13_s16   ;;  %s2397_s15 = sphi %s2437_s15, %s3385_s15   ;;  %s2393_s14 = sphi %s2435_s14, %s3384_s14   ;;  %s2389_s13 = sphi %s2433_s13, %s3383_s13   ;;  %s2385_s12 = sphi %s2431_s12, %s3382_s12  }
   0x4   : > { %p23_p0 = scmp.ge.s32.totalorder %s22_s17, 2  ;;  %p2001_p1 = scmp.ge.s32.totalorder %s2401_s16, 1 }
   0x5   : > { %p151_p2 = scmp.lt.s32.totalorder %s2401_s16, 5 }
   0x6   : > { %s3387_s17 = smov (%p23_p0, %s22_s17), 0  ;;  %s3389_s18 = smov (!%p23_p0, %s25_s18), %s2397_s15 }
   0x7   : > { %p152_p3 = pnand %p2001_p1, %p151_p2  ;;  %p27_p4 = scmp.ge.s32.totalorder %s3389_s18, 2 }
   0x8   : > { %p180_p5 = scmp.lt.s32.totalorder (!%p152_p3), %s2389_s13, 1  ;;  %s2206_s19 = smul.u32 (!%p152_p3), 96, %s2385_s12  ;;  %vm452_vm0 = vcmask (!%p152_p3), 1042432   ;;  %vm453_vm1 = vcmask (!%p152_p3), 1046532   ;;  %vm225_vm3 = vsmask.f32 (!%p152_p3), 3328 }
   0x9   : > { %s3391_s18 = smov (%p27_p4, %s3389_s18), 0  ;;  %155 = sbr.rel (%p152_p3) target bundleno = 514 (0x202), region = 32 }
   0xa   : > { %s2403_s25 = smov (!%p152_p3), 24   ;;  %vm2518_vm2 = vmor (!%p152_p3), %vm452_vm0, %vm453_vm1  ;;  %vm226_vm4 = vsmask.f32 (!%p152_p3), 7440  ;;  %s2404_s26 = smov (!%p152_p3), 16   ;;  %vm1699_vm6 = vcmask (!%p152_p3), 1043456   ;;  %vm1495_vm7 = vcmask (!%p152_p3), 64512  }
   0xb   : > { %vm2584_vm5 = vmor (!%p152_p3), %vm225_vm3, %vm226_vm4  ;;  %s2405_s27 = smov (!%p152_p3), 8   ;;  %s2406_s28 = smov (!%p152_p3), 32   ;;  %vm1520_vm8 = vcmask (!%p152_p3), 130048   ;;  %vm1537_vm9 = vcmask (!%p152_p3), 195584   ;;  %vm1554_vm10 = vcmask (!%p152_p3), 261120   ;;  %vm1571_vm11 = vcmask (!%p152_p3), 326656  }
   0xc   : > { %s2407_s29 = smov (!%p152_p3), 40   ;;  %s2408_s7 = smov (!%p152_p3), 48   ;;  %vm1588_vm12 = vcmask (!%p152_p3), 392192   ;;  %vm1605_vm13 = vcmask (!%p152_p3), 457728   ;;  %vm1622_vm14 = vcmask (!%p152_p3), 523264   ;;  %vm1682_vm15 = vcmask (!%p152_p3), 588800  }
   0xd   : > { %vm1880_vm0 = vcmask (!%p152_p3), 60416  }
  0x10   : > { %s3393_s13 = smov (!%p180_p5, %s2389_s13), 1 }
  0x11   : > { %s2274_s20 = smul.u32 216, %s3393_s13 }
  0x13   : > { %s184_s23 = scalar_lea.vmem %s3374_s0, %s2274_s20  ;;  %s2410_s20 = smov 64  }
  0x14   : > { %s2470_s24 = scalar_lea.vmem %s184_s23, %s2206_s19  ;;  %s2409_s19 = smov 56  }
  0x15   : > { %v2028_v0 = vld [vmem:[%s2470_s24 + $0x3c] sm:$0xf]  ;;  %v2474_v1 = vld [vmem:[%s2470_s24 + $0x40] sm:$0xf]  ;;  %v2020_v2 = vld [vmem:[%s2470_s24 + $0xc] sm:$0xf] }
  0x16   : > { %v645_v3 = vshll.u32 %v2474_v1, 16  ;;  %v649_v4 = vshrl.u32 %v2474_v1, 16  ;;  %v2130_v5 = vcombine.low %v2028_v0, %v2474_v1  ;;  %v636_v6 = vshrl.u32 %v2028_v0, 16  ;;  %v2481_v7 = vld [vmem:[%s2470_s24 + $0x10] sm:$0xf]  ;;  %s2003_s23 = sshll.u32 %s2385_s12, 3 }
  0x17   : > { %v639_v8 = vshll.u32 %v2028_v0, 16  ;;  %v549_v9 = vshll.u32 %v2481_v7, 16  ;;  %v553_v10 = vshrl.u32 %v2481_v7, 16  ;;  %v2126_v11 = vcombine.low %v2020_v2, %v2481_v7  ;;  %v2030_v12 = vld [vmem:[%s2470_s24 + $0x48] sm:$0xf]  ;;  %p188_p6 = scmp.lt.s32.totalorder %s2003_s23, 15 }
  0x18   : > { %v2487_v13 = vrot.slane %v649_v4, 4  ;;  %1279 = vrot.lane.b32.xlu1 %v2130_v5, %s2403_s25  ;;  %v638_v14 = vrot.slane %v636_v6, 4  ;;  %v540_v15 = vshrl.u32 %v2020_v2, 16  ;;  %v543_v16 = vshll.u32 %v2020_v2, 16  ;;  %v2491_v17 = vld [vmem:[%s2470_s24 + $0x4c] sm:$0xf] }
  0x19   : > { %v641_v18 = vrot.slane %v639_v8, 5  ;;  %v2493_v19 = vrot.slane %v553_v10, 4  ;;  %1271 = vrot.lane.b32.xlu0 %v2126_v11, %s2403_s25  ;;  %v660_v20 = vshrl.u32 %v2030_v12, 16  ;;  %v663_v21 = vshll.u32 %v2030_v12, 16  ;;  %v2022_v22 = vld [vmem:[%s2470_s24 + $0x18] sm:$0xf] }
  0x1a   : > { %v542_v23 = vrot.slane %v540_v15, 4  ;;  %v545_v24 = vrot.slane %v543_v16, 5  ;;  %v673_v25 = vshrl.u32 %v2491_v17, 16  ;;  %v2131_v26 = vcombine.low %v2030_v12, %v2491_v17  ;;  %v2500_v27 = vld [vmem:[%s2470_s24 + $0x1c] sm:$0xf]  ;;  %s3395_s23 = smov (!%p188_p6, %s2003_s23), 15 }
  0x1b   : > { %v642_v28 = vor.u32 %v641_v18, %v638_v14  ;;  %v2502_v29 = vrot.slane %v660_v20, 4  ;;  %v2504_v30 = vrot.slane %v663_v21, 5  ;;  %v564_v31 = vshrl.u32 %v2022_v22, 16  ;;  %v2507_v32 = vld [vmem:[%s2470_s24 + $0x34] sm:$0xf] }
  0x1c   : > { %v546_v33 = vor.u32 %v545_v24, %v542_v23  ;;  %1281 = vrot.lane.b32.xlu1 %v2131_v26, %s2403_s25  ;;  %v567_v34 = vshll.u32 %v2022_v22, 16  ;;  %v577_v35 = vshrl.u32 %v2500_v27, 16  ;;  %v2127_v36 = vcombine.low %v2022_v22, %v2500_v27  ;;  %v2513_v37 = vld [vmem:[%s2470_s24 + $0x38] sm:$0x1]  ;;  %v424_v38 = vld [vmem:[%s2470_s24 + $0x30] sm:$0xe] }
  0x1d   : > { %v2522_v40 = vrot.slane %v642_v28, 4  ;;  %v2524_v41 = vrot.slane %v564_v31, 4  ;;  %v2014_v42 = vrot.slane %v424_v38, 9  ;;  %v485_v43 = vrot.slane %v2507_v32, 5  ;;  %v2528_v44 = vld [vmem:[%s2470_s24 + $0x4] sm:$0xf] }
  0x1e   : > { %v2530_v45 = vrot.slane %v546_v33, 4  ;;  %v2532_v46 = vrot.slane %v567_v34, 5  ;;  %1273 = vrot.lane.b32.xlu0 %v2127_v36, %s2403_s25  ;;  %v488_v47 = vrot.slane %v2513_v37, 5  ;;  %v2537_v48 = vld [vmem:[%s2470_s24 + $0x8] sm:$0x1]  ;;  %v457_v49 = vrot.slane %v2528_v44, 5 }
  0x1f   : > { %v486_v50 = vsel %vm2518_vm2, %v2014_v42, %v485_v43  ;;  %v487_v51 = vrot.slane %v485_v43, 4  ;;  %v420_v52 = vld [vmem:[%s2470_s24] sm:$0xe]  ;;  %v460_v53 = vrot.slane %v2537_v48, 5  ;;  %v2548_v57 = vld [vmem:[%s2470_s24 + $0x44] sm:$0x1]  ;;  %v666_v59 = vor.u32 %v2504_v30, %v2502_v29 }
  0x20   : > { %v2545_v54 = vld [vmem:[%s2470_s24 + $0x40] sm:$0xf]  ;;  %v2010_v55 = vrot.slane %v420_v52, 9  ;;  %v459_v56 = vrot.slane %v457_v49, 4  ;;  %v425_v58 = vld [vmem:[%s2470_s24 + $0x3c] sm:$0xe]  ;;  %v570_v60 = vor.u32 %v2532_v46, %v2524_v41 }
  0x21   : > { %v489_v61 = vsel %vm2518_vm2, %v487_v51, %v488_v47  ;;  %v2015_v62 = vrot.slane %v425_v58, 9  ;;  %v492_v63 = vrot.slane %v2545_v54, 5  ;;  %v495_v0 = vrot.slane %v2548_v57, 5  ;;  %v204_v2 = vld [vmem:[%s2470_s24 + $0x10] sm:$0xf] }
  0x22   : > { %v2122_v4 = vcombine.low %v486_v50, %v489_v61  ;;  %v458_v5 = vsel %vm2518_vm2, %v2010_v55, %v457_v49  ;;  %v461_v6 = vsel %vm2518_vm2, %v459_v56, %v460_v53  ;;  %v218_v8 = vld [vmem:[%s2470_s24 + $0x14] sm:$0x1]  ;;  %v421_v10 = vld [vmem:[%s2470_s24 + $0xc] sm:$0xe]  ;;  %v464_v11 = vrot.slane %v204_v2, 5 }
  0x23   : > { %v2118_v12 = vcombine.low %v458_v5, %v461_v6  ;;  %v493_v14 = vsel %vm2518_vm2, %v2015_v62, %v492_v63  ;;  %v494_v15 = vrot.slane %v492_v63, 4  ;;  %v2011_v16 = vrot.slane %v421_v10, 9  ;;  %v203_v18 = vld [vmem:[%s2470_s24 + $0xc] sm:$0xf]  ;;  %v201_v33 = vld [vmem:[%s2470_s24] sm:$0xf] }
  0x24   : > { %1231 = vrot.lane.b32.xlu1 %v2122_v4, %s2404_s26  ;;  %v466_v20 = vrot.slane %v464_v11, 4  ;;  %v467_v21 = vrot.slane %v218_v8, 5  ;;  %v253_v22 = vshrl.u32 %v203_v18, 16  ;;  %v256_v23 = vshll.u32 %v203_v18, 16  ;;  %v211_v56 = vld [vmem:[%s2470_s24 + $0x3c] sm:$0xf] }
  0x25   : > { %1223 = vrot.lane.b32.xlu0 %v2118_v12, %s2404_s26  ;;  %v496_v24 = vsel %vm2518_vm2, %v494_v15, %v495_v0  ;;  %v465_v26 = vsel %vm2518_vm2, %v2011_v16, %v464_v11  ;;  %v262_v28 = vshll.u32 %v204_v2, 16  ;;  %v266_v31 = vshrl.u32 %v204_v2, 16 }
  0x26   : > { %v2123_v34 = vcombine.low %v493_v14, %v496_v24  ;;  %v468_v36 = vsel %vm2518_vm2, %v466_v20, %v467_v21  ;;  %v255_v38 = vrot.slane %v253_v22, 4  ;;  %v258_v42 = vrot.slane %v256_v23, 5  ;;  %v209_v20 = vld [vmem:[%s2470_s24 + $0x30] sm:$0xf] }
  0x27   : > { %v2119_v43 = vcombine.low %v465_v26, %v468_v36  ;;  %v264_v47 = vrot.slane %v262_v28, 5  ;;  %v268_v49 = vrot.slane %v266_v31, 4  ;;  %v272_v50 = vshll.u32 %v218_v8, 16 }
  0x28   : > { %1233 = vrot.lane.b32.xlu1 %v2123_v34, %s2404_s26  ;;  %v259_v51 = vor.u32 %v258_v42, %v255_v38  ;;  %v229_v52 = vshrl.u32 %v201_v33, 16  ;;  %v232_v53 = vshll.u32 %v201_v33, 16  ;;  %v238_v55 = vshll.u32 %v2528_v44, 16 }
  0x29   : > { %1225 = vrot.lane.b32.xlu0 %v2119_v43, %s2404_s26  ;;  %v269_v61 = vor.u32 %v268_v49, %v264_v47  ;;  %v274_v62 = vrot.slane %v272_v50, 5  ;;  %v242_v63 = vshrl.u32 %v2528_v44, 16  ;;  %v248_v0 = vshll.u32 %v2537_v48, 16 }
  0x2a   : > { %v260_v2 = vrot.slane %v259_v51, 4  ;;  %v231_v4 = vrot.slane %v229_v52, 4  ;;  %v234_v5 = vrot.slane %v232_v53, 5  ;;  %v240_v6 = vrot.slane %v238_v55, 5  ;;  %v2605_v52 = vld [vmem:[%s2470_s24 + $0x44] sm:$0x1] }
  0x2b   : > { %v270_v8 = vrot.slane %v269_v61, 4  ;;  %v244_v10 = vrot.slane %v242_v63, 4  ;;  %v250_v11 = vrot.slane %v248_v0, 5  ;;  %v349_v12 = vshrl.u32 %v211_v56, 16 }
  0x2c   : > { %v265_v14 = vsel %vm2584_vm5, %v260_v2, %v264_v47  ;;  %v235_v15 = vor.u32 %v234_v5, %v231_v4  ;;  %v352_v16 = vshll.u32 %v211_v56, 16  ;;  %v358_v18 = vshll.u32 %v2545_v54, 16 }
  0x2d   : > { %v275_v44 = vsel %vm2584_vm5, %v270_v8, %v274_v62  ;;  %v245_v48 = vor.u32 %v244_v10, %v240_v6  ;;  %v351_v21 = vrot.slane %v349_v12, 4  ;;  %v362_v22 = vshrl.u32 %v2545_v54, 16 }
  0x2e   : > { %v2111_v23 = vcombine.low %v265_v14, %v275_v44  ;;  %v236_v24 = vrot.slane %v235_v15, 4  ;;  %v354_v26 = vrot.slane %v352_v16, 5  ;;  %v360_v28 = vrot.slane %v358_v18, 5  ;;  %v2632_v44 = vld [vmem:[%s2470_s24 + $0x50] sm:$0x1] }
  0x2f   : > { %v246_v31 = vrot.slane %v245_v48, 4  ;;  %v364_v33 = vrot.slane %v362_v22, 4  ;;  %v368_v34 = vshll.u32 %v2548_v57, 16  ;;  %v325_v36 = vshrl.u32 %v209_v20, 16 }
  0x30   : > { %1185 = vrot.lane.b32.xlu1 %v2111_v23, %s2405_s27  ;;  %v241_v38 = vsel %vm2584_vm5, %v236_v24, %v240_v6  ;;  %v355_v42 = vor.u32 %v354_v26, %v351_v21  ;;  %v328_v43 = vshll.u32 %v209_v20, 16  ;;  %v334_v54 = vshll.u32 %v2507_v32, 16  ;;  %v2616_v6 = vld [vmem:[%s2470_s24 + $0x14] sm:$0x1] }
  0x31   : > { %v251_v47 = vsel %vm2584_vm5, %v246_v31, %v250_v11  ;;  %v365_v49 = vor.u32 %v364_v33, %v360_v28  ;;  %v370_v50 = vrot.slane %v368_v34, 5  ;;  %v327_v51 = vrot.slane %v325_v36, 4  ;;  %v2647_v31 = vld [vmem:[%s2470_s24 + $0x20] sm:$0x1]  ;;  %v2048_v34 = vld [vmem:[%s2470_s24 + $0x3c] sm:$0xe] }
  0x32   : > { %v2110_v57 = vcombine.low %v241_v38, %v251_v47  ;;  %v356_v53 = vrot.slane %v355_v42, 4  ;;  %v330_v55 = vrot.slane %v328_v43, 5  ;;  %v336_v56 = vrot.slane %v334_v54, 5  ;;  %v2044_v54 = vld [vmem:[%s2470_s24 + $0xc] sm:$0xe] }
  0x33   : > { %v366_v61 = vrot.slane %v365_v49, 4  ;;  %v338_v62 = vshrl.u32 %v2507_v32, 16  ;;  %v344_v63 = vshll.u32 %v2513_v37, 16  ;;  %v647_v0 = vrot.slane %v645_v3, 5 }
  0x34   : > { %1183 = vrot.lane.b32.xlu0 %v2110_v57, %s2405_s27  ;;  %v361_v2 = vsel %vm2584_vm5, %v356_v53, %v360_v28  ;;  %v331_v4 = vor.u32 %v330_v55, %v327_v51  ;;  %v655_v5 = vshll.u32 %v2605_v52, 16  ;;  %v551_v8 = vrot.slane %v549_v9, 5  ;;  %v2049_v53 = vld [vmem:[%s2470_s24 + $0x48] sm:$0xe] }
  0x35   : > { %v371_v32 = vsel %vm2584_vm5, %v366_v61, %v370_v50  ;;  %v340_v37 = vrot.slane %v338_v62, 4  ;;  %v346_v10 = vrot.slane %v344_v63, 5  ;;  %v648_v3 = vsel %vm2584_vm5, %v2522_v40, %v647_v0 }
  0x36   : > { %v2115_v11 = vcombine.low %v361_v2, %v371_v32  ;;  %v332_v12 = vrot.slane %v331_v4, 4  ;;  %v652_v14 = vor.u32 %v2487_v13, %v647_v0  ;;  %v657_v15 = vrot.slane %v655_v5, 5 }
  0x37   : > { %v341_v16 = vor.u32 %v340_v37, %v336_v56  ;;  %v552_v18 = vsel %vm2584_vm5, %v2530_v45, %v551_v8  ;;  %v556_v9 = vor.u32 %v2493_v19, %v551_v8  ;;  %v559_v20 = vshll.u32 %v2616_v6, 16 }
  0x38   : > { %1193 = vrot.lane.b32.xlu1 %v2115_v11, %s2405_s27  ;;  %v337_v40 = vsel %vm2584_vm5, %v332_v12, %v336_v56  ;;  %v653_v48 = vrot.slane %v652_v14, 4  ;;  %v667_v13 = vrot.slane %v666_v59, 4  ;;  %v669_v45 = vshll.u32 %v2491_v17, 16 }
  0x39   : > { %v342_v21 = vrot.slane %v341_v16, 4  ;;  %v557_v22 = vrot.slane %v556_v9, 4  ;;  %v561_v19 = vrot.slane %v559_v20, 5  ;;  %v675_v23 = vrot.slane %v673_v25, 4  ;;  %v2699_v20 = vld [vmem:[%s2470_s24 + $0x18] sm:$0xf] }
  0x3a   : > { %v658_v24 = vsel %vm2584_vm5, %v653_v48, %v657_v15  ;;  %v671_v26 = vrot.slane %v669_v45, 5  ;;  %v679_v28 = vshll.u32 %v2632_v44, 16  ;;  %v571_v29 = vrot.slane %v570_v60, 4  ;;  %v2692_v15 = vld [vmem:[%s2470_s24 + $0x4c] sm:$0xf] }
  0x3b   : > { %v347_v30 = vsel %vm2584_vm5, %v342_v21, %v346_v10  ;;  %v2138_v59 = vcombine.low %v648_v3, %v658_v24  ;;  %v562_v33 = vsel %vm2584_vm5, %v557_v22, %v561_v19  ;;  %v573_v25 = vshll.u32 %v2500_v27, 16  ;;  %v2705_v45 = vld [vmem:[%s2470_s24 + $0x1c] sm:$0xf] }
  0x3c   : > { %v2114_v36 = vcombine.low %v337_v40, %v347_v30  ;;  %v2134_v38 = vcombine.low %v552_v18, %v562_v33  ;;  %v672_v42 = vsel %vm2584_vm5, %v667_v13, %v671_v26  ;;  %v676_v43 = vor.u32 %v675_v23, %v671_v26  ;;  %v2715_v23 = vld [vmem:[%s2470_s24 + $0x54] sm:$0xf] }
  0x3d   : > { %1319 = vrot.lane.b32.xlu1 %v2138_v59, %s2406_s28  ;;  %v681_v41 = vrot.slane %v679_v28, 5  ;;  %v575_v46 = vrot.slane %v573_v25, 5  ;;  %v579_v60 = vrot.slane %v577_v35, 4  ;;  %v583_v47 = vshll.u32 %v2647_v31, 16 }
  0x3e   : > { %1191 = vrot.lane.b32.xlu0 %v2114_v36, %s2405_s27  ;;  %v677_v49 = vrot.slane %v676_v43, 4  ;;  %v2056_v50 = vrot.slane %v2048_v34, 9  ;;  %v793_v51 = vrot.slane %v2474_v1, 5  ;;  %v796_v57 = vrot.slane %v2605_v52, 5  ;;  %v2045_v1 = vld [vmem:[%s2470_s24 + $0x18] sm:$0xe] }
  0x3f   : > { %v576_v55 = vsel %vm2584_vm5, %v571_v29, %v575_v46  ;;  %v580_v56 = vor.u32 %v579_v60, %v575_v46  ;;  %v585_v61 = vrot.slane %v583_v47, 5  ;;  %v2052_v62 = vrot.slane %v2044_v54, 9  ;;  %v2721_v29 = vld [vmem:[%s2470_s24 + $0x58] sm:$0xf]  ;;  %v2727_v34 = vld [vmem:[%s2470_s24 + $0x24] sm:$0xf] }
  0x40   : > { %v682_v35 = vsel %vm2584_vm5, %v677_v49, %v681_v41  ;;  %v794_v63 = vsel %vm2518_vm2, %v2056_v50, %v793_v51  ;;  %v795_v0 = vrot.slane %v793_v51, 4  ;;  %v765_v2 = vrot.slane %v2481_v7, 5  ;;  %v2685_v7 = vld [vmem:[%s2470_s24 + $0x48] sm:$0xf]  ;;  %v2741_v49 = vld [vmem:[%s2470_s24 + $0x50] sm:$0x1] }
  0x41   : > { %v2139_v52 = vcombine.low %v672_v42, %v682_v35  ;;  %v581_v4 = vrot.slane %v580_v56, 4  ;;  %v768_v5 = vrot.slane %v2616_v6, 5  ;;  %v2057_v8 = vrot.slane %v2049_v53, 9  ;;  %v2736_v54 = vld [vmem:[%s2470_s24 + $0x28] sm:$0xf]  ;;  %v2343_v50 = vld [vmem:[%s3375_s1] sm:$0xff]  }
  0x42   : > { %1311 = vrot.lane.b32.xlu0 %v2134_v38, %s2406_s28  ;;  %v797_v32 = vsel %vm2518_vm2, %v795_v0, %v796_v57  ;;  %v766_v37 = vsel %vm2518_vm2, %v2052_v62, %v765_v2  ;;  %v767_v10 = vrot.slane %v765_v2, 4  ;;  %v800_v3 = vrot.slane %v2491_v17, 5  ;;  %2236 = vmatprep.subr.bf16.mxu0 %v2343_v50 }
  0x43   : > { %1321 = vrot.lane.b32.xlu1 %v2139_v52, %s2406_s28  ;;  %v586_v6 = vsel %vm2584_vm5, %v581_v4, %v585_v61  ;;  %v2146_v11 = vcombine.low %v794_v63, %v797_v32  ;;  %v803_v12 = vrot.slane %v2632_v44, 5  ;;  %v2053_v14 = vrot.slane %v2045_v1, 9  ;;  %v2755_v63 = vld [vmem:[%s2470_s24 + $0x20] sm:$0x1]  ;;  %2262 = vmatprep.subr.bf16.mxu1 %v2343_v50 }
  0x44   : > { %v2135_v16 = vcombine.low %v576_v55, %v586_v6  ;;  %v769_v18 = vsel %vm2518_vm2, %v767_v10, %v768_v5  ;;  %v801_v17 = vsel %vm2518_vm2, %v2057_v8, %v800_v3  ;;  %v802_v9 = vrot.slane %v800_v3, 4  ;;  %2237 = vmatpush3.bf16.msra.mxu0 %v2343_v50  ;;  %2267 = vmatpush3.bf16.msra.mxu1 %v2343_v50 }
  0x45   : > { %v2142_v40 = vcombine.low %v766_v37, %v769_v18  ;;  %v772_v48 = vrot.slane %v2500_v27, 5  ;;  %v775_v44 = vrot.slane %v2647_v31, 5  ;;  %v944_v13 = vshrl.u32 %v2685_v7, 16  ;;  %v2344_v37 = vld [vmem:[%s3375_s1 + $0x8] sm:$0xff]  }
  0x46   : > { %1313 = vrot.lane.b32.xlu0 %v2135_v16, %s2406_s28  ;;  %v804_v21 = vsel %vm2518_vm2, %v802_v9, %v803_v12  ;;  %v947_v22 = vshll.u32 %v2685_v7, 16  ;;  %v957_v19 = vshrl.u32 %v2692_v15, 16  ;;  %v2154_v27 = vcombine.low %v2685_v7, %v2692_v15  ;;  %2238 = vmatprep.subr.bf16.mxu0 %v2344_v37 }
  0x47   : > { %1359 = vrot.lane.b32.xlu1 %v2146_v11, %s2407_s29  ;;  %v2147_v24 = vcombine.low %v801_v17, %v804_v21  ;;  %v773_v26 = vsel %vm2518_vm2, %v2053_v14, %v772_v48  ;;  %v774_v28 = vrot.slane %v772_v48, 4  ;;  %v946_v31 = vrot.slane %v944_v13, 4  ;;  %v2767_v14 = vld [vmem:[%s2470_s24 + $0x5c] sm:$0x1]  ;;  %2263 = vmatprep.subr.bf16.mxu1 %v2344_v37 }
  0x48   : > { %v949_v30 = vrot.slane %v947_v22, 5  ;;  %v848_v59 = vshrl.u32 %v2699_v20, 16  ;;  %v851_v33 = vshll.u32 %v2699_v20, 16  ;;  %v861_v25 = vshrl.u32 %v2705_v45, 16  ;;  %2239 = vmatpush3.bf16.msra.mxu0 %v2344_v37  ;;  %2268 = vmatpush3.bf16.msra.mxu1 %v2344_v37 }
  0x49   : > { %v776_v36 = vsel %vm2518_vm2, %v774_v28, %v775_v44  ;;  %v2150_v38 = vcombine.low %v2699_v20, %v2705_v45  ;;  %v968_v42 = vshrl.u32 %v2715_v23, 16  ;;  %v971_v43 = vshll.u32 %v2715_v23, 16 }
  0x4a   : > { %1351 = vrot.lane.b32.xlu0 %v2142_v40, %s2407_s29  ;;  %v2143_v41 = vcombine.low %v773_v26, %v776_v36  ;;  %v850_v46 = vrot.slane %v848_v59, 4  ;;  %v853_v60 = vrot.slane %v851_v33, 5  ;;  %v981_v47 = vshrl.u32 %v2721_v29, 16  ;;  %v2345_v26 = vld [vmem:[%s3375_s1 + $0x10] sm:$0xff]   ;;  %v2090_v33 = vld [vmem:[%s2470_s24 + $0x48] sm:$0xe] }
  0x4b   : > { %1361 = vrot.lane.b32.xlu1 %v2147_v24, %s2407_s29  ;;  %v970_v51 = vrot.slane %v968_v42, 4  ;;  %v973_v57 = vrot.slane %v971_v43, 5  ;;  %v2155_v53 = vcombine.low %v2715_v23, %v2721_v29  ;;  %v872_v55 = vshrl.u32 %v2727_v34, 16  ;;  %2240 = vmatprep.subr.bf16.mxu0 %v2345_v26  ;;  %v2346_v42 = vld [vmem:[%s3375_s1 + $0x18] sm:$0xff]  }
  0x4c   : > { %v875_v56 = vshll.u32 %v2727_v34, 16  ;;  %v885_v61 = vshrl.u32 %v2736_v54, 16  ;;  %v2151_v62 = vcombine.low %v2727_v34, %v2736_v54  ;;  %v950_v35 = vor.u32 %v949_v30, %v946_v31  ;;  %2264 = vmatprep.subr.bf16.mxu1 %v2345_v26  ;;  %2241 = vmatpush3.bf16.msra.mxu0 %v2345_v26 }
  0x4d   : > { %v874_v0 = vrot.slane %v872_v55, 4  ;;  %v953_v2 = vshll.u32 %v2692_v15, 16  ;;  %v959_v1 = vrot.slane %v957_v19, 4  ;;  %v963_v52 = vshll.u32 %v2741_v49, 16  ;;  %v213_v55 = vld [vmem:[%s2470_s24 + $0x48] sm:$0xf]  ;;  %2269 = vmatpush3.bf16.msra.mxu1 %v2345_v26  ;;  %2242 = vmatprep.subr.bf16.mxu0 %v2346_v42 }
  0x4e   : > { %1353 = vrot.lane.b32.xlu0 %v2143_v41, %s2407_s29  ;;  %v877_v4 = vrot.slane %v875_v56, 5  ;;  %v951_v5 = vrot.slane %v950_v35, 4  ;;  %v854_v8 = vor.u32 %v853_v60, %v850_v46  ;;  %v857_v32 = vshll.u32 %v2705_v45, 16  ;;  %2265 = vmatprep.subr.bf16.mxu1 %v2346_v42  ;;  %v2091_v26 = vld [vmem:[%s2470_s24 + $0x54] sm:$0xe] }
  0x4f   : > { %1407 = vrot.lane.b32.xlu1 %v2154_v27, %s2408_s7  ;;  %v955_v10 = vrot.slane %v953_v2, 5  ;;  %v965_v3 = vrot.slane %v963_v52, 5  ;;  %v863_v7 = vrot.slane %v861_v25, 4  ;;  %v867_v6 = vshll.u32 %v2755_v63, 16  ;;  %v2778_v27 = vld [vmem:[%s2470_s24 + $0x2c] sm:$0x1] }
  0x50   : > { %v855_v11 = vrot.slane %v854_v8, 4  ;;  %v859_v12 = vrot.slane %v857_v32, 5  ;;  %v974_v16 = vor.u32 %v973_v57, %v970_v51  ;;  %v977_v18 = vshll.u32 %v2721_v29, 16  ;;  %2243 = vmatpush3.bf16.msra.mxu0 %v2346_v42 }
  0x51   : > { %v956_v17 = vsel %vm2584_vm5, %v951_v5, %v955_v10  ;;  %v960_v9 = vor.u32 %v959_v1, %v955_v10  ;;  %v869_v20 = vrot.slane %v867_v6, 5  ;;  %v983_v40 = vrot.slane %v981_v47, 4  ;;  %v2086_v47 = vld [vmem:[%s2470_s24 + $0x18] sm:$0xe]  ;;  %v2818_v10 = vld [vmem:[%s2470_s24 + $0x50] sm:$0x1]  ;;  %2270 = vmatpush3.bf16.msra.mxu1 %v2346_v42 }
  0x52   : > { %1399 = vrot.lane.b32.xlu0 %v2150_v38, %s2408_s7  ;;  %v860_v48 = vsel %vm2584_vm5, %v855_v11, %v859_v12  ;;  %v864_v44 = vor.u32 %v863_v7, %v859_v12  ;;  %v975_v13 = vrot.slane %v974_v16, 4  ;;  %v979_v21 = vrot.slane %v977_v18, 5  ;;  %v205_v7 = vld [vmem:[%s2470_s24 + $0x18] sm:$0xf]  ;;  %v2826_v16 = vld [vmem:[%s2470_s24 + $0x1c] sm:$0xf] }
  0x53   : > { %1409 = vrot.lane.b32.xlu1 %v2155_v53, %s2408_s7  ;;  %v961_v22 = vrot.slane %v960_v9, 4  ;;  %v987_v19 = vshll.u32 %v2767_v14, 16  ;;  %v878_v23 = vor.u32 %v877_v4, %v874_v0  ;;  %v881_v24 = vshll.u32 %v2736_v54, 16  ;;  %v2807_v4 = vld [vmem:[%s2470_s24 + $0x4c] sm:$0xf] }
  0x54   : > { %v865_v28 = vrot.slane %v864_v44, 4  ;;  %v980_v31 = vsel %vm2584_vm5, %v975_v13, %v979_v21  ;;  %v984_v30 = vor.u32 %v983_v40, %v979_v21  ;;  %v887_v59 = vrot.slane %v885_v61, 4  ;;  %v2832_v40 = vld [vmem:[%s2470_s24 + $0x20] sm:$0x1] }
  0x55   : > { %v966_v25 = vsel %vm2584_vm5, %v961_v22, %v965_v3  ;;  %v989_v34 = vrot.slane %v987_v19, 5  ;;  %v879_v36 = vrot.slane %v878_v23, 4  ;;  %v883_v38 = vrot.slane %v881_v24, 5 }
  0x56   : > { %1401 = vrot.lane.b32.xlu0 %v2151_v62, %s2408_s7  ;;  %v2162_v43 = vcombine.low %v956_v17, %v966_v25  ;;  %v870_v41 = vsel %vm2584_vm5, %v865_v28, %v869_v20  ;;  %v985_v46 = vrot.slane %v984_v30, 4  ;;  %v891_v60 = vshll.u32 %v2778_v27, 16 }
  0x57   : > { %v2158_v50 = vcombine.low %v860_v48, %v870_v41  ;;  %v884_v51 = vsel %vm2584_vm5, %v879_v36, %v883_v38  ;;  %v888_v57 = vor.u32 %v887_v59, %v883_v38  ;;  %v2098_v53 = vrot.slane %v2090_v33, 9  ;;  %v2087_v38 = vld [vmem:[%s2470_s24 + $0x24] sm:$0xe] }
  0x58   : > { %1447 = vrot.lane.b32.xlu1 %v2162_v43, %s2409_s19  ;;  %v990_v56 = vsel %vm2584_vm5, %v985_v46, %v989_v34  ;;  %v893_v61 = vrot.slane %v891_v60, 5  ;;  %v1101_v62 = vrot.slane %v2692_v15, 5  ;;  %v1104_v35 = vrot.slane %v2741_v49, 5 }
  0x59   : > { %v2163_v0 = vcombine.low %v980_v31, %v990_v56  ;;  %v889_v2 = vrot.slane %v888_v57, 4  ;;  %v2094_v1 = vrot.slane %v2086_v47, 9  ;;  %v1073_v52 = vrot.slane %v2705_v45, 5  ;;  %v2848_v57 = vld [vmem:[%s2470_s24 + $0x54] sm:$0xf] }
  0x5a   : > { %1439 = vrot.lane.b32.xlu0 %v2158_v50, %s2409_s19  ;;  %v1102_v5 = vsel %vm2518_vm2, %v2098_v53, %v1101_v62  ;;  %v1103_v8 = vrot.slane %v1101_v62, 4  ;;  %v1076_v15 = vrot.slane %v2755_v63, 5  ;;  %v373_v49 = vshrl.u32 %v213_v55, 16 }
  0x5b   : > { %v894_v32 = vsel %vm2584_vm5, %v889_v2, %v893_v61  ;;  %v1074_v37 = vsel %vm2518_vm2, %v2094_v1, %v1073_v52  ;;  %v1075_v45 = vrot.slane %v1073_v52, 4  ;;  %v376_v3 = vshll.u32 %v213_v55, 16  ;;  %v2857_v2 = vld [vmem:[%s2470_s24 + $0x58] sm:$0xf] }
  0x5c   : > { %1449 = vrot.lane.b32.xlu1 %v2163_v0, %s2409_s19  ;;  %v2159_v6 = vcombine.low %v884_v51, %v894_v32  ;;  %v1105_v63 = vsel %vm2518_vm2, %v1103_v8, %v1104_v35  ;;  %v375_v11 = vrot.slane %v373_v49, 4  ;;  %v382_v12 = vshll.u32 %v2807_v4, 16  ;;  %v2870_v32 = vld [vmem:[%s2470_s24 + $0x24] sm:$0xf] }
  0x5d   : > { %v2170_v18 = vcombine.low %v1102_v5, %v1105_v63  ;;  %v1077_v17 = vsel %vm2518_vm2, %v1075_v45, %v1076_v15  ;;  %v378_v9 = vrot.slane %v376_v3, 5  ;;  %v386_v20 = vshrl.u32 %v2807_v4, 16  ;;  %v2862_v5 = vld [vmem:[%s2470_s24 + $0x5c] sm:$0x1] }
  0x5e   : > { %1441 = vrot.lane.b32.xlu0 %v2159_v6, %s2409_s19  ;;  %v2166_v48 = vcombine.low %v1074_v37, %v1077_v17  ;;  %v384_v44 = vrot.slane %v382_v12, 5  ;;  %v392_v13 = vshll.u32 %v2818_v10, 16  ;;  %v277_v21 = vshrl.u32 %v205_v7, 16  ;;  %v2878_v6 = vld [vmem:[%s2470_s24 + $0x28] sm:$0xf] }
  0x5f   : > { %v379_v22 = vor.u32 %v378_v9, %v375_v11  ;;  %v388_v19 = vrot.slane %v386_v20, 4  ;;  %v280_v23 = vshll.u32 %v205_v7, 16  ;;  %v286_v24 = vshll.u32 %v2826_v16, 16  ;;  %v2885_v17 = vld [vmem:[%s2470_s24 + $0x2c] sm:$0x1] }
  0x60   : > { %1487 = vrot.lane.b32.xlu1 %v2170_v18, %s2410_s20  ;;  %v394_v28 = vrot.slane %v392_v13, 5  ;;  %v279_v31 = vrot.slane %v277_v21, 4  ;;  %v290_v30 = vshrl.u32 %v2826_v16, 16  ;;  %v296_v59 = vshll.u32 %v2832_v40, 16  ;;  %v426_v13 = vld [vmem:[%s2470_s24 + $0x48] sm:$0xe] }
  0x61   : > { %v380_v33 = vrot.slane %v379_v22, 4  ;;  %v389_v25 = vor.u32 %v388_v19, %v384_v44  ;;  %v282_v34 = vrot.slane %v280_v23, 5  ;;  %v288_v36 = vrot.slane %v286_v24, 5 }
  0x62   : > { %1479 = vrot.lane.b32.xlu0 %v2166_v48, %s2410_s20  ;;  %v292_v42 = vrot.slane %v290_v30, 4  ;;  %v298_v43 = vrot.slane %v296_v59, 5  ;;  %v2099_v41 = vrot.slane %v2091_v26, 9  ;;  %v1108_v46 = vrot.slane %v2721_v29, 5  ;;  %v422_v30 = vld [vmem:[%s2470_s24 + $0x18] sm:$0xe] }
  0x63   : > { %v385_v60 = vsel %vm2584_vm5, %v380_v33, %v384_v44  ;;  %v390_v47 = vrot.slane %v389_v25, 4  ;;  %v283_v50 = vor.u32 %v282_v34, %v279_v31  ;;  %v1111_v51 = vrot.slane %v2767_v14, 5 }
  0x64   : > { %v293_v53 = vor.u32 %v292_v42, %v288_v36  ;;  %v1109_v55 = vsel %vm2518_vm2, %v2099_v41, %v1108_v46  ;;  %v1110_v56 = vrot.slane %v1108_v46, 4  ;;  %v2095_v61 = vrot.slane %v2087_v38, 9 }
  0x65   : > { %v395_v29 = vsel %vm2584_vm5, %v390_v47, %v394_v28  ;;  %v284_v62 = vrot.slane %v283_v50, 4  ;;  %v1080_v35 = vrot.slane %v2736_v54, 5  ;;  %v1083_v0 = vrot.slane %v2778_v27, 5  ;;  %v427_v50 = vld [vmem:[%s2470_s24 + $0x54] sm:$0xe] }
  0x66   : > { %v2116_v14 = vcombine.low %v385_v60, %v395_v29  ;;  %v294_v1 = vrot.slane %v293_v53, 4  ;;  %v1112_v52 = vsel %vm2518_vm2, %v1110_v56, %v1111_v51  ;;  %v397_v8 = vshrl.u32 %v2848_v57, 16 }
  0x67   : > { %v289_v15 = vsel %vm2584_vm5, %v284_v62, %v288_v36  ;;  %v2171_v49 = vcombine.low %v1109_v55, %v1112_v52  ;;  %v1081_v54 = vsel %vm2518_vm2, %v2095_v61, %v1080_v35  ;;  %v1082_v27 = vrot.slane %v1080_v35, 4 }
  0x68   : > { %1195 = vrot.lane.b32.xlu1 %v2116_v14, %s2405_s27  ;;  %v299_v37 = vsel %vm2584_vm5, %v294_v1, %v298_v43  ;;  %v399_v45 = vrot.slane %v397_v8, 4  ;;  %v400_v3 = vshll.u32 %v2848_v57, 16  ;;  %v406_v7 = vshll.u32 %v2857_v2, 16 }
  0x69   : > { %v2112_v63 = vcombine.low %v289_v15, %v299_v37  ;;  %v1084_v11 = vsel %vm2518_vm2, %v1082_v27, %v1083_v0  ;;  %v410_v12 = vshrl.u32 %v2857_v2, 16  ;;  %v416_v18 = vshll.u32 %v2862_v5, 16 }
  0x6a   : > { %v2167_v9 = vcombine.low %v1081_v54, %v1084_v11  ;;  %v402_v20 = vrot.slane %v400_v3, 5  ;;  %v408_v48 = vrot.slane %v406_v7, 5  ;;  %v301_v44 = vshrl.u32 %v2870_v32, 16  ;;  %v2916_v54 = vld [vmem:[%s2470_s24 + $0x54] sm:$0xf] }
  0x6b   : > { %1187 = vrot.lane.b32.xlu0 %v2112_v63, %s2405_s27  ;;  %v412_v21 = vrot.slane %v410_v12, 4  ;;  %v418_v22 = vrot.slane %v416_v18, 5  ;;  %v304_v19 = vshll.u32 %v2870_v32, 16  ;;  %v310_v23 = vshll.u32 %v2878_v6, 16  ;;  %v2924_v3 = vld [vmem:[%s2470_s24 + $0x58] sm:$0xf] }
  0x6c   : > { %1489 = vrot.lane.b32.xlu1 %v2171_v49, %s2410_s20  ;;  %v403_v24 = vor.u32 %v402_v20, %v399_v45  ;;  %v303_v26 = vrot.slane %v301_v44, 4  ;;  %v314_v28 = vshrl.u32 %v2878_v6, 16  ;;  %v320_v31 = vshll.u32 %v2885_v17, 16  ;;  %v2931_v18 = vld [vmem:[%s2470_s24 + $0x24] sm:$0xf] }
  0x6d   : > { %v413_v59 = vor.u32 %v412_v21, %v408_v48  ;;  %v306_v33 = vrot.slane %v304_v19, 5  ;;  %v312_v25 = vrot.slane %v310_v23, 5  ;;  %v2016_v34 = vrot.slane %v426_v13, 9 }
  0x6e   : > { %v404_v36 = vrot.slane %v403_v24, 4  ;;  %v316_v38 = vrot.slane %v314_v28, 4  ;;  %v322_v42 = vrot.slane %v320_v31, 5  ;;  %v499_v43 = vrot.slane %v2807_v4, 5  ;;  %v2034_v28 = vld [vmem:[%s2470_s24 + $0x60] sm:$0xf] }
  0x6f   : > { %1481 = vrot.lane.b32.xlu0 %v2167_v9, %s2410_s20  ;;  %v414_v41 = vrot.slane %v413_v59, 4  ;;  %v307_v46 = vor.u32 %v306_v33, %v303_v26  ;;  %v502_v60 = vrot.slane %v2818_v10, 5  ;;  %v2012_v47 = vrot.slane %v422_v30, 9  ;;  %v423_v10 = vld [vmem:[%s2470_s24 + $0x24] sm:$0xe] }
  0x70   : > { %v409_v51 = vsel %vm2584_vm5, %v404_v36, %v408_v48  ;;  %v317_v53 = vor.u32 %v316_v38, %v312_v25  ;;  %v500_v55 = vsel %vm2518_vm2, %v2016_v34, %v499_v43  ;;  %v501_v56 = vrot.slane %v499_v43, 4  ;;  %v2952_v31 = vld [vmem:[%s2470_s24 + $0x64] sm:$0xf]  ;;  %v2958_v34 = vld [vmem:[%s2470_s24 + $0x30] sm:$0xf] }
  0x71   : > { %v419_v4 = vsel %vm2584_vm5, %v414_v41, %v418_v22  ;;  %v308_v61 = vrot.slane %v307_v46, 4  ;;  %v471_v29 = vrot.slane %v2826_v16, 5  ;;  %v474_v62 = vrot.slane %v2832_v40, 5  ;;  %v2942_v22 = vld [vmem:[%s2470_s24 + $0x28] sm:$0xf] }
  0x72   : > { %v2117_v35 = vcombine.low %v409_v51, %v419_v4  ;;  %v318_v0 = vrot.slane %v317_v53, 4  ;;  %v503_v14 = vsel %vm2518_vm2, %v501_v56, %v502_v60  ;;  %v2017_v1 = vrot.slane %v427_v50, 9  ;;  %v2961_v36 = vld [vmem:[%s2470_s24 + $0x34] sm:$0xf]  ;;  %v2974_v4 = vld [vmem:[%s2470_s24 + $0x5c] sm:$0x1] }
  0x73   : > { %v313_v52 = vsel %vm2584_vm5, %v308_v61, %v312_v25  ;;  %v2124_v8 = vcombine.low %v500_v55, %v503_v14  ;;  %v472_v15 = vsel %vm2518_vm2, %v2012_v47, %v471_v29  ;;  %v473_v49 = vrot.slane %v471_v29, 4 }
  0x74   : > { %1197 = vrot.lane.b32.xlu1 %v2117_v35, %s2405_s27  ;;  %v323_v40 = vsel %vm2584_vm5, %v318_v0, %v322_v42  ;;  %v506_v27 = vrot.slane %v2857_v2, 5  ;;  %v509_v37 = vrot.slane %v2862_v5, 5  ;;  %v2013_v45 = vrot.slane %v423_v10, 9  ;;  %v2979_v35 = vld [vmem:[%s2470_s24 + $0x2c] sm:$0x1] }
  0x75   : > { %v2113_v7 = vcombine.low %v313_v52, %v323_v40  ;;  %v475_v63 = vsel %vm2518_vm2, %v473_v49, %v474_v62  ;;  %v478_v11 = vrot.slane %v2878_v6, 5  ;;  %v481_v12 = vrot.slane %v2885_v17, 5 }
  0x76   : > { %v2120_v9 = vcombine.low %v472_v15, %v475_v63  ;;  %v507_v5 = vsel %vm2518_vm2, %v2017_v1, %v506_v27  ;;  %v508_v20 = vrot.slane %v506_v27, 4  ;;  %v684_v48 = vshrl.u32 %v2916_v54, 16 }
  0x77   : > { %1189 = vrot.lane.b32.xlu0 %v2113_v7, %s2405_s27  ;;  %v479_v44 = vsel %vm2518_vm2, %v2013_v45, %v478_v11  ;;  %v480_v13 = vrot.slane %v478_v11, 4  ;;  %v687_v17 = vshll.u32 %v2916_v54, 16  ;;  %v697_v21 = vshrl.u32 %v2924_v3, 16 }
  0x78   : > { %1235 = vrot.lane.b32.xlu1 %v2124_v8, %s2404_s26  ;;  %v510_v19 = vsel %vm2518_vm2, %v508_v20, %v509_v37  ;;  %v686_v23 = vrot.slane %v684_v48, 4  ;;  %v2132_v24 = vcombine.low %v2916_v54, %v2924_v3  ;;  %v588_v26 = vshrl.u32 %v2931_v18, 16 }
  0x79   : > { %v2125_v30 = vcombine.low %v507_v5, %v510_v19  ;;  %v482_v59 = vsel %vm2518_vm2, %v480_v13, %v481_v12  ;;  %v689_v33 = vrot.slane %v687_v17, 5  ;;  %v591_v25 = vshll.u32 %v2931_v18, 16  ;;  %v2988_v12 = vld [vmem:[%s2470_s24 + $0x68] sm:$0x1] }
  0x7a   : > { %v2121_v38 = vcombine.low %v479_v44, %v482_v59  ;;  %v590_v42 = vrot.slane %v588_v26, 4  ;;  %v601_v43 = vshrl.u32 %v2942_v22, 16  ;;  %v2128_v41 = vcombine.low %v2931_v18, %v2942_v22 }
  0x7b   : > { %1227 = vrot.lane.b32.xlu0 %v2120_v9, %s2404_s26  ;;  %v593_v46 = vrot.slane %v591_v25, 5  ;;  %v708_v60 = vshrl.u32 %v2034_v28, 16  ;;  %v711_v47 = vshll.u32 %v2034_v28, 16  ;;  %v721_v50 = vshrl.u32 %v2952_v31, 16 }
  0x7c   : > { %1237 = vrot.lane.b32.xlu1 %v2125_v30, %s2404_s26  ;;  %v2133_v51 = vcombine.low %v2034_v28, %v2952_v31  ;;  %v612_v53 = vshrl.u32 %v2958_v34, 16  ;;  %v615_v55 = vshll.u32 %v2958_v34, 16  ;;  %v625_v56 = vshrl.u32 %v2961_v36, 16 }
  0x7d   : > { %v710_v61 = vrot.slane %v708_v60, 4  ;;  %v713_v29 = vrot.slane %v711_v47, 5  ;;  %v2129_v62 = vcombine.low %v2958_v34, %v2961_v36  ;;  %v690_v10 = vor.u32 %v689_v33, %v686_v23  ;;  %v2050_v34 = vld [vmem:[%s2470_s24 + $0x54] sm:$0xe] }
  0x7e   : > { %v614_v0 = vrot.slane %v612_v53, 4  ;;  %v617_v14 = vrot.slane %v615_v55, 5  ;;  %v693_v1 = vshll.u32 %v2924_v3, 16  ;;  %v699_v52 = vrot.slane %v697_v21, 4 }
  0x7f   : > { %1229 = vrot.lane.b32.xlu0 %v2121_v38, %s2404_s26  ;;  %v691_v8 = vrot.slane %v690_v10, 4  ;;  %v703_v15 = vshll.u32 %v2974_v4, 16  ;;  %v594_v49 = vor.u32 %v593_v46, %v590_v42  ;;  %v597_v54 = vshll.u32 %v2942_v22, 16 }
  0x80   : > { %1283 = vrot.lane.b32.xlu1 %v2132_v24, %s2403_s25  ;;  %v695_v40 = vrot.slane %v693_v1, 5  ;;  %v603_v27 = vrot.slane %v601_v43, 4  ;;  %v607_v37 = vshll.u32 %v2979_v35, 16  ;;  %v714_v45 = vor.u32 %v713_v29, %v710_v61  ;;  %v2999_v24 = vld [vmem:[%s2470_s24 + $0x38] sm:$0x1] }
  0x81   : > { %v705_v7 = vrot.slane %v703_v15, 5  ;;  %v595_v63 = vrot.slane %v594_v49, 4  ;;  %v599_v11 = vrot.slane %v597_v54, 5  ;;  %v717_v18 = vshll.u32 %v2952_v31, 16  ;;  %v2051_v29 = vld [vmem:[%s2470_s24 + $0x60] sm:$0xe] }
  0x82   : > { %v696_v9 = vsel %vm2584_vm5, %v691_v8, %v695_v40  ;;  %v700_v5 = vor.u32 %v699_v52, %v695_v40  ;;  %v609_v20 = vrot.slane %v607_v37, 5  ;;  %v715_v48 = vrot.slane %v714_v45, 4  ;;  %v2047_v49 = vld [vmem:[%s2470_s24 + $0x30] sm:$0xe] }
  0x83   : > { %1275 = vrot.lane.b32.xlu0 %v2128_v41, %s2403_s25  ;;  %v600_v44 = vsel %vm2584_vm5, %v595_v63, %v599_v11  ;;  %v604_v13 = vor.u32 %v603_v27, %v599_v11  ;;  %v719_v17 = vrot.slane %v717_v18, 5  ;;  %v723_v21 = vrot.slane %v721_v50, 4 }
  0x84   : > { %1285 = vrot.lane.b32.xlu1 %v2133_v51, %s2403_s25  ;;  %v701_v19 = vrot.slane %v700_v5, 4  ;;  %v727_v23 = vshll.u32 %v2988_v12, 16  ;;  %v618_v26 = vor.u32 %v617_v14, %v614_v0  ;;  %v621_v28 = vshll.u32 %v2961_v36, 16  ;;  %v2046_v51 = vld [vmem:[%s2470_s24 + $0x24] sm:$0xe] }
  0x85   : > { %v605_v30 = vrot.slane %v604_v13, 4  ;;  %v720_v59 = vsel %vm2584_vm5, %v715_v48, %v719_v17  ;;  %v724_v33 = vor.u32 %v723_v21, %v719_v17  ;;  %v627_v25 = vrot.slane %v625_v56, 4  ;;  %v3041_v5 = vld [vmem:[%s2470_s24 + $0x64] sm:$0xf]  ;;  %v3048_v13 = vld [vmem:[%s2470_s24 + $0x30] sm:$0xf] }
  0x86   : > { %v706_v38 = vsel %vm2584_vm5, %v701_v19, %v705_v7  ;;  %v729_v42 = vrot.slane %v727_v23, 5  ;;  %v619_v43 = vrot.slane %v618_v26, 4  ;;  %v623_v41 = vrot.slane %v621_v28, 5  ;;  %v3032_v7 = vld [vmem:[%s2470_s24 + $0x60] sm:$0xf] }
  0x87   : > { %1277 = vrot.lane.b32.xlu0 %v2129_v62, %s2403_s25  ;;  %v2140_v46 = vcombine.low %v696_v9, %v706_v38  ;;  %v610_v60 = vsel %vm2584_vm5, %v605_v30, %v609_v20  ;;  %v725_v47 = vrot.slane %v724_v33, 4  ;;  %v631_v50 = vshll.u32 %v2999_v24, 16  ;;  %v3055_v23 = vld [vmem:[%s2470_s24 + $0x34] sm:$0xf]  ;;  %v3064_v33 = vld [vmem:[%s2470_s24 + $0x6c] sm:$0xf] }
  0x88   : > { %v2136_v53 = vcombine.low %v600_v44, %v610_v60  ;;  %v624_v55 = vsel %vm2584_vm5, %v619_v43, %v623_v41  ;;  %v628_v56 = vor.u32 %v627_v25, %v623_v41  ;;  %v2058_v61 = vrot.slane %v2050_v34, 9  ;;  %v3070_v38 = vld [vmem:[%s2470_s24 + $0x70] sm:$0xf]  ;;  %v3076_v60 = vld [vmem:[%s2470_s24 + $0x3c] sm:$0xf]  ;;  %s2005_s25 = sshll.u32 %s3393_s13, 5 }
  0x89   : > { %1323 = vrot.lane.b32.xlu1 %v2140_v46, %s2406_s28  ;;  %v730_v62 = vsel %vm2584_vm5, %v725_v47, %v729_v42  ;;  %v633_v10 = vrot.slane %v631_v50, 5  ;;  %v807_v0 = vrot.slane %v2924_v3, 5  ;;  %v810_v14 = vrot.slane %v2974_v4, 5 }
  0x8a   : > { %v2141_v1 = vcombine.low %v720_v59, %v730_v62  ;;  %v629_v52 = vrot.slane %v628_v56, 4  ;;  %v2054_v8 = vrot.slane %v2046_v51, 9  ;;  %v779_v15 = vrot.slane %v2942_v22, 5  ;;  %v3034_v63 = vpop.permute.xlu1 %1279 }
  0x8b   : > { %1315 = vrot.lane.b32.xlu0 %v2136_v53, %s2406_s28  ;;  %v808_v54 = vsel %vm2518_vm2, %v2058_v61, %v807_v0  ;;  %v809_v40 = vrot.slane %v807_v0, 4  ;;  %v782_v27 = vrot.slane %v2979_v35, 5  ;;  %v2059_v37 = vrot.slane %v2051_v29, 9  ;;  %v3078_v47 = vpop.permute.xlu0 %1271  ;;  %v3090_v61 = vld [vmem:[%s2470_s24 + $0x40] sm:$0xf] }
  0x8c   : > { %v634_v3 = vsel %vm2584_vm5, %v629_v52, %v633_v10  ;;  %v780_v4 = vsel %vm2518_vm2, %v2054_v8, %v779_v15  ;;  %v781_v45 = vrot.slane %v779_v15, 4  ;;  %v814_v22 = vrot.slane %v2952_v31, 5 }
  0x8d   : > { %1325 = vrot.lane.b32.xlu1 %v2141_v1, %s2406_s28  ;;  %v2137_v11 = vcombine.low %v624_v55, %v634_v3  ;;  %v811_v35 = vsel %vm2518_vm2, %v809_v40, %v810_v14  ;;  %v817_v18 = vrot.slane %v2988_v12, 5  ;;  %v2055_v9 = vrot.slane %v2047_v49, 9  ;;  %v3094_v14 = vld [vmem:[%s2470_s24 + $0x68] sm:$0x1] }
  0x8e   : > { %v2148_v20 = vcombine.low %v808_v54, %v811_v35  ;;  %v783_v31 = vsel %vm2518_vm2, %v781_v45, %v782_v27  ;;  %v815_v48 = vsel %vm2518_vm2, %v2059_v37, %v814_v22  ;;  %v816_v44 = vrot.slane %v814_v22, 4  ;;  %v3080_v50 = vpop.permute.xlu1 %1281  ;;  %v3105_v37 = vld [vmem:[%s2470_s24 + $0x38] sm:$0x1] }
  0x8f   : > { %1317 = vrot.lane.b32.xlu0 %v2137_v11, %s2406_s28  ;;  %v2144_v17 = vcombine.low %v780_v4, %v783_v31  ;;  %v786_v12 = vrot.slane %v2961_v36, 5  ;;  %v789_v21 = vrot.slane %v2999_v24, 5  ;;  %v992_v19 = vshrl.u32 %v3032_v7, 16 }
  0x90   : > { %v818_v26 = vsel %vm2518_vm2, %v816_v44, %v817_v18  ;;  %v995_v28 = vshll.u32 %v3032_v7, 16  ;;  %v1005_v30 = vshrl.u32 %v3041_v5, 16  ;;  %v2156_v59 = vcombine.low %v3032_v7, %v3041_v5 }
  0x91   : > { %1363 = vrot.lane.b32.xlu1 %v2148_v20, %s2407_s29  ;;  %v2149_v36 = vcombine.low %v815_v48, %v818_v26  ;;  %v787_v24 = vsel %vm2518_vm2, %v2055_v9, %v786_v12  ;;  %v788_v25 = vrot.slane %v786_v12, 4  ;;  %v994_v34 = vrot.slane %v992_v19, 4  ;;  %v3111_v9 = vpop.permute.xlu0 %1273 }
  0x92   : > { %v997_v42 = vrot.slane %v995_v28, 5  ;;  %v896_v43 = vshrl.u32 %v3048_v13, 16  ;;  %v899_v41 = vshll.u32 %v3048_v13, 16  ;;  %v909_v46 = vshrl.u32 %v3055_v23, 16 }
  0x93   : > { %1355 = vrot.lane.b32.xlu0 %v2144_v17, %s2407_s29  ;;  %v790_v51 = vsel %vm2518_vm2, %v788_v25, %v789_v21  ;;  %v2152_v53 = vcombine.low %v3048_v13, %v3055_v23  ;;  %v1016_v55 = vshrl.u32 %v3064_v33, 16  ;;  %v1019_v56 = vshll.u32 %v3064_v33, 16  ;;  %v3118_v21 = vld [vmem:[%s2470_s24 + $0x74] sm:$0x1] }
  0x94   : > { %v2145_v29 = vcombine.low %v787_v24, %v790_v51  ;;  %v898_v62 = vrot.slane %v896_v43, 4  ;;  %v901_v10 = vrot.slane %v899_v41, 5  ;;  %v1029_v0 = vshrl.u32 %v3070_v38, 16  ;;  %v3129_v41 = vld [vmem:[%s2470_s24 + $0x44] sm:$0x1] }
  0x95   : > { %1365 = vrot.lane.b32.xlu1 %v2149_v36, %s2407_s29  ;;  %v1018_v1 = vrot.slane %v1016_v55, 4  ;;  %v1021_v52 = vrot.slane %v1019_v56, 5  ;;  %v2157_v8 = vcombine.low %v3064_v33, %v3070_v38  ;;  %v920_v15 = vshrl.u32 %v3076_v60, 16 }
  0x96   : > { %v923_v49 = vshll.u32 %v3076_v60, 16  ;;  %v933_v54 = vshrl.u32 %v3090_v61, 16  ;;  %v2153_v40 = vcombine.low %v3076_v60, %v3090_v61  ;;  %v998_v27 = vor.u32 %v997_v42, %v994_v34  ;;  %v3113_v20 = vpop.permute.xlu1 %1231 }
  0x97   : > { %1357 = vrot.lane.b32.xlu0 %v2145_v29, %s2407_s29  ;;  %v922_v3 = vrot.slane %v920_v15, 4  ;;  %v1001_v4 = vshll.u32 %v3041_v5, 16  ;;  %v1007_v45 = vrot.slane %v1005_v30, 4  ;;  %v1011_v22 = vshll.u32 %v3094_v14, 16  ;;  %v2092_v29 = vld [vmem:[%s2470_s24 + $0x60] sm:$0xe] }
  0x98   : > { %v925_v7 = vrot.slane %v923_v49, 5  ;;  %v999_v11 = vrot.slane %v998_v27, 4  ;;  %v902_v35 = vor.u32 %v901_v10, %v898_v62  ;;  %v905_v18 = vshll.u32 %v3055_v23, 16  ;;  %v3135_v62 = vpop.permute.xlu0 %1223 }
  0x99   : > { %1411 = vrot.lane.b32.xlu1 %v2156_v59, %s2408_s7  ;;  %v1003_v31 = vrot.slane %v1001_v4, 5  ;;  %v1013_v48 = vrot.slane %v1011_v22, 5  ;;  %v911_v44 = vrot.slane %v909_v46, 4  ;;  %v915_v13 = vshll.u32 %v3105_v37, 16 }
  0x9a   : > { %v903_v17 = vrot.slane %v902_v35, 4  ;;  %v907_v12 = vrot.slane %v905_v18, 5  ;;  %v1022_v19 = vor.u32 %v1021_v52, %v1018_v1  ;;  %v1025_v26 = vshll.u32 %v3070_v38, 16  ;;  %v3137_v10 = vpop.permute.xlu1 %1233 }
  0x9b   : > { %1403 = vrot.lane.b32.xlu0 %v2152_v53, %s2408_s7  ;;  %v1004_v28 = vsel %vm2584_vm5, %v999_v11, %v1003_v31  ;;  %v1008_v30 = vor.u32 %v1007_v45, %v1003_v31  ;;  %v917_v59 = vrot.slane %v915_v13, 5  ;;  %v1031_v33 = vrot.slane %v1029_v0, 4 }
  0x9c   : > { %v908_v36 = vsel %vm2584_vm5, %v903_v17, %v907_v12  ;;  %v912_v24 = vor.u32 %v911_v44, %v907_v12  ;;  %v1023_v25 = vrot.slane %v1022_v19, 4  ;;  %v1027_v34 = vrot.slane %v1025_v26, 5  ;;  %v2089_v12 = vld [vmem:[%s2470_s24 + $0x3c] sm:$0xe] }
  0x9d   : > { %1413 = vrot.lane.b32.xlu1 %v2157_v8, %s2408_s7  ;;  %v1009_v42 = vrot.slane %v1008_v30, 4  ;;  %v1035_v43 = vshll.u32 %v3118_v21, 16  ;;  %v926_v46 = vor.u32 %v925_v7, %v922_v3  ;;  %v929_v60 = vshll.u32 %v3090_v61, 16  ;;  %v2088_v3 = vld [vmem:[%s2470_s24 + $0x30] sm:$0xe] }
  0x9e   : > { %v913_v51 = vrot.slane %v912_v24, 4  ;;  %v1028_v53 = vsel %vm2584_vm5, %v1023_v25, %v1027_v34  ;;  %v1032_v55 = vor.u32 %v1031_v33, %v1027_v34  ;;  %v935_v56 = vrot.slane %v933_v54, 4  ;;  %v2093_v7 = vld [vmem:[%s2470_s24 + $0x6c] sm:$0xe] }
  0x9f   : > { %1405 = vrot.lane.b32.xlu0 %v2153_v40, %s2408_s7  ;;  %v1014_v0 = vsel %vm2584_vm5, %v1009_v42, %v1013_v48  ;;  %v1037_v1 = vrot.slane %v1035_v43, 5  ;;  %v927_v52 = vrot.slane %v926_v46, 4  ;;  %v931_v8 = vrot.slane %v929_v60, 5 }
  0xa0   : > { %v2164_v15 = vcombine.low %v1004_v28, %v1014_v0  ;;  %v918_v49 = vsel %vm2584_vm5, %v913_v51, %v917_v59  ;;  %v1033_v27 = vrot.slane %v1032_v55, 4  ;;  %v939_v54 = vshll.u32 %v3129_v41, 16  ;;  %v3160_v59 = vpop.permute.xlu0 %1225 }
  0xa1   : > { %v2160_v4 = vcombine.low %v908_v36, %v918_v49  ;;  %v932_v45 = vsel %vm2584_vm5, %v927_v52, %v931_v8  ;;  %v936_v40 = vor.u32 %v935_v56, %v931_v8  ;;  %v2100_v22 = vrot.slane %v2092_v29, 9 }
  0xa2   : > { %1451 = vrot.lane.b32.xlu1 %v2164_v15, %s2409_s19  ;;  %v1038_v11 = vsel %vm2584_vm5, %v1033_v27, %v1037_v1  ;;  %v941_v35 = vrot.slane %v939_v54, 5  ;;  %v1115_v18 = vrot.slane %v3041_v5, 5  ;;  %v1118_v31 = vrot.slane %v3094_v14, 5  ;;  %v3162_v5 = vpop.permute.xlu1 %1185 }
  0xa3   : > { %1443 = vrot.lane.b32.xlu0 %v2160_v4, %s2409_s19  ;;  %v2165_v48 = vcombine.low %v1028_v53, %v1038_v11  ;;  %v937_v44 = vrot.slane %v936_v40, 4  ;;  %v2096_v13 = vrot.slane %v2088_v3, 9  ;;  %v1087_v17 = vrot.slane %v3055_v23, 5 }
  0xa4   : > { %v1116_v19 = vsel %vm2518_vm2, %v2100_v22, %v1115_v18  ;;  %v1117_v26 = vrot.slane %v1115_v18, 4  ;;  %v1090_v28 = vrot.slane %v3105_v37, 5  ;;  %v2101_v30 = vrot.slane %v2093_v7, 9  ;;  %v2352_v22 = vld [vmem:[%s2470_s24 + $0x34] sm:$0xf] }
  0xa5   : > { %v942_v14 = vsel %vm2584_vm5, %v937_v44, %v941_v35  ;;  %v1088_v33 = vsel %vm2518_vm2, %v2096_v13, %v1087_v17  ;;  %v1089_v36 = vrot.slane %v1087_v17, 4  ;;  %v1122_v23 = vrot.slane %v3070_v38, 5  ;;  %v2353_v7 = vld [vmem:[%s2470_s24 + $0x30] sm:$0xf] }
  0xa6   : > { %1453 = vrot.lane.b32.xlu1 %v2165_v48, %s2409_s19  ;;  %v2161_v24 = vcombine.low %v932_v45, %v942_v14  ;;  %v1119_v37 = vsel %vm2518_vm2, %v1117_v26, %v1118_v31  ;;  %v1125_v25 = vrot.slane %v3118_v21, 5  ;;  %v2097_v34 = vrot.slane %v2089_v12, 9  ;;  %v1184_v29 = vpop.permute.xlu0 %1183  ;;  %v2354_v31 = vld [vmem:[%s2470_s24 + $0x4] sm:$0xf]  ;;  %v2355_v48 = vld [vmem:[%s2470_s24] sm:$0xf] }
  0xa7   : > { %v2172_v42 = vcombine.low %v1116_v19, %v1119_v37  ;;  %v1091_v58 = vsel %vm2518_vm2, %v1089_v36, %v1090_v28  ;;  %v1123_v43 = vsel %vm2518_vm2, %v2101_v30, %v1122_v23  ;;  %v1124_v46 = vrot.slane %v1122_v23, 4  ;;  %v2357_v23 = vld [vmem:[%s2470_s24 + $0x3c] sm:$0xf] }
  0xa8   : > { %1445 = vrot.lane.b32.xlu0 %v2161_v24, %s2409_s19  ;;  %v2168_v38 = vcombine.low %v1088_v33, %v1091_v58  ;;  %v1094_v60 = vrot.slane %v3090_v61, 5  ;;  %v1097_v51 = vrot.slane %v3129_v41, 5  ;;  %v2349_v41 = vld [vmem:[%s3375_s1 + $0x20] ss:$0 sps:$4 sm:$0xff]   ;;  %v2106_v11 = vcombine.low %v2353_v7, %v2352_v22 }
  0xa9   : > { %v1126_v53 = vsel %vm2518_vm2, %v1124_v46, %v1125_v25  ;;  %2272 = vmatprep.subr.msk.bf16.mxu0 %vm1699_vm6, %v2349_v41  ;;  %2273 = vmatprep.subr.msk.bf16.mxu1 %vm1699_vm6, %v2349_v41  ;;  %v1701_v15 = vsel %vm1699_vm6, %v2349_v41, 0  ;;  %v2102_v44 = vcombine.low %v2355_v48, %v2354_v31  ;;  %v2358_v46 = vld [vmem:[%s2470_s24 + $0x10] sm:$0xf] }
  0xaa   : > { %1491 = vrot.lane.b32.xlu1 %v2172_v42, %s2410_s20  ;;  %v2173_v21 = vcombine.low %v1123_v43, %v1126_v53  ;;  %v1095_v55 = vsel %vm2518_vm2, %v2097_v34, %v1094_v60  ;;  %v1096_v56 = vrot.slane %v1094_v60, 4  ;;  %v3185_v0 = vpop.permute.xlu1 %1193  ;;  %2245 = vmatpush3.bf16.msra.mxu0 %v1701_v15 }
  0xab   : > { %2271 = vmatpush3.bf16.msra.mxu1 %v1701_v15  ;;  %v1498_v19 = vsel %vm1495_vm7, %v2102_v44, %v1184_v29 }
  0xac   : > { %1483 = vrot.lane.b32.xlu0 %v2168_v38, %s2410_s20  ;;  %v1098_v61 = vsel %vm2518_vm2, %v1096_v56, %v1097_v51  ;;  %v1522_v14 = vsel %vm1520_vm8, %v1498_v19, %v3135_v62  ;;  %v2359_v38 = vld [vmem:[%s2470_s24 + $0xc] sm:$0xf] }
  0xad   : > { %v2169_v1 = vcombine.low %v1095_v55, %v1098_v61  ;;  %v1539_v37 = vsel %vm1537_vm9, %v1522_v14, %v3078_v47  ;;  %v2103_v60 = vcombine.low %v2359_v38, %v2358_v46 }
  0xae   : > { %1493 = vrot.lane.b32.xlu1 %v2173_v21, %s2410_s20 }
  0xaf   : > { %v1320_v52 = vpop.permute.xlu1 %1319  ;;  %v1501_v29 = vsel %vm1495_vm7, %v2103_v60, %v3162_v5  ;;  %v2105_v60 = vcombine.low %v2870_v32, %v2878_v6 }
  0xb0   : > { %1485 = vrot.lane.b32.xlu0 %v2169_v1, %s2410_s20  ;;  %v1192_v8 = vpop.permute.xlu0 %1191  ;;  %v1524_v1 = vsel %vm1520_vm8, %v1501_v29, %v3160_v59 }
  0xb1   : > { %v1510_v13 = vsel %vm1495_vm7, %v2106_v11, %v1192_v8  ;;  %v1541_v15 = vsel %vm1537_vm9, %v1524_v1, %v3111_v9 }
  0xb2   : > { %v1530_v12 = vsel %vm1520_vm8, %v1510_v13, %v3113_v20  ;;  %v2356_v20 = vld [vmem:[%s2470_s24 + $0x40] sm:$0xf] }
  0xb3   : > { %v1547_v28 = vsel %vm1537_vm9, %v1530_v12, %v3034_v63  ;;  %v2107_v24 = vcombine.low %v2357_v23, %v2356_v20 }
  0xb4   : > { %v1312_v39 = vpop.permute.xlu0 %1311  ;;  %v1564_v36 = vsel %vm1554_vm10, %v1547_v28, %v1320_v52 }
  0xb5   : > { %v1322_v49 = vpop.permute.xlu1 %1321  ;;  %v1556_v62 = vsel %vm1554_vm10, %v1539_v37, %v1312_v39  ;;  %v1513_v53 = vsel %vm1495_vm7, %v2107_v24, %v3185_v0  ;;  %v2360_v24 = vld [vmem:[%s2470_s24 + $0x48] sm:$0xf]  ;;  %v2361_v37 = vld [vmem:[%s2470_s24 + $0x4c] sm:$0xf] }
  0xb6   : > { %v1532_v61 = vsel %vm1520_vm8, %v1513_v53, %v3137_v10 }
  0xb7   : > { %v1549_v0 = vsel %vm1537_vm9, %v1532_v61, %v3080_v50 }
  0xb8   : > { %v3195_v27 = vpop.permute.xlu0 %1313  ;;  %v1566_v52 = vsel %vm1554_vm10, %v1549_v0, %v1322_v49 }
  0xb9   : > { %v1360_v54 = vpop.permute.xlu1 %1359  ;;  %v1558_v10 = vsel %vm1554_vm10, %v1541_v15, %v3195_v27 }
  0xba   : > { %v1581_v63 = vsel %vm1571_vm11, %v1564_v36, %v1360_v54 }
  0xbc   : > { %v1352_v3 = vpop.permute.xlu0 %1351 }
  0xbd   : > { %v1362_v4 = vpop.permute.xlu1 %1361  ;;  %v1573_v42 = vsel %vm1571_vm11, %v1556_v62, %v1352_v3 }
  0xbe   : > { %v1583_v8 = vsel %vm1571_vm11, %v1566_v52, %v1362_v4 }
  0xc0   : > { %v3197_v45 = vpop.permute.xlu0 %1353 }
  0xc1   : > { %v1408_v40 = vpop.permute.xlu1 %1407  ;;  %v1575_v50 = vsel %vm1571_vm11, %v1558_v10, %v3197_v45 }
  0xc2   : > { %v1598_v34 = vsel %vm1588_vm12, %v1581_v63, %v1408_v40  ;;  %v2108_v63 = vcombine.low %v2360_v24, %v2361_v37 }
  0xc4   : > { %v1400_v35 = vpop.permute.xlu0 %1399 }
  0xc5   : > { %v1410_v18 = vpop.permute.xlu1 %1409  ;;  %v1590_v51 = vsel %vm1588_vm12, %v1573_v42, %v1400_v35 }
  0xc6   : > { %v1600_v39 = vsel %vm1588_vm12, %v1583_v8, %v1410_v18 }
  0xc8   : > { %v1402_v17 = vpop.permute.xlu0 %1401 }
  0xc9   : > { %v1592_v49 = vsel %vm1588_vm12, %v1575_v50, %v1402_v17 }
  0xca   : > { %v1448_v26 = vpop.permute.xlu1 %1447 }
  0xcb   : > { %v1615_v58 = vsel %vm1605_vm13, %v1598_v34, %v1448_v26 }
  0xcc   : > { %v1440_v30 = vpop.permute.xlu0 %1439 }
  0xcd   : > { %v1607_v21 = vsel %vm1605_vm13, %v1590_v51, %v1440_v30 }
  0xce   : > { %v1450_v33 = vpop.permute.xlu1 %1449 }
  0xcf   : > { %v1617_v54 = vsel %vm1605_vm13, %v1600_v39, %v1450_v33 }
  0xd0   : > { %v1442_v25 = vpop.permute.xlu0 %1441 }
  0xd1   : > { %v1609_v9 = vsel %vm1605_vm13, %v1592_v49, %v1442_v25  ;;  %v2362_v25 = vld [vmem:[%s2470_s24 + $0x18] sm:$0xf]  ;;  %s2004_s24 = sshll.u32 %s3395_s23, 1 }
  0xd2   : > { %v1488_v43 = vpop.permute.xlu1 %1487  ;;  %v2104_v62 = vcombine.low %v2362_v25, %v2826_v16  ;;  %s192_s26 = sadd.s32 %s2005_s25, %s2004_s24 }
  0xd3   : > { %v1632_v47 = vsel %vm1622_vm14, %v1615_v58, %v1488_v43  ;;  %v2109_v43 = vcombine.low %v2848_v57, %v2857_v2  ;;  %s2006_s29 = sshll.u32 %s192_s26, 2 }
  0xd4   : > { %v1480_v55 = vpop.permute.xlu0 %1479  ;;  %2254 = vmatprep.mubr.msk.bf16.mxu1 %vm1682_vm15, %v1632_v47  ;;  %s3312_s30 = scalar_lea.vmem %s3377_s3, %s2006_s29 }
  0xd5   : > { %v1624_v56 = vsel %vm1622_vm14, %v1607_v21, %v1480_v55 }
  0xd6   : > { %2246 = vmatprep.mubr.msk.bf16.mxu0 %vm1682_vm15, %v1624_v56 }
  0xda   : > { %v1196_v41 = vpop.permute.xlu1 %1195 }
  0xdb   : > { %v1516_v58 = vsel %vm1495_vm7, %v2108_v63, %v1196_v41 }
  0xdd   : > { %v1188_v5 = vpop.permute.xlu0 %1187 }
  0xde   : > { %v1490_v59 = vpop.permute.xlu1 %1489  ;;  %v1504_v38 = vsel %vm1495_vm7, %v2104_v62, %v1188_v5 }
  0xdf   : > { %v1634_v3 = vsel %vm1622_vm14, %v1617_v54, %v1490_v59 }
  0xe0   : > { %2255 = vmatmul.mubr.msk.bf16.vlgmr.msra.gmra.mrb[0].mxu1 %vm1682_vm15, %v1634_v3 }
  0xe1   : > { %v1482_v4 = vpop.permute.xlu0 %1481 }
  0xe2   : > { %v1626_v40 = vsel %vm1622_vm14, %v1609_v9, %v1482_v4 }
  0xe3   : > { %2247 = vmatmul.mubr.msk.bf16.vlgmr.msra.gmra.mrb[0].mxu0 %vm1682_vm15, %v1626_v40 }
  0xe6   : > { %v1198_v27 = vpop.permute.xlu1 %1197 }
  0xe7   : > { %v1519_v21 = vsel %vm1495_vm7, %v2109_v43, %v1198_v27 }
  0xe9   : > { %v1190_v22 = vpop.permute.xlu0 %1189 }
  0xea   : > { %v1236_v7 = vpop.permute.xlu1 %1235  ;;  %v1507_v6 = vsel %vm1495_vm7, %v2105_v60, %v1190_v22 }
  0xeb   : > { %v1534_v46 = vsel %vm1520_vm8, %v1516_v58, %v1236_v7 }
  0xed   : > { %v1228_v11 = vpop.permute.xlu0 %1227 }
  0xee   : > { %v1238_v35 = vpop.permute.xlu1 %1237  ;;  %v1526_v53 = vsel %vm1520_vm8, %v1504_v38, %v1228_v11 }
  0xef   : > { %v1536_v56 = vsel %vm1520_vm8, %v1519_v21, %v1238_v35 }
  0xf1   : > { %v1230_v18 = vpop.permute.xlu0 %1229 }
  0xf2   : > { %v1284_v45 = vpop.permute.xlu1 %1283  ;;  %v1528_v52 = vsel %vm1520_vm8, %v1507_v6, %v1230_v18  ;;  %v3304_v18 = vld [vmem:[%s3376_s2] ss:$0 sm:$0xff] }
  0xf3   : > { %v1551_v51 = vsel %vm1537_vm9, %v1534_v46, %v1284_v45 }
  0xf5   : > { %v1276_v31 = vpop.permute.xlu0 %1275 }
  0xf6   : > { %v1286_v48 = vpop.permute.xlu1 %1285  ;;  %v1543_v55 = vsel %vm1537_vm9, %v1526_v53, %v1276_v31 }
  0xf7   : > { %v1553_v61 = vsel %vm1537_vm9, %v1536_v56, %v1286_v48 }
  0xf9   : > { %v1278_v44 = vpop.permute.xlu0 %1277 }
  0xfa   : > { %v1545_v5 = vsel %vm1537_vm9, %v1528_v52, %v1278_v44 }
  0xfb   : > { %v1324_v13 = vpop.permute.xlu1 %1323 }
  0xfc   : > { %v1568_v16 = vsel %vm1554_vm10, %v1551_v51, %v1324_v13 }
  0xfd   : > { %v1316_v17 = vpop.permute.xlu0 %1315 }
  0xfe   : > { %v1560_v29 = vsel %vm1554_vm10, %v1543_v55, %v1316_v17 }
  0xff   : > { %v1326_v12 = vpop.permute.xlu1 %1325 }
 0x100   : > { %v1570_v8 = vsel %vm1554_vm10, %v1553_v61, %v1326_v12 }
 0x101   : > { %v1318_v19 = vpop.permute.xlu0 %1317 }
 0x102   : > { %v1562_v50 = vsel %vm1554_vm10, %v1545_v5, %v1318_v19 }
 0x103   : > { %v1364_v26 = vpop.permute.xlu1 %1363 }
 0x104   : > { %v1585_v57 = vsel %vm1571_vm11, %v1568_v16, %v1364_v26 }
 0x105   : > { %v1356_v28 = vpop.permute.xlu0 %1355 }
 0x106   : > { %v1577_v1 = vsel %vm1571_vm11, %v1560_v29, %v1356_v28 }
 0x107   : > { %v1366_v30 = vpop.permute.xlu1 %1365 }
 0x108   : > { %v1587_v10 = vsel %vm1571_vm11, %v1570_v8, %v1366_v30 }
 0x109   : > { %v1358_v14 = vpop.permute.xlu0 %1357 }
 0x10a   : > { %v1579_v9 = vsel %vm1571_vm11, %v1562_v50, %v1358_v14 }
 0x10b   : > { %v1412_v33 = vpop.permute.xlu1 %1411 }
 0x10c   : > { %v1602_v32 = vsel %vm1588_vm12, %v1585_v57, %v1412_v33 }
 0x10d   : > { %v1404_v36 = vpop.permute.xlu0 %1403 }
 0x10e   : > { %v1594_v15 = vsel %vm1588_vm12, %v1577_v1, %v1404_v36 }
 0x10f   : > { %v1414_v20 = vpop.permute.xlu1 %1413 }
 0x110   : > { %v1604_v3 = vsel %vm1588_vm12, %v1587_v10, %v1414_v20 }
 0x111   : > { %v1406_v23 = vpop.permute.xlu0 %1405 }
 0x112   : > { %v1596_v27 = vsel %vm1588_vm12, %v1579_v9, %v1406_v23 }
 0x114   : > { %v1452_v34 = vpop.permute.xlu1 %1451 }
 0x115   : > { %v1444_v42 = vpop.permute.xlu0 %1443  ;;  %v1619_v0 = vsel %vm1605_vm13, %v1602_v32, %v1452_v34 }
 0x116   : > { %v1611_v54 = vsel %vm1605_vm13, %v1594_v15, %v1444_v42 }
 0x118   : > { %v1454_v47 = vpop.permute.xlu1 %1453 }
 0x119   : > { %v1621_v4 = vsel %vm1605_vm13, %v1604_v3, %v1454_v47 }
 0x11a   : > { %v1446_v2 = vpop.permute.xlu0 %1445 }
 0x11b   : > { %v1613_v7 = vsel %vm1605_vm13, %v1596_v27, %v1446_v2 }
 0x11c   : > { %v1492_v41 = vpop.permute.xlu1 %1491 }
 0x11d   : > { %v1636_v39 = vsel %vm1622_vm14, %v1619_v0, %v1492_v41 }
 0x11e   : > { %v1484_v59 = vpop.permute.xlu0 %1483  ;;  %2258 = vmatprep.mubr.msk.bf16.mxu1 %vm1682_vm15, %v1636_v39 }
 0x11f   : > { %v1628_v49 = vsel %vm1622_vm14, %v1611_v54, %v1484_v59 }
 0x120   : > { %2250 = vmatprep.mubr.msk.bf16.mxu0 %vm1682_vm15, %v1628_v49  ;;  %v1494_v40 = vpop.permute.xlu1 %1493 }
 0x121   : > { %v1638_v22 = vsel %vm1622_vm14, %v1621_v4, %v1494_v40 }
 0x122   : > { %v1486_v11 = vpop.permute.xlu0 %1485  ;;  %2259 = vmatmul.mubr.msk.bf16.gmra.mrb[4].mxu1 %vm1682_vm15, %v1638_v22 }
 0x123   : > { %v1630_v35 = vsel %vm1622_vm14, %v1613_v7, %v1486_v11 }
 0x124   : > { %2251 = vmatmul.mubr.msk.bf16.gmra.mrb[4].mxu0 %vm1682_vm15, %v1630_v35 }
 0x1b3   : > { %v2256_v45 = vpop.f32.mrb[0].mxu1 }
 0x1b4   : > { %v1778_v31 = vadd.f32 %v2256_v45, %v3304_v18  ;;  %v1769_v48 = vpop.f32.mrb[1].mxu1 }
 0x1b5   : > { %v1770_v44 = vadd.f32 %v3304_v18, %v1769_v48  ;;  %v2257_v13 = vpop.f32.mrb[2].mxu1 }
 0x1b6   : > { %v2248_v17 = vpop.f32.mrb[0].mxu0  ;;  %v1810_v12 = vmax.f32 %v1778_v31, 0.0  ;;  %v1781_v19 = vadd.f32 %v2257_v13, %v3304_v18  ;;  %v1772_v26 = vpop.f32.mrb[3].mxu1 }
 0x1b7   : > { %v1746_v28 = vadd.f32 %v2248_v17, %v3304_v18  ;;  %v1737_v30 = vpop.f32.mrb[1].mxu0  ;;  %v1808_v14 = vmax.f32 %v1770_v44, 0.0  ;;  %v1773_v33 = vadd.f32 %v3304_v18, %v1772_v26 }
 0x1b8   : > { %v2217_v36 = vpack.c.bf16 %v1810_v12, %v1810_v12  ;;  %v1738_v20 = vadd.f32 %v3304_v18, %v1737_v30  ;;  %v2249_v23 = vpop.f32.mrb[2].mxu0  ;;  %v1811_v24 = vmax.f32 %v1781_v19, 0.0 }
 0x1b9   : > { %v1802_v37 = vmax.f32 %v1746_v28, 0.0  ;;  %v2215_v63 = vpack.c.bf16 %v1808_v14, %v1808_v14  ;;  %v1749_v25 = vadd.f32 %v2249_v23, %v3304_v18  ;;  %v1740_v62 = vpop.f32.mrb[3].mxu0  ;;  %v1809_v34 = vmax.f32 %v1773_v33, 0.0 }
 0x1ba   : > { %1891 = vst.msk [vmem:[%s3312_s30 + $0x28] sm:$0xf] %vm1880_vm0, %v2217_v36  ;;  %v1800_v42 = vmax.f32 %v1738_v20, 0.0  ;;  %v2218_v58 = vpack.c.bf16 %v1811_v24, %v1811_v24  ;;  %v1741_v43 = vadd.f32 %v3304_v18, %v1740_v62 }
 0x1bb   : > { %v2209_v46 = vpack.c.bf16 %v1802_v37, %v1802_v37  ;;  %1889 = vst.msk [vmem:[%s3312_s30 + $0x20] sm:$0xf] %vm1880_vm0, %v2215_v63  ;;  %v1803_v38 = vmax.f32 %v1749_v25, 0.0  ;;  %v2216_v60 = vpack.c.bf16 %v1809_v34, %v1809_v34 }
 0x1bc   : > { %v2207_v51 = vpack.c.bf16 %v1800_v42, %v1800_v42  ;;  %1892 = vst.msk [vmem:[%s3312_s30 + $0x2c] sm:$0xf] %vm1880_vm0, %v2218_v58  ;;  %v1801_v47 = vmax.f32 %v1741_v43, 0.0 }
 0x1bd   : > { %1883 = vst.msk [vmem:[%s3312_s30 + $0x8] sm:$0xf] %vm1880_vm0, %v2209_v46  ;;  %v2210_v53 = vpack.c.bf16 %v1803_v38, %v1803_v38  ;;  %1890 = vst.msk [vmem:[%s3312_s30 + $0x24] sm:$0xf] %vm1880_vm0, %v2216_v60 }
 0x1be   : > { %1881 = vst.msk [vmem:[%s3312_s30] sm:$0xf] %vm1880_vm0, %v2207_v51  ;;  %v2208_v16 = vpack.c.bf16 %v1801_v47, %v1801_v47 }
 0x1bf   : > { %1884 = vst.msk [vmem:[%s3312_s30 + $0xc] sm:$0xf] %vm1880_vm0, %v2210_v53 }
 0x1c0   : > { %1882 = vst.msk [vmem:[%s3312_s30 + $0x4] sm:$0xf] %vm1880_vm0, %v2208_v16 }
 0x1f5   : > { %v2260_v21 = vpop.f32.mrb[4].mxu1 }
 0x1f6   : > { %v1794_v55 = vadd.f32 %v2260_v21, %v3304_v18  ;;  %v1785_v57 = vpop.f32.mrb[5].mxu1 }
 0x1f7   : > { %v2252_v2 = vpop.f32.mrb[4].mxu0  ;;  %v1786_v56 = vadd.f32 %v3304_v18, %v1785_v57  ;;  %v2261_v29 = vpop.f32.mrb[6].mxu1 }
 0x1f8   : > { %v1762_v32 = vadd.f32 %v2252_v2, %v3304_v18  ;;  %v1814_v6 = vmax.f32 %v1794_v55, 0.0  ;;  %v1753_v61 = vpop.f32.mrb[5].mxu0  ;;  %v1797_v1 = vadd.f32 %v2261_v29, %v3304_v18  ;;  %v1788_v0 = vpop.f32.mrb[7].mxu1 }
 0x1f9   : > { %v1754_v41 = vadd.f32 %v3304_v18, %v1753_v61  ;;  %v1812_v52 = vmax.f32 %v1786_v56, 0.0  ;;  %v2253_v8 = vpop.f32.mrb[6].mxu0  ;;  %v1789_v15 = vadd.f32 %v3304_v18, %v1788_v0 }
 0x1fa   : > { %v1806_v39 = vmax.f32 %v1762_v32, 0.0  ;;  %v2221_v5 = vpack.c.bf16 %v1814_v6, %v1814_v6  ;;  %v1765_v10 = vadd.f32 %v2253_v8, %v3304_v18  ;;  %v1815_v54 = vmax.f32 %v1797_v1, 0.0  ;;  %v1756_v59 = vpop.f32.mrb[7].mxu0 }
 0x1fb   : > { %v1804_v50 = vmax.f32 %v1754_v41, 0.0  ;;  %v2219_v3 = vpack.c.bf16 %v1812_v52, %v1812_v52  ;;  %v1757_v49 = vadd.f32 %v3304_v18, %v1756_v59  ;;  %v1813_v9 = vmax.f32 %v1789_v15, 0.0 }
 0x1fc   : > { %v2213_v4 = vpack.c.bf16 %v1806_v39, %v1806_v39  ;;  %1895 = vst.msk [vmem:[%s3312_s30 + $0x38] sm:$0xf] %vm1880_vm0, %v2221_v5  ;;  %v1807_v40 = vmax.f32 %v1765_v10, 0.0  ;;  %v2222_v27 = vpack.c.bf16 %v1815_v54, %v1815_v54 }
 0x1fd   : > { %v2211_v22 = vpack.c.bf16 %v1804_v50, %v1804_v50  ;;  %1893 = vst.msk [vmem:[%s3312_s30 + $0x30] sm:$0xf] %vm1880_vm0, %v2219_v3  ;;  %v1805_v7 = vmax.f32 %v1757_v49, 0.0  ;;  %v2220_v11 = vpack.c.bf16 %v1813_v9, %v1813_v9 }
 0x1fe   : > { %1887 = vst.msk [vmem:[%s3312_s30 + $0x18] sm:$0xf] %vm1880_vm0, %v2213_v4  ;;  %v2214_v35 = vpack.c.bf16 %v1807_v40, %v1807_v40  ;;  %1896 = vst.msk [vmem:[%s3312_s30 + $0x3c] sm:$0xf] %vm1880_vm0, %v2222_v27 }
 0x1ff   : > { %1885 = vst.msk [vmem:[%s3312_s30 + $0x10] sm:$0xf] %vm1880_vm0, %v2211_v22  ;;  %v2212_v18 = vpack.c.bf16 %v1805_v7, %v1805_v7  ;;  %1894 = vst.msk [vmem:[%s3312_s30 + $0x34] sm:$0xf] %vm1880_vm0, %v2220_v11 }
 0x200   : > { %1888 = vst.msk [vmem:[%s3312_s30 + $0x1c] sm:$0xf] %vm1880_vm0, %v2214_v35 }
 0x201   : > { %1886 = vst.msk [vmem:[%s3312_s30 + $0x14] sm:$0xf] %vm1880_vm0, %v2212_v18 }
 0x202 PF: > { %s13_s16 = sadd.s32 1, %s2401_s16   ;;  %s3382_s12 = smov %s2393_s14 }
 0x203   : > { %p10_p7 = scmp.ge.s32.totalorder %s13_s16, 6   ;;  %s3383_s13 = smov %s2397_s15 }
 0x204   : > { %s3384_s14 = smov %s3387_s17  ;;  %s3385_s15 = smov %s3391_s18 }
 0x205   :  { %12 = sbr.rel (!%p10_p7) target bundleno = 3 (0x3), region = 65 }

// kernel: trans_block_forward.5
= control target key start
LH: loop header
LB: loop body
LE: loop exit
PB: predicated region body
PF: predicated region fallthrough
CT: control target
= control target key end

     0   :  { %s2517_s15 = smov 0   ;;  %s2519_s16 = smov 0   ;;  %s3473_s0 = inlined_call_operand.vmem [shape: bf16[2,18,18,8], index: 0, kind: input, shape index: {}]   ;;  %s3474_s1 = inlined_call_operand.vmem [shape: bf16[72,8], index: 1, kind: input, shape index: {}]   ;;  %s3475_s2 = inlined_call_operand.vmem [shape: f32[1,8], index: 2, kind: input, shape index: {}]   ;;  %s3476_s3 = inlined_call_operand.vmem [shape: bf16[2,16,16,8], index: 3, kind: input, shape index: {}]   ;;  %s3477_s4 = inlined_call_operand.vmem [shape: f32[2,16,16,8], index: 4, kind: output, shape index: {}]  }
   0x1   :  { %s2521_s17 = smov 0   ;;  %s2523_s18 = smov 0  }
   0x2   :  { %s2525_s19 = smov 0  }
   0x3 LB: > { %s23_s20 = sadd.s32 1, %s2474_s17  ;;  %s26_s21 = sadd.s32 1, %s2478_s18  ;;  %s2482_s19 = sphi %s2525_s19, %s14_s19   ;;  %s2478_s18 = sphi %s2523_s18, %s3485_s18   ;;  %s2474_s17 = sphi %s2521_s17, %s3484_s17   ;;  %s2470_s16 = sphi %s2519_s16, %s3483_s16   ;;  %s2466_s15 = sphi %s2517_s15, %s3482_s15  }
   0x4   : > { %p24_p0 = scmp.ge.s32.totalorder %s23_s20, 2  ;;  %p2071_p1 = scmp.ge.s32.totalorder %s2482_s19, 1 }
   0x5   : > { %p194_p2 = scmp.lt.s32.totalorder %s2482_s19, 5 }
   0x6   : > { %s3487_s20 = smov (%p24_p0, %s23_s20), 0  ;;  %s3489_s21 = smov (!%p24_p0, %s26_s21), %s2478_s18 }
   0x7   : > { %p195_p3 = pnand %p2071_p1, %p194_p2  ;;  %p28_p4 = scmp.ge.s32.totalorder %s3489_s21, 2 }
   0x8   : > { %p235_p5 = scmp.lt.s32.totalorder (!%p195_p3), %s2470_s16, 1  ;;  %s2264_s22 = smul.u32 (!%p195_p3), 96, %s2466_s15  ;;  %vm518_vm0 = vcmask (!%p195_p3), 1042432   ;;  %vm519_vm1 = vcmask (!%p195_p3), 1046532   ;;  %vm291_vm3 = vsmask.f32 (!%p195_p3), 3328 }
   0x9   : > { %s3491_s21 = smov (%p28_p4, %s3489_s21), 0  ;;  %198 = sbr.rel (%p195_p3) target bundleno = 514 (0x202), region = 36 }
   0xa   : > { %s2484_s28 = smov (!%p195_p3), 24   ;;  %vm2604_vm2 = vmor (!%p195_p3), %vm518_vm0, %vm519_vm1  ;;  %vm292_vm4 = vsmask.f32 (!%p195_p3), 7440  ;;  %s2485_s29 = smov (!%p195_p3), 16   ;;  %vm1765_vm6 = vcmask (!%p195_p3), 1043456   ;;  %vm1561_vm7 = vcmask (!%p195_p3), 64512  }
   0xb   : > { %vm2670_vm5 = vmor (!%p195_p3), %vm291_vm3, %vm292_vm4  ;;  %s2486_s30 = smov (!%p195_p3), 8   ;;  %s2487_s5 = smov (!%p195_p3), 32   ;;  %vm1586_vm8 = vcmask (!%p195_p3), 130048   ;;  %vm1603_vm9 = vcmask (!%p195_p3), 195584   ;;  %vm1620_vm10 = vcmask (!%p195_p3), 261120   ;;  %vm1637_vm11 = vcmask (!%p195_p3), 326656  }
   0xc   : > { %s2488_s6 = smov (!%p195_p3), 40   ;;  %s2489_s11 = smov (!%p195_p3), 48   ;;  %vm1654_vm12 = vcmask (!%p195_p3), 392192   ;;  %vm1671_vm13 = vcmask (!%p195_p3), 457728   ;;  %vm1688_vm14 = vcmask (!%p195_p3), 523264   ;;  %vm1748_vm15 = vcmask (!%p195_p3), 588800  }
   0xd   : > { %s2491_s24 = smov (!%p195_p3), 64  }
  0x10   : > { %s3493_s16 = smov (!%p235_p5, %s2470_s16), 1 }
  0x11   : > { %s2355_s23 = smul.u32 216, %s3493_s16 }
  0x13   : > { %s239_s26 = scalar_lea.vmem %s3473_s0, %s2355_s23  ;;  %s2490_s23 = smov 56  }
  0x14   : > { %s2556_s27 = scalar_lea.vmem %s239_s26, %s2264_s22 }
  0x15   : > { %v2102_v0 = vld [vmem:[%s2556_s27 + $0x3c] sm:$0xf]  ;;  %v2560_v1 = vld [vmem:[%s2556_s27 + $0x40] sm:$0xf]  ;;  %v2094_v2 = vld [vmem:[%s2556_s27 + $0xc] sm:$0xf] }
  0x16   : > { %v711_v3 = vshll.u32 %v2560_v1, 16  ;;  %v715_v4 = vshrl.u32 %v2560_v1, 16  ;;  %v2204_v5 = vcombine.low %v2102_v0, %v2560_v1  ;;  %v702_v6 = vshrl.u32 %v2102_v0, 16  ;;  %v2567_v7 = vld [vmem:[%s2556_s27 + $0x10] sm:$0xf] }
  0x17   : > { %v705_v8 = vshll.u32 %v2102_v0, 16  ;;  %v615_v9 = vshll.u32 %v2567_v7, 16  ;;  %v619_v10 = vshrl.u32 %v2567_v7, 16  ;;  %v2200_v11 = vcombine.low %v2094_v2, %v2567_v7  ;;  %v2104_v12 = vld [vmem:[%s2556_s27 + $0x48] sm:$0xf] }
  0x18   : > { %v2573_v13 = vrot.slane %v715_v4, 4  ;;  %1345 = vrot.lane.b32.xlu1 %v2204_v5, %s2484_s28  ;;  %v704_v14 = vrot.slane %v702_v6, 4  ;;  %v606_v15 = vshrl.u32 %v2094_v2, 16  ;;  %v609_v16 = vshll.u32 %v2094_v2, 16  ;;  %v2577_v17 = vld [vmem:[%s2556_s27 + $0x4c] sm:$0xf] }
  0x19   : > { %v707_v18 = vrot.slane %v705_v8, 5  ;;  %v2579_v19 = vrot.slane %v619_v10, 4  ;;  %1337 = vrot.lane.b32.xlu0 %v2200_v11, %s2484_s28  ;;  %v726_v20 = vshrl.u32 %v2104_v12, 16  ;;  %v729_v21 = vshll.u32 %v2104_v12, 16  ;;  %v2096_v22 = vld [vmem:[%s2556_s27 + $0x18] sm:$0xf] }
  0x1a   : > { %v608_v23 = vrot.slane %v606_v15, 4  ;;  %v611_v24 = vrot.slane %v609_v16, 5  ;;  %v739_v25 = vshrl.u32 %v2577_v17, 16  ;;  %v2205_v26 = vcombine.low %v2104_v12, %v2577_v17  ;;  %v2586_v27 = vld [vmem:[%s2556_s27 + $0x1c] sm:$0xf] }
  0x1b   : > { %v708_v28 = vor.u32 %v707_v18, %v704_v14  ;;  %v2588_v29 = vrot.slane %v726_v20, 4  ;;  %v2590_v30 = vrot.slane %v729_v21, 5  ;;  %v630_v31 = vshrl.u32 %v2096_v22, 16  ;;  %v2593_v32 = vld [vmem:[%s2556_s27 + $0x34] sm:$0xf] }
  0x1c   : > { %v612_v33 = vor.u32 %v611_v24, %v608_v23  ;;  %1347 = vrot.lane.b32.xlu1 %v2205_v26, %s2484_s28  ;;  %v633_v34 = vshll.u32 %v2096_v22, 16  ;;  %v643_v35 = vshrl.u32 %v2586_v27, 16  ;;  %v2201_v36 = vcombine.low %v2096_v22, %v2586_v27  ;;  %v2599_v37 = vld [vmem:[%s2556_s27 + $0x38] sm:$0x1]  ;;  %v490_v38 = vld [vmem:[%s2556_s27 + $0x30] sm:$0xe] }
  0x1d   : > { %v2608_v40 = vrot.slane %v708_v28, 4  ;;  %v2610_v41 = vrot.slane %v630_v31, 4  ;;  %v2088_v42 = vrot.slane %v490_v38, 9  ;;  %v551_v43 = vrot.slane %v2593_v32, 5  ;;  %v2614_v44 = vld [vmem:[%s2556_s27 + $0x4] sm:$0xf] }
  0x1e   : > { %v2616_v45 = vrot.slane %v612_v33, 4  ;;  %v2618_v46 = vrot.slane %v633_v34, 5  ;;  %1339 = vrot.lane.b32.xlu0 %v2201_v36, %s2484_s28  ;;  %v554_v47 = vrot.slane %v2599_v37, 5  ;;  %v2623_v48 = vld [vmem:[%s2556_s27 + $0x8] sm:$0x1]  ;;  %v523_v49 = vrot.slane %v2614_v44, 5 }
  0x1f   : > { %v552_v50 = vsel %vm2604_vm2, %v2088_v42, %v551_v43  ;;  %v553_v51 = vrot.slane %v551_v43, 4  ;;  %v486_v52 = vld [vmem:[%s2556_s27] sm:$0xe]  ;;  %v526_v53 = vrot.slane %v2623_v48, 5  ;;  %v2634_v57 = vld [vmem:[%s2556_s27 + $0x44] sm:$0x1]  ;;  %v732_v59 = vor.u32 %v2590_v30, %v2588_v29 }
  0x20   : > { %v2631_v54 = vld [vmem:[%s2556_s27 + $0x40] sm:$0xf]  ;;  %v2084_v55 = vrot.slane %v486_v52, 9  ;;  %v525_v56 = vrot.slane %v523_v49, 4  ;;  %v491_v58 = vld [vmem:[%s2556_s27 + $0x3c] sm:$0xe]  ;;  %v636_v60 = vor.u32 %v2618_v46, %v2610_v41 }
  0x21   : > { %v555_v61 = vsel %vm2604_vm2, %v553_v51, %v554_v47  ;;  %v2089_v62 = vrot.slane %v491_v58, 9  ;;  %v558_v63 = vrot.slane %v2631_v54, 5  ;;  %v561_v0 = vrot.slane %v2634_v57, 5  ;;  %v270_v2 = vld [vmem:[%s2556_s27 + $0x10] sm:$0xf] }
  0x22   : > { %v2196_v4 = vcombine.low %v552_v50, %v555_v61  ;;  %v524_v5 = vsel %vm2604_vm2, %v2084_v55, %v523_v49  ;;  %v527_v6 = vsel %vm2604_vm2, %v525_v56, %v526_v53  ;;  %v284_v8 = vld [vmem:[%s2556_s27 + $0x14] sm:$0x1]  ;;  %v487_v10 = vld [vmem:[%s2556_s27 + $0xc] sm:$0xe]  ;;  %v530_v11 = vrot.slane %v270_v2, 5 }
  0x23   : > { %v2192_v12 = vcombine.low %v524_v5, %v527_v6  ;;  %v559_v14 = vsel %vm2604_vm2, %v2089_v62, %v558_v63  ;;  %v560_v15 = vrot.slane %v558_v63, 4  ;;  %v2085_v16 = vrot.slane %v487_v10, 9  ;;  %v269_v18 = vld [vmem:[%s2556_s27 + $0xc] sm:$0xf]  ;;  %v267_v33 = vld [vmem:[%s2556_s27] sm:$0xf] }
  0x24   : > { %1297 = vrot.lane.b32.xlu1 %v2196_v4, %s2485_s29  ;;  %v532_v20 = vrot.slane %v530_v11, 4  ;;  %v533_v21 = vrot.slane %v284_v8, 5  ;;  %v319_v22 = vshrl.u32 %v269_v18, 16  ;;  %v322_v23 = vshll.u32 %v269_v18, 16  ;;  %v277_v56 = vld [vmem:[%s2556_s27 + $0x3c] sm:$0xf] }
  0x25   : > { %1289 = vrot.lane.b32.xlu0 %v2192_v12, %s2485_s29  ;;  %v562_v24 = vsel %vm2604_vm2, %v560_v15, %v561_v0  ;;  %v531_v26 = vsel %vm2604_vm2, %v2085_v16, %v530_v11  ;;  %v328_v28 = vshll.u32 %v270_v2, 16  ;;  %v332_v31 = vshrl.u32 %v270_v2, 16 }
  0x26   : > { %v2197_v34 = vcombine.low %v559_v14, %v562_v24  ;;  %v534_v36 = vsel %vm2604_vm2, %v532_v20, %v533_v21  ;;  %v321_v38 = vrot.slane %v319_v22, 4  ;;  %v324_v42 = vrot.slane %v322_v23, 5  ;;  %v275_v20 = vld [vmem:[%s2556_s27 + $0x30] sm:$0xf] }
  0x27   : > { %v2193_v43 = vcombine.low %v531_v26, %v534_v36  ;;  %v330_v47 = vrot.slane %v328_v28, 5  ;;  %v334_v49 = vrot.slane %v332_v31, 4  ;;  %v338_v50 = vshll.u32 %v284_v8, 16 }
  0x28   : > { %1299 = vrot.lane.b32.xlu1 %v2197_v34, %s2485_s29  ;;  %v325_v51 = vor.u32 %v324_v42, %v321_v38  ;;  %v295_v52 = vshrl.u32 %v267_v33, 16  ;;  %v298_v53 = vshll.u32 %v267_v33, 16  ;;  %v304_v55 = vshll.u32 %v2614_v44, 16 }
  0x29   : > { %1291 = vrot.lane.b32.xlu0 %v2193_v43, %s2485_s29  ;;  %v335_v61 = vor.u32 %v334_v49, %v330_v47  ;;  %v340_v62 = vrot.slane %v338_v50, 5  ;;  %v308_v63 = vshrl.u32 %v2614_v44, 16  ;;  %v314_v0 = vshll.u32 %v2623_v48, 16 }
  0x2a   : > { %v326_v2 = vrot.slane %v325_v51, 4  ;;  %v297_v4 = vrot.slane %v295_v52, 4  ;;  %v300_v5 = vrot.slane %v298_v53, 5  ;;  %v306_v6 = vrot.slane %v304_v55, 5  ;;  %v2691_v52 = vld [vmem:[%s2556_s27 + $0x44] sm:$0x1] }
  0x2b   : > { %v336_v8 = vrot.slane %v335_v61, 4  ;;  %v310_v10 = vrot.slane %v308_v63, 4  ;;  %v316_v11 = vrot.slane %v314_v0, 5  ;;  %v415_v12 = vshrl.u32 %v277_v56, 16 }
  0x2c   : > { %v331_v14 = vsel %vm2670_vm5, %v326_v2, %v330_v47  ;;  %v301_v15 = vor.u32 %v300_v5, %v297_v4  ;;  %v418_v16 = vshll.u32 %v277_v56, 16  ;;  %v424_v18 = vshll.u32 %v2631_v54, 16 }
  0x2d   : > { %v341_v44 = vsel %vm2670_vm5, %v336_v8, %v340_v62  ;;  %v311_v48 = vor.u32 %v310_v10, %v306_v6  ;;  %v417_v21 = vrot.slane %v415_v12, 4  ;;  %v428_v22 = vshrl.u32 %v2631_v54, 16 }
  0x2e   : > { %v2185_v23 = vcombine.low %v331_v14, %v341_v44  ;;  %v302_v24 = vrot.slane %v301_v15, 4  ;;  %v420_v26 = vrot.slane %v418_v16, 5  ;;  %v426_v28 = vrot.slane %v424_v18, 5  ;;  %v2718_v44 = vld [vmem:[%s2556_s27 + $0x50] sm:$0x1] }
  0x2f   : > { %v312_v31 = vrot.slane %v311_v48, 4  ;;  %v430_v33 = vrot.slane %v428_v22, 4  ;;  %v434_v34 = vshll.u32 %v2634_v57, 16  ;;  %v391_v36 = vshrl.u32 %v275_v20, 16 }
  0x30   : > { %1251 = vrot.lane.b32.xlu1 %v2185_v23, %s2486_s30  ;;  %v307_v38 = vsel %vm2670_vm5, %v302_v24, %v306_v6  ;;  %v421_v42 = vor.u32 %v420_v26, %v417_v21  ;;  %v394_v43 = vshll.u32 %v275_v20, 16  ;;  %v400_v54 = vshll.u32 %v2593_v32, 16  ;;  %v2702_v6 = vld [vmem:[%s2556_s27 + $0x14] sm:$0x1] }
  0x31   : > { %v317_v47 = vsel %vm2670_vm5, %v312_v31, %v316_v11  ;;  %v431_v49 = vor.u32 %v430_v33, %v426_v28  ;;  %v436_v50 = vrot.slane %v434_v34, 5  ;;  %v393_v51 = vrot.slane %v391_v36, 4  ;;  %v2733_v31 = vld [vmem:[%s2556_s27 + $0x20] sm:$0x1]  ;;  %v2122_v34 = vld [vmem:[%s2556_s27 + $0x3c] sm:$0xe] }
  0x32   : > { %v2184_v57 = vcombine.low %v307_v38, %v317_v47  ;;  %v422_v53 = vrot.slane %v421_v42, 4  ;;  %v396_v55 = vrot.slane %v394_v43, 5  ;;  %v402_v56 = vrot.slane %v400_v54, 5  ;;  %v2118_v54 = vld [vmem:[%s2556_s27 + $0xc] sm:$0xe] }
  0x33   : > { %v432_v61 = vrot.slane %v431_v49, 4  ;;  %v404_v62 = vshrl.u32 %v2593_v32, 16  ;;  %v410_v63 = vshll.u32 %v2599_v37, 16  ;;  %v713_v0 = vrot.slane %v711_v3, 5 }
  0x34   : > { %1249 = vrot.lane.b32.xlu0 %v2184_v57, %s2486_s30  ;;  %v427_v2 = vsel %vm2670_vm5, %v422_v53, %v426_v28  ;;  %v397_v4 = vor.u32 %v396_v55, %v393_v51  ;;  %v721_v5 = vshll.u32 %v2691_v52, 16  ;;  %v617_v8 = vrot.slane %v615_v9, 5  ;;  %v2123_v53 = vld [vmem:[%s2556_s27 + $0x48] sm:$0xe] }
  0x35   : > { %v437_v32 = vsel %vm2670_vm5, %v432_v61, %v436_v50  ;;  %v406_v37 = vrot.slane %v404_v62, 4  ;;  %v412_v10 = vrot.slane %v410_v63, 5  ;;  %v714_v3 = vsel %vm2670_vm5, %v2608_v40, %v713_v0 }
  0x36   : > { %v2189_v11 = vcombine.low %v427_v2, %v437_v32  ;;  %v398_v12 = vrot.slane %v397_v4, 4  ;;  %v718_v14 = vor.u32 %v2573_v13, %v713_v0  ;;  %v723_v15 = vrot.slane %v721_v5, 5 }
  0x37   : > { %v407_v16 = vor.u32 %v406_v37, %v402_v56  ;;  %v618_v18 = vsel %vm2670_vm5, %v2616_v45, %v617_v8  ;;  %v622_v9 = vor.u32 %v2579_v19, %v617_v8  ;;  %v625_v20 = vshll.u32 %v2702_v6, 16 }
  0x38   : > { %1259 = vrot.lane.b32.xlu1 %v2189_v11, %s2486_s30  ;;  %v403_v40 = vsel %vm2670_vm5, %v398_v12, %v402_v56  ;;  %v719_v48 = vrot.slane %v718_v14, 4  ;;  %v733_v13 = vrot.slane %v732_v59, 4  ;;  %v735_v45 = vshll.u32 %v2577_v17, 16 }
  0x39   : > { %v408_v21 = vrot.slane %v407_v16, 4  ;;  %v623_v22 = vrot.slane %v622_v9, 4  ;;  %v627_v19 = vrot.slane %v625_v20, 5  ;;  %v741_v23 = vrot.slane %v739_v25, 4  ;;  %v2785_v20 = vld [vmem:[%s2556_s27 + $0x18] sm:$0xf] }
  0x3a   : > { %v724_v24 = vsel %vm2670_vm5, %v719_v48, %v723_v15  ;;  %v737_v26 = vrot.slane %v735_v45, 5  ;;  %v745_v28 = vshll.u32 %v2718_v44, 16  ;;  %v637_v29 = vrot.slane %v636_v60, 4  ;;  %v2778_v15 = vld [vmem:[%s2556_s27 + $0x4c] sm:$0xf] }
  0x3b   : > { %v413_v30 = vsel %vm2670_vm5, %v408_v21, %v412_v10  ;;  %v2212_v59 = vcombine.low %v714_v3, %v724_v24  ;;  %v628_v33 = vsel %vm2670_vm5, %v623_v22, %v627_v19  ;;  %v639_v25 = vshll.u32 %v2586_v27, 16  ;;  %v2791_v45 = vld [vmem:[%s2556_s27 + $0x1c] sm:$0xf] }
  0x3c   : > { %v2188_v36 = vcombine.low %v403_v40, %v413_v30  ;;  %v2208_v38 = vcombine.low %v618_v18, %v628_v33  ;;  %v738_v42 = vsel %vm2670_vm5, %v733_v13, %v737_v26  ;;  %v742_v43 = vor.u32 %v741_v23, %v737_v26  ;;  %v2801_v23 = vld [vmem:[%s2556_s27 + $0x54] sm:$0xf] }
  0x3d   : > { %1385 = vrot.lane.b32.xlu1 %v2212_v59, %s2487_s5  ;;  %v747_v41 = vrot.slane %v745_v28, 5  ;;  %v641_v46 = vrot.slane %v639_v25, 5  ;;  %v645_v60 = vrot.slane %v643_v35, 4  ;;  %v649_v47 = vshll.u32 %v2733_v31, 16 }
  0x3e   : > { %1257 = vrot.lane.b32.xlu0 %v2188_v36, %s2486_s30  ;;  %v743_v49 = vrot.slane %v742_v43, 4  ;;  %v2130_v50 = vrot.slane %v2122_v34, 9  ;;  %v859_v51 = vrot.slane %v2560_v1, 5  ;;  %v862_v57 = vrot.slane %v2691_v52, 5  ;;  %v2119_v1 = vld [vmem:[%s2556_s27 + $0x18] sm:$0xe] }
  0x3f   : > { %v642_v55 = vsel %vm2670_vm5, %v637_v29, %v641_v46  ;;  %v646_v56 = vor.u32 %v645_v60, %v641_v46  ;;  %v651_v61 = vrot.slane %v649_v47, 5  ;;  %v2126_v62 = vrot.slane %v2118_v54, 9  ;;  %v2807_v29 = vld [vmem:[%s2556_s27 + $0x58] sm:$0xf]  ;;  %v2813_v34 = vld [vmem:[%s2556_s27 + $0x24] sm:$0xf] }
  0x40   : > { %v748_v35 = vsel %vm2670_vm5, %v743_v49, %v747_v41  ;;  %v860_v63 = vsel %vm2604_vm2, %v2130_v50, %v859_v51  ;;  %v861_v0 = vrot.slane %v859_v51, 4  ;;  %v831_v2 = vrot.slane %v2567_v7, 5  ;;  %v2771_v7 = vld [vmem:[%s2556_s27 + $0x48] sm:$0xf]  ;;  %v2827_v49 = vld [vmem:[%s2556_s27 + $0x50] sm:$0x1] }
  0x41   : > { %v2213_v52 = vcombine.low %v738_v42, %v748_v35  ;;  %v647_v4 = vrot.slane %v646_v56, 4  ;;  %v834_v5 = vrot.slane %v2702_v6, 5  ;;  %v2131_v8 = vrot.slane %v2123_v53, 9  ;;  %v2822_v54 = vld [vmem:[%s2556_s27 + $0x28] sm:$0xf]  ;;  %v2424_v50 = vld [vmem:[%s3474_s1] sm:$0xff]  }
  0x42   : > { %1377 = vrot.lane.b32.xlu0 %v2208_v38, %s2487_s5  ;;  %v863_v32 = vsel %vm2604_vm2, %v861_v0, %v862_v57  ;;  %v832_v37 = vsel %vm2604_vm2, %v2126_v62, %v831_v2  ;;  %v833_v10 = vrot.slane %v831_v2, 4  ;;  %v866_v3 = vrot.slane %v2577_v17, 5  ;;  %2317 = vmatprep.subr.bf16.mxu0 %v2424_v50 }
  0x43   : > { %1387 = vrot.lane.b32.xlu1 %v2213_v52, %s2487_s5  ;;  %v652_v6 = vsel %vm2670_vm5, %v647_v4, %v651_v61  ;;  %v2220_v11 = vcombine.low %v860_v63, %v863_v32  ;;  %v869_v12 = vrot.slane %v2718_v44, 5  ;;  %v2127_v14 = vrot.slane %v2119_v1, 9  ;;  %v2841_v63 = vld [vmem:[%s2556_s27 + $0x20] sm:$0x1]  ;;  %2343 = vmatprep.subr.bf16.mxu1 %v2424_v50 }
  0x44   : > { %v2209_v16 = vcombine.low %v642_v55, %v652_v6  ;;  %v835_v18 = vsel %vm2604_vm2, %v833_v10, %v834_v5  ;;  %v867_v17 = vsel %vm2604_vm2, %v2131_v8, %v866_v3  ;;  %v868_v9 = vrot.slane %v866_v3, 4  ;;  %2318 = vmatpush3.bf16.msra.mxu0 %v2424_v50  ;;  %2348 = vmatpush3.bf16.msra.mxu1 %v2424_v50 }
  0x45   : > { %v2216_v40 = vcombine.low %v832_v37, %v835_v18  ;;  %v838_v48 = vrot.slane %v2586_v27, 5  ;;  %v841_v44 = vrot.slane %v2733_v31, 5  ;;  %v1010_v13 = vshrl.u32 %v2771_v7, 16  ;;  %v2425_v37 = vld [vmem:[%s3474_s1 + $0x8] sm:$0xff]  }
  0x46   : > { %1379 = vrot.lane.b32.xlu0 %v2209_v16, %s2487_s5  ;;  %v870_v21 = vsel %vm2604_vm2, %v868_v9, %v869_v12  ;;  %v1013_v22 = vshll.u32 %v2771_v7, 16  ;;  %v1023_v19 = vshrl.u32 %v2778_v15, 16  ;;  %v2228_v27 = vcombine.low %v2771_v7, %v2778_v15  ;;  %2319 = vmatprep.subr.bf16.mxu0 %v2425_v37 }
  0x47   : > { %1425 = vrot.lane.b32.xlu1 %v2220_v11, %s2488_s6  ;;  %v2221_v24 = vcombine.low %v867_v17, %v870_v21  ;;  %v839_v26 = vsel %vm2604_vm2, %v2127_v14, %v838_v48  ;;  %v840_v28 = vrot.slane %v838_v48, 4  ;;  %v1012_v31 = vrot.slane %v1010_v13, 4  ;;  %v2853_v14 = vld [vmem:[%s2556_s27 + $0x5c] sm:$0x1]  ;;  %2344 = vmatprep.subr.bf16.mxu1 %v2425_v37 }
  0x48   : > { %v1015_v30 = vrot.slane %v1013_v22, 5  ;;  %v914_v59 = vshrl.u32 %v2785_v20, 16  ;;  %v917_v33 = vshll.u32 %v2785_v20, 16  ;;  %v927_v25 = vshrl.u32 %v2791_v45, 16  ;;  %2320 = vmatpush3.bf16.msra.mxu0 %v2425_v37  ;;  %2349 = vmatpush3.bf16.msra.mxu1 %v2425_v37 }
  0x49   : > { %v842_v36 = vsel %vm2604_vm2, %v840_v28, %v841_v44  ;;  %v2224_v38 = vcombine.low %v2785_v20, %v2791_v45  ;;  %v1034_v42 = vshrl.u32 %v2801_v23, 16  ;;  %v1037_v43 = vshll.u32 %v2801_v23, 16 }
  0x4a   : > { %1417 = vrot.lane.b32.xlu0 %v2216_v40, %s2488_s6  ;;  %v2217_v41 = vcombine.low %v839_v26, %v842_v36  ;;  %v916_v46 = vrot.slane %v914_v59, 4  ;;  %v919_v60 = vrot.slane %v917_v33, 5  ;;  %v1047_v47 = vshrl.u32 %v2807_v29, 16  ;;  %v2426_v26 = vld [vmem:[%s3474_s1 + $0x10] sm:$0xff]   ;;  %v2164_v33 = vld [vmem:[%s2556_s27 + $0x48] sm:$0xe] }
  0x4b   : > { %1427 = vrot.lane.b32.xlu1 %v2221_v24, %s2488_s6  ;;  %v1036_v51 = vrot.slane %v1034_v42, 4  ;;  %v1039_v57 = vrot.slane %v1037_v43, 5  ;;  %v2229_v53 = vcombine.low %v2801_v23, %v2807_v29  ;;  %v938_v55 = vshrl.u32 %v2813_v34, 16  ;;  %2321 = vmatprep.subr.bf16.mxu0 %v2426_v26  ;;  %v2427_v42 = vld [vmem:[%s3474_s1 + $0x18] sm:$0xff]  }
  0x4c   : > { %v941_v56 = vshll.u32 %v2813_v34, 16  ;;  %v951_v61 = vshrl.u32 %v2822_v54, 16  ;;  %v2225_v62 = vcombine.low %v2813_v34, %v2822_v54  ;;  %v1016_v35 = vor.u32 %v1015_v30, %v1012_v31  ;;  %2345 = vmatprep.subr.bf16.mxu1 %v2426_v26  ;;  %2322 = vmatpush3.bf16.msra.mxu0 %v2426_v26 }
  0x4d   : > { %v940_v0 = vrot.slane %v938_v55, 4  ;;  %v1019_v2 = vshll.u32 %v2778_v15, 16  ;;  %v1025_v1 = vrot.slane %v1023_v19, 4  ;;  %v1029_v52 = vshll.u32 %v2827_v49, 16  ;;  %v279_v55 = vld [vmem:[%s2556_s27 + $0x48] sm:$0xf]  ;;  %2350 = vmatpush3.bf16.msra.mxu1 %v2426_v26  ;;  %2323 = vmatprep.subr.bf16.mxu0 %v2427_v42 }
  0x4e   : > { %1419 = vrot.lane.b32.xlu0 %v2217_v41, %s2488_s6  ;;  %v943_v4 = vrot.slane %v941_v56, 5  ;;  %v1017_v5 = vrot.slane %v1016_v35, 4  ;;  %v920_v8 = vor.u32 %v919_v60, %v916_v46  ;;  %v923_v32 = vshll.u32 %v2791_v45, 16  ;;  %2346 = vmatprep.subr.bf16.mxu1 %v2427_v42  ;;  %v2165_v26 = vld [vmem:[%s2556_s27 + $0x54] sm:$0xe] }
  0x4f   : > { %1473 = vrot.lane.b32.xlu1 %v2228_v27, %s2489_s11  ;;  %v1021_v10 = vrot.slane %v1019_v2, 5  ;;  %v1031_v3 = vrot.slane %v1029_v52, 5  ;;  %v929_v7 = vrot.slane %v927_v25, 4  ;;  %v933_v6 = vshll.u32 %v2841_v63, 16  ;;  %v2864_v27 = vld [vmem:[%s2556_s27 + $0x2c] sm:$0x1] }
  0x50   : > { %v921_v11 = vrot.slane %v920_v8, 4  ;;  %v925_v12 = vrot.slane %v923_v32, 5  ;;  %v1040_v16 = vor.u32 %v1039_v57, %v1036_v51  ;;  %v1043_v18 = vshll.u32 %v2807_v29, 16  ;;  %2324 = vmatpush3.bf16.msra.mxu0 %v2427_v42 }
  0x51   : > { %v1022_v17 = vsel %vm2670_vm5, %v1017_v5, %v1021_v10  ;;  %v1026_v9 = vor.u32 %v1025_v1, %v1021_v10  ;;  %v935_v20 = vrot.slane %v933_v6, 5  ;;  %v1049_v40 = vrot.slane %v1047_v47, 4  ;;  %v2160_v47 = vld [vmem:[%s2556_s27 + $0x18] sm:$0xe]  ;;  %v2904_v10 = vld [vmem:[%s2556_s27 + $0x50] sm:$0x1]  ;;  %2351 = vmatpush3.bf16.msra.mxu1 %v2427_v42 }
  0x52   : > { %1465 = vrot.lane.b32.xlu0 %v2224_v38, %s2489_s11  ;;  %v926_v48 = vsel %vm2670_vm5, %v921_v11, %v925_v12  ;;  %v930_v44 = vor.u32 %v929_v7, %v925_v12  ;;  %v1041_v13 = vrot.slane %v1040_v16, 4  ;;  %v1045_v21 = vrot.slane %v1043_v18, 5  ;;  %v271_v7 = vld [vmem:[%s2556_s27 + $0x18] sm:$0xf]  ;;  %v2912_v16 = vld [vmem:[%s2556_s27 + $0x1c] sm:$0xf] }
  0x53   : > { %1475 = vrot.lane.b32.xlu1 %v2229_v53, %s2489_s11  ;;  %v1027_v22 = vrot.slane %v1026_v9, 4  ;;  %v1053_v19 = vshll.u32 %v2853_v14, 16  ;;  %v944_v23 = vor.u32 %v943_v4, %v940_v0  ;;  %v947_v24 = vshll.u32 %v2822_v54, 16  ;;  %v2893_v4 = vld [vmem:[%s2556_s27 + $0x4c] sm:$0xf] }
  0x54   : > { %v931_v28 = vrot.slane %v930_v44, 4  ;;  %v1046_v31 = vsel %vm2670_vm5, %v1041_v13, %v1045_v21  ;;  %v1050_v30 = vor.u32 %v1049_v40, %v1045_v21  ;;  %v953_v59 = vrot.slane %v951_v61, 4  ;;  %v2918_v40 = vld [vmem:[%s2556_s27 + $0x20] sm:$0x1] }
  0x55   : > { %v1032_v25 = vsel %vm2670_vm5, %v1027_v22, %v1031_v3  ;;  %v1055_v34 = vrot.slane %v1053_v19, 5  ;;  %v945_v36 = vrot.slane %v944_v23, 4  ;;  %v949_v38 = vrot.slane %v947_v24, 5 }
  0x56   : > { %1467 = vrot.lane.b32.xlu0 %v2225_v62, %s2489_s11  ;;  %v2236_v43 = vcombine.low %v1022_v17, %v1032_v25  ;;  %v936_v41 = vsel %vm2670_vm5, %v931_v28, %v935_v20  ;;  %v1051_v46 = vrot.slane %v1050_v30, 4  ;;  %v957_v60 = vshll.u32 %v2864_v27, 16 }
  0x57   : > { %v2232_v50 = vcombine.low %v926_v48, %v936_v41  ;;  %v950_v51 = vsel %vm2670_vm5, %v945_v36, %v949_v38  ;;  %v954_v57 = vor.u32 %v953_v59, %v949_v38  ;;  %v2172_v53 = vrot.slane %v2164_v33, 9  ;;  %v2161_v38 = vld [vmem:[%s2556_s27 + $0x24] sm:$0xe] }
  0x58   : > { %1513 = vrot.lane.b32.xlu1 %v2236_v43, %s2490_s23  ;;  %v1056_v56 = vsel %vm2670_vm5, %v1051_v46, %v1055_v34  ;;  %v959_v61 = vrot.slane %v957_v60, 5  ;;  %v1167_v62 = vrot.slane %v2778_v15, 5  ;;  %v1170_v35 = vrot.slane %v2827_v49, 5 }
  0x59   : > { %v2237_v0 = vcombine.low %v1046_v31, %v1056_v56  ;;  %v955_v2 = vrot.slane %v954_v57, 4  ;;  %v2168_v1 = vrot.slane %v2160_v47, 9  ;;  %v1139_v52 = vrot.slane %v2791_v45, 5  ;;  %v2934_v57 = vld [vmem:[%s2556_s27 + $0x54] sm:$0xf] }
  0x5a   : > { %1505 = vrot.lane.b32.xlu0 %v2232_v50, %s2490_s23  ;;  %v1168_v5 = vsel %vm2604_vm2, %v2172_v53, %v1167_v62  ;;  %v1169_v8 = vrot.slane %v1167_v62, 4  ;;  %v1142_v15 = vrot.slane %v2841_v63, 5  ;;  %v439_v49 = vshrl.u32 %v279_v55, 16 }
  0x5b   : > { %v960_v32 = vsel %vm2670_vm5, %v955_v2, %v959_v61  ;;  %v1140_v37 = vsel %vm2604_vm2, %v2168_v1, %v1139_v52  ;;  %v1141_v45 = vrot.slane %v1139_v52, 4  ;;  %v442_v3 = vshll.u32 %v279_v55, 16  ;;  %v2943_v2 = vld [vmem:[%s2556_s27 + $0x58] sm:$0xf] }
  0x5c   : > { %1515 = vrot.lane.b32.xlu1 %v2237_v0, %s2490_s23  ;;  %v2233_v6 = vcombine.low %v950_v51, %v960_v32  ;;  %v1171_v63 = vsel %vm2604_vm2, %v1169_v8, %v1170_v35  ;;  %v441_v11 = vrot.slane %v439_v49, 4  ;;  %v448_v12 = vshll.u32 %v2893_v4, 16  ;;  %v2956_v32 = vld [vmem:[%s2556_s27 + $0x24] sm:$0xf] }
  0x5d   : > { %v2244_v18 = vcombine.low %v1168_v5, %v1171_v63  ;;  %v1143_v17 = vsel %vm2604_vm2, %v1141_v45, %v1142_v15  ;;  %v444_v9 = vrot.slane %v442_v3, 5  ;;  %v452_v20 = vshrl.u32 %v2893_v4, 16  ;;  %v2948_v5 = vld [vmem:[%s2556_s27 + $0x5c] sm:$0x1] }
  0x5e   : > { %1507 = vrot.lane.b32.xlu0 %v2233_v6, %s2490_s23  ;;  %v2240_v48 = vcombine.low %v1140_v37, %v1143_v17  ;;  %v450_v44 = vrot.slane %v448_v12, 5  ;;  %v458_v13 = vshll.u32 %v2904_v10, 16  ;;  %v343_v21 = vshrl.u32 %v271_v7, 16  ;;  %v2964_v6 = vld [vmem:[%s2556_s27 + $0x28] sm:$0xf] }
  0x5f   : > { %v445_v22 = vor.u32 %v444_v9, %v441_v11  ;;  %v454_v19 = vrot.slane %v452_v20, 4  ;;  %v346_v23 = vshll.u32 %v271_v7, 16  ;;  %v352_v24 = vshll.u32 %v2912_v16, 16  ;;  %v2971_v17 = vld [vmem:[%s2556_s27 + $0x2c] sm:$0x1] }
  0x60   : > { %1553 = vrot.lane.b32.xlu1 %v2244_v18, %s2491_s24  ;;  %v460_v28 = vrot.slane %v458_v13, 5  ;;  %v345_v31 = vrot.slane %v343_v21, 4  ;;  %v356_v30 = vshrl.u32 %v2912_v16, 16  ;;  %v362_v59 = vshll.u32 %v2918_v40, 16  ;;  %v492_v13 = vld [vmem:[%s2556_s27 + $0x48] sm:$0xe] }
  0x61   : > { %v446_v33 = vrot.slane %v445_v22, 4  ;;  %v455_v25 = vor.u32 %v454_v19, %v450_v44  ;;  %v348_v34 = vrot.slane %v346_v23, 5  ;;  %v354_v36 = vrot.slane %v352_v24, 5 }
  0x62   : > { %1545 = vrot.lane.b32.xlu0 %v2240_v48, %s2491_s24  ;;  %v358_v42 = vrot.slane %v356_v30, 4  ;;  %v364_v43 = vrot.slane %v362_v59, 5  ;;  %v2173_v41 = vrot.slane %v2165_v26, 9  ;;  %v1174_v46 = vrot.slane %v2807_v29, 5  ;;  %v488_v30 = vld [vmem:[%s2556_s27 + $0x18] sm:$0xe] }
  0x63   : > { %v451_v60 = vsel %vm2670_vm5, %v446_v33, %v450_v44  ;;  %v456_v47 = vrot.slane %v455_v25, 4  ;;  %v349_v50 = vor.u32 %v348_v34, %v345_v31  ;;  %v1177_v51 = vrot.slane %v2853_v14, 5 }
  0x64   : > { %v359_v53 = vor.u32 %v358_v42, %v354_v36  ;;  %v1175_v55 = vsel %vm2604_vm2, %v2173_v41, %v1174_v46  ;;  %v1176_v56 = vrot.slane %v1174_v46, 4  ;;  %v2169_v61 = vrot.slane %v2161_v38, 9 }
  0x65   : > { %v461_v29 = vsel %vm2670_vm5, %v456_v47, %v460_v28  ;;  %v350_v62 = vrot.slane %v349_v50, 4  ;;  %v1146_v35 = vrot.slane %v2822_v54, 5  ;;  %v1149_v0 = vrot.slane %v2864_v27, 5  ;;  %v493_v50 = vld [vmem:[%s2556_s27 + $0x54] sm:$0xe] }
  0x66   : > { %v2190_v14 = vcombine.low %v451_v60, %v461_v29  ;;  %v360_v1 = vrot.slane %v359_v53, 4  ;;  %v1178_v52 = vsel %vm2604_vm2, %v1176_v56, %v1177_v51  ;;  %v463_v8 = vshrl.u32 %v2934_v57, 16 }
  0x67   : > { %v355_v15 = vsel %vm2670_vm5, %v350_v62, %v354_v36  ;;  %v2245_v49 = vcombine.low %v1175_v55, %v1178_v52  ;;  %v1147_v54 = vsel %vm2604_vm2, %v2169_v61, %v1146_v35  ;;  %v1148_v27 = vrot.slane %v1146_v35, 4 }
  0x68   : > { %1261 = vrot.lane.b32.xlu1 %v2190_v14, %s2486_s30  ;;  %v365_v37 = vsel %vm2670_vm5, %v360_v1, %v364_v43  ;;  %v465_v45 = vrot.slane %v463_v8, 4  ;;  %v466_v3 = vshll.u32 %v2934_v57, 16  ;;  %v472_v7 = vshll.u32 %v2943_v2, 16 }
  0x69   : > { %v2186_v63 = vcombine.low %v355_v15, %v365_v37  ;;  %v1150_v11 = vsel %vm2604_vm2, %v1148_v27, %v1149_v0  ;;  %v476_v12 = vshrl.u32 %v2943_v2, 16  ;;  %v482_v18 = vshll.u32 %v2948_v5, 16 }
  0x6a   : > { %v2241_v9 = vcombine.low %v1147_v54, %v1150_v11  ;;  %v468_v20 = vrot.slane %v466_v3, 5  ;;  %v474_v48 = vrot.slane %v472_v7, 5  ;;  %v367_v44 = vshrl.u32 %v2956_v32, 16  ;;  %v3002_v54 = vld [vmem:[%s2556_s27 + $0x54] sm:$0xf] }
  0x6b   : > { %1253 = vrot.lane.b32.xlu0 %v2186_v63, %s2486_s30  ;;  %v478_v21 = vrot.slane %v476_v12, 4  ;;  %v484_v22 = vrot.slane %v482_v18, 5  ;;  %v370_v19 = vshll.u32 %v2956_v32, 16  ;;  %v376_v23 = vshll.u32 %v2964_v6, 16  ;;  %v3010_v3 = vld [vmem:[%s2556_s27 + $0x58] sm:$0xf] }
  0x6c   : > { %1555 = vrot.lane.b32.xlu1 %v2245_v49, %s2491_s24  ;;  %v469_v24 = vor.u32 %v468_v20, %v465_v45  ;;  %v369_v26 = vrot.slane %v367_v44, 4  ;;  %v380_v28 = vshrl.u32 %v2964_v6, 16  ;;  %v386_v31 = vshll.u32 %v2971_v17, 16  ;;  %v3017_v18 = vld [vmem:[%s2556_s27 + $0x24] sm:$0xf] }
  0x6d   : > { %v479_v59 = vor.u32 %v478_v21, %v474_v48  ;;  %v372_v33 = vrot.slane %v370_v19, 5  ;;  %v378_v25 = vrot.slane %v376_v23, 5  ;;  %v2090_v34 = vrot.slane %v492_v13, 9 }
  0x6e   : > { %v470_v36 = vrot.slane %v469_v24, 4  ;;  %v382_v38 = vrot.slane %v380_v28, 4  ;;  %v388_v42 = vrot.slane %v386_v31, 5  ;;  %v565_v43 = vrot.slane %v2893_v4, 5  ;;  %v2108_v28 = vld [vmem:[%s2556_s27 + $0x60] sm:$0xf] }
  0x6f   : > { %1547 = vrot.lane.b32.xlu0 %v2241_v9, %s2491_s24  ;;  %v480_v41 = vrot.slane %v479_v59, 4  ;;  %v373_v46 = vor.u32 %v372_v33, %v369_v26  ;;  %v568_v60 = vrot.slane %v2904_v10, 5  ;;  %v2086_v47 = vrot.slane %v488_v30, 9  ;;  %v489_v10 = vld [vmem:[%s2556_s27 + $0x24] sm:$0xe] }
  0x70   : > { %v475_v51 = vsel %vm2670_vm5, %v470_v36, %v474_v48  ;;  %v383_v53 = vor.u32 %v382_v38, %v378_v25  ;;  %v566_v55 = vsel %vm2604_vm2, %v2090_v34, %v565_v43  ;;  %v567_v56 = vrot.slane %v565_v43, 4  ;;  %v3038_v31 = vld [vmem:[%s2556_s27 + $0x64] sm:$0xf]  ;;  %v3044_v34 = vld [vmem:[%s2556_s27 + $0x30] sm:$0xf] }
  0x71   : > { %v485_v4 = vsel %vm2670_vm5, %v480_v41, %v484_v22  ;;  %v374_v61 = vrot.slane %v373_v46, 4  ;;  %v537_v29 = vrot.slane %v2912_v16, 5  ;;  %v540_v62 = vrot.slane %v2918_v40, 5  ;;  %v3028_v22 = vld [vmem:[%s2556_s27 + $0x28] sm:$0xf] }
  0x72   : > { %v2191_v35 = vcombine.low %v475_v51, %v485_v4  ;;  %v384_v0 = vrot.slane %v383_v53, 4  ;;  %v569_v14 = vsel %vm2604_vm2, %v567_v56, %v568_v60  ;;  %v2091_v1 = vrot.slane %v493_v50, 9  ;;  %v3047_v36 = vld [vmem:[%s2556_s27 + $0x34] sm:$0xf]  ;;  %v3060_v4 = vld [vmem:[%s2556_s27 + $0x5c] sm:$0x1] }
  0x73   : > { %v379_v52 = vsel %vm2670_vm5, %v374_v61, %v378_v25  ;;  %v2198_v8 = vcombine.low %v566_v55, %v569_v14  ;;  %v538_v15 = vsel %vm2604_vm2, %v2086_v47, %v537_v29  ;;  %v539_v49 = vrot.slane %v537_v29, 4 }
  0x74   : > { %1263 = vrot.lane.b32.xlu1 %v2191_v35, %s2486_s30  ;;  %v389_v40 = vsel %vm2670_vm5, %v384_v0, %v388_v42  ;;  %v572_v27 = vrot.slane %v2943_v2, 5  ;;  %v575_v37 = vrot.slane %v2948_v5, 5  ;;  %v2087_v45 = vrot.slane %v489_v10, 9  ;;  %v3065_v35 = vld [vmem:[%s2556_s27 + $0x2c] sm:$0x1] }
  0x75   : > { %v2187_v7 = vcombine.low %v379_v52, %v389_v40  ;;  %v541_v63 = vsel %vm2604_vm2, %v539_v49, %v540_v62  ;;  %v544_v11 = vrot.slane %v2964_v6, 5  ;;  %v547_v12 = vrot.slane %v2971_v17, 5 }
  0x76   : > { %v2194_v9 = vcombine.low %v538_v15, %v541_v63  ;;  %v573_v5 = vsel %vm2604_vm2, %v2091_v1, %v572_v27  ;;  %v574_v20 = vrot.slane %v572_v27, 4  ;;  %v750_v48 = vshrl.u32 %v3002_v54, 16 }
  0x77   : > { %1255 = vrot.lane.b32.xlu0 %v2187_v7, %s2486_s30  ;;  %v545_v44 = vsel %vm2604_vm2, %v2087_v45, %v544_v11  ;;  %v546_v13 = vrot.slane %v544_v11, 4  ;;  %v753_v17 = vshll.u32 %v3002_v54, 16  ;;  %v763_v21 = vshrl.u32 %v3010_v3, 16 }
  0x78   : > { %1301 = vrot.lane.b32.xlu1 %v2198_v8, %s2485_s29  ;;  %v576_v19 = vsel %vm2604_vm2, %v574_v20, %v575_v37  ;;  %v752_v23 = vrot.slane %v750_v48, 4  ;;  %v2206_v24 = vcombine.low %v3002_v54, %v3010_v3  ;;  %v654_v26 = vshrl.u32 %v3017_v18, 16 }
  0x79   : > { %v2199_v30 = vcombine.low %v573_v5, %v576_v19  ;;  %v548_v59 = vsel %vm2604_vm2, %v546_v13, %v547_v12  ;;  %v755_v33 = vrot.slane %v753_v17, 5  ;;  %v657_v25 = vshll.u32 %v3017_v18, 16  ;;  %v3074_v12 = vld [vmem:[%s2556_s27 + $0x68] sm:$0x1] }
  0x7a   : > { %v2195_v38 = vcombine.low %v545_v44, %v548_v59  ;;  %v656_v42 = vrot.slane %v654_v26, 4  ;;  %v667_v43 = vshrl.u32 %v3028_v22, 16  ;;  %v2202_v41 = vcombine.low %v3017_v18, %v3028_v22 }
  0x7b   : > { %1293 = vrot.lane.b32.xlu0 %v2194_v9, %s2485_s29  ;;  %v659_v46 = vrot.slane %v657_v25, 5  ;;  %v774_v60 = vshrl.u32 %v2108_v28, 16  ;;  %v777_v47 = vshll.u32 %v2108_v28, 16  ;;  %v787_v50 = vshrl.u32 %v3038_v31, 16 }
  0x7c   : > { %1303 = vrot.lane.b32.xlu1 %v2199_v30, %s2485_s29  ;;  %v2207_v51 = vcombine.low %v2108_v28, %v3038_v31  ;;  %v678_v53 = vshrl.u32 %v3044_v34, 16  ;;  %v681_v55 = vshll.u32 %v3044_v34, 16  ;;  %v691_v56 = vshrl.u32 %v3047_v36, 16 }
  0x7d   : > { %v776_v61 = vrot.slane %v774_v60, 4  ;;  %v779_v29 = vrot.slane %v777_v47, 5  ;;  %v2203_v62 = vcombine.low %v3044_v34, %v3047_v36  ;;  %v756_v10 = vor.u32 %v755_v33, %v752_v23  ;;  %v2124_v34 = vld [vmem:[%s2556_s27 + $0x54] sm:$0xe] }
  0x7e   : > { %v680_v0 = vrot.slane %v678_v53, 4  ;;  %v683_v14 = vrot.slane %v681_v55, 5  ;;  %v759_v1 = vshll.u32 %v3010_v3, 16  ;;  %v765_v52 = vrot.slane %v763_v21, 4 }
  0x7f   : > { %1295 = vrot.lane.b32.xlu0 %v2195_v38, %s2485_s29  ;;  %v757_v8 = vrot.slane %v756_v10, 4  ;;  %v769_v15 = vshll.u32 %v3060_v4, 16  ;;  %v660_v49 = vor.u32 %v659_v46, %v656_v42  ;;  %v663_v54 = vshll.u32 %v3028_v22, 16  ;;  %s2075_s29 = sshll.u32 %s3493_s16, 5 }
  0x80   : > { %1349 = vrot.lane.b32.xlu1 %v2206_v24, %s2484_s28  ;;  %v761_v40 = vrot.slane %v759_v1, 5  ;;  %v669_v27 = vrot.slane %v667_v43, 4  ;;  %v673_v37 = vshll.u32 %v3065_v35, 16  ;;  %v780_v45 = vor.u32 %v779_v29, %v776_v61  ;;  %v3085_v24 = vld [vmem:[%s2556_s27 + $0x38] sm:$0x1] }
  0x81   : > { %v771_v7 = vrot.slane %v769_v15, 5  ;;  %v661_v63 = vrot.slane %v660_v49, 4  ;;  %v665_v11 = vrot.slane %v663_v54, 5  ;;  %v783_v18 = vshll.u32 %v3038_v31, 16  ;;  %v2125_v29 = vld [vmem:[%s2556_s27 + $0x60] sm:$0xe] }
  0x82   : > { %v762_v9 = vsel %vm2670_vm5, %v757_v8, %v761_v40  ;;  %v766_v5 = vor.u32 %v765_v52, %v761_v40  ;;  %v675_v20 = vrot.slane %v673_v37, 5  ;;  %v781_v48 = vrot.slane %v780_v45, 4  ;;  %v2121_v49 = vld [vmem:[%s2556_s27 + $0x30] sm:$0xe] }
  0x83   : > { %1341 = vrot.lane.b32.xlu0 %v2202_v41, %s2484_s28  ;;  %v666_v44 = vsel %vm2670_vm5, %v661_v63, %v665_v11  ;;  %v670_v13 = vor.u32 %v669_v27, %v665_v11  ;;  %v785_v17 = vrot.slane %v783_v18, 5  ;;  %v789_v21 = vrot.slane %v787_v50, 4 }
  0x84   : > { %1351 = vrot.lane.b32.xlu1 %v2207_v51, %s2484_s28  ;;  %v767_v19 = vrot.slane %v766_v5, 4  ;;  %v793_v23 = vshll.u32 %v3074_v12, 16  ;;  %v684_v26 = vor.u32 %v683_v14, %v680_v0  ;;  %v687_v28 = vshll.u32 %v3047_v36, 16  ;;  %v2120_v51 = vld [vmem:[%s2556_s27 + $0x24] sm:$0xe] }
  0x85   : > { %v671_v30 = vrot.slane %v670_v13, 4  ;;  %v786_v59 = vsel %vm2670_vm5, %v781_v48, %v785_v17  ;;  %v790_v33 = vor.u32 %v789_v21, %v785_v17  ;;  %v693_v25 = vrot.slane %v691_v56, 4  ;;  %v3127_v5 = vld [vmem:[%s2556_s27 + $0x64] sm:$0xf]  ;;  %v3134_v13 = vld [vmem:[%s2556_s27 + $0x30] sm:$0xf] }
  0x86   : > { %v772_v38 = vsel %vm2670_vm5, %v767_v19, %v771_v7  ;;  %v795_v42 = vrot.slane %v793_v23, 5  ;;  %v685_v43 = vrot.slane %v684_v26, 4  ;;  %v689_v41 = vrot.slane %v687_v28, 5  ;;  %v3118_v7 = vld [vmem:[%s2556_s27 + $0x60] sm:$0xf] }
  0x87   : > { %1343 = vrot.lane.b32.xlu0 %v2203_v62, %s2484_s28  ;;  %v2214_v46 = vcombine.low %v762_v9, %v772_v38  ;;  %v676_v60 = vsel %vm2670_vm5, %v671_v30, %v675_v20  ;;  %v791_v47 = vrot.slane %v790_v33, 4  ;;  %v697_v50 = vshll.u32 %v3085_v24, 16  ;;  %v3141_v23 = vld [vmem:[%s2556_s27 + $0x34] sm:$0xf]  ;;  %v3150_v33 = vld [vmem:[%s2556_s27 + $0x6c] sm:$0xf] }
  0x88   : > { %v2210_v53 = vcombine.low %v666_v44, %v676_v60  ;;  %v690_v55 = vsel %vm2670_vm5, %v685_v43, %v689_v41  ;;  %v694_v56 = vor.u32 %v693_v25, %v689_v41  ;;  %v2132_v61 = vrot.slane %v2124_v34, 9  ;;  %v3156_v38 = vld [vmem:[%s2556_s27 + $0x70] sm:$0xf]  ;;  %v3162_v60 = vld [vmem:[%s2556_s27 + $0x3c] sm:$0xf] }
  0x89   : > { %1389 = vrot.lane.b32.xlu1 %v2214_v46, %s2487_s5  ;;  %v796_v62 = vsel %vm2670_vm5, %v791_v47, %v795_v42  ;;  %v699_v10 = vrot.slane %v697_v50, 5  ;;  %v873_v0 = vrot.slane %v3010_v3, 5  ;;  %v876_v14 = vrot.slane %v3060_v4, 5 }
  0x8a   : > { %v2215_v1 = vcombine.low %v786_v59, %v796_v62  ;;  %v695_v52 = vrot.slane %v694_v56, 4  ;;  %v2128_v8 = vrot.slane %v2120_v51, 9  ;;  %v845_v15 = vrot.slane %v3028_v22, 5  ;;  %v3120_v63 = vpop.permute.xlu1 %1345 }
  0x8b   : > { %1381 = vrot.lane.b32.xlu0 %v2210_v53, %s2487_s5  ;;  %v874_v54 = vsel %vm2604_vm2, %v2132_v61, %v873_v0  ;;  %v875_v40 = vrot.slane %v873_v0, 4  ;;  %v848_v27 = vrot.slane %v3065_v35, 5  ;;  %v2133_v37 = vrot.slane %v2125_v29, 9  ;;  %v3164_v47 = vpop.permute.xlu0 %1337  ;;  %v3176_v61 = vld [vmem:[%s2556_s27 + $0x40] sm:$0xf] }
  0x8c   : > { %v700_v3 = vsel %vm2670_vm5, %v695_v52, %v699_v10  ;;  %v846_v4 = vsel %vm2604_vm2, %v2128_v8, %v845_v15  ;;  %v847_v45 = vrot.slane %v845_v15, 4  ;;  %v880_v22 = vrot.slane %v3038_v31, 5 }
  0x8d   : > { %1391 = vrot.lane.b32.xlu1 %v2215_v1, %s2487_s5  ;;  %v2211_v11 = vcombine.low %v690_v55, %v700_v3  ;;  %v877_v35 = vsel %vm2604_vm2, %v875_v40, %v876_v14  ;;  %v883_v18 = vrot.slane %v3074_v12, 5  ;;  %v2129_v9 = vrot.slane %v2121_v49, 9  ;;  %v3180_v14 = vld [vmem:[%s2556_s27 + $0x68] sm:$0x1] }
  0x8e   : > { %v2222_v20 = vcombine.low %v874_v54, %v877_v35  ;;  %v849_v31 = vsel %vm2604_vm2, %v847_v45, %v848_v27  ;;  %v881_v48 = vsel %vm2604_vm2, %v2133_v37, %v880_v22  ;;  %v882_v44 = vrot.slane %v880_v22, 4  ;;  %v3166_v50 = vpop.permute.xlu1 %1347  ;;  %v3191_v37 = vld [vmem:[%s2556_s27 + $0x38] sm:$0x1] }
  0x8f   : > { %1383 = vrot.lane.b32.xlu0 %v2211_v11, %s2487_s5  ;;  %v2218_v17 = vcombine.low %v846_v4, %v849_v31  ;;  %v852_v12 = vrot.slane %v3047_v36, 5  ;;  %v855_v21 = vrot.slane %v3085_v24, 5  ;;  %v1058_v19 = vshrl.u32 %v3118_v7, 16 }
  0x90   : > { %v884_v26 = vsel %vm2604_vm2, %v882_v44, %v883_v18  ;;  %v1061_v28 = vshll.u32 %v3118_v7, 16  ;;  %v1071_v30 = vshrl.u32 %v3127_v5, 16  ;;  %v2230_v59 = vcombine.low %v3118_v7, %v3127_v5 }
  0x91   : > { %1429 = vrot.lane.b32.xlu1 %v2222_v20, %s2488_s6  ;;  %v2223_v36 = vcombine.low %v881_v48, %v884_v26  ;;  %v853_v24 = vsel %vm2604_vm2, %v2129_v9, %v852_v12  ;;  %v854_v25 = vrot.slane %v852_v12, 4  ;;  %v1060_v34 = vrot.slane %v1058_v19, 4  ;;  %v3197_v9 = vpop.permute.xlu0 %1339 }
  0x92   : > { %v1063_v42 = vrot.slane %v1061_v28, 5  ;;  %v962_v43 = vshrl.u32 %v3134_v13, 16  ;;  %v965_v41 = vshll.u32 %v3134_v13, 16  ;;  %v975_v46 = vshrl.u32 %v3141_v23, 16 }
  0x93   : > { %1421 = vrot.lane.b32.xlu0 %v2218_v17, %s2488_s6  ;;  %v856_v51 = vsel %vm2604_vm2, %v854_v25, %v855_v21  ;;  %v2226_v53 = vcombine.low %v3134_v13, %v3141_v23  ;;  %v1082_v55 = vshrl.u32 %v3150_v33, 16  ;;  %v1085_v56 = vshll.u32 %v3150_v33, 16  ;;  %v3204_v21 = vld [vmem:[%s2556_s27 + $0x74] sm:$0x1] }
  0x94   : > { %v2219_v29 = vcombine.low %v853_v24, %v856_v51  ;;  %v964_v62 = vrot.slane %v962_v43, 4  ;;  %v967_v10 = vrot.slane %v965_v41, 5  ;;  %v1095_v0 = vshrl.u32 %v3156_v38, 16  ;;  %v3215_v41 = vld [vmem:[%s2556_s27 + $0x44] sm:$0x1] }
  0x95   : > { %1431 = vrot.lane.b32.xlu1 %v2223_v36, %s2488_s6  ;;  %v1084_v1 = vrot.slane %v1082_v55, 4  ;;  %v1087_v52 = vrot.slane %v1085_v56, 5  ;;  %v2231_v8 = vcombine.low %v3150_v33, %v3156_v38  ;;  %v986_v15 = vshrl.u32 %v3162_v60, 16 }
  0x96   : > { %v989_v49 = vshll.u32 %v3162_v60, 16  ;;  %v999_v54 = vshrl.u32 %v3176_v61, 16  ;;  %v2227_v40 = vcombine.low %v3162_v60, %v3176_v61  ;;  %v1064_v27 = vor.u32 %v1063_v42, %v1060_v34  ;;  %v3199_v20 = vpop.permute.xlu1 %1297 }
  0x97   : > { %1423 = vrot.lane.b32.xlu0 %v2219_v29, %s2488_s6  ;;  %v988_v3 = vrot.slane %v986_v15, 4  ;;  %v1067_v4 = vshll.u32 %v3127_v5, 16  ;;  %v1073_v45 = vrot.slane %v1071_v30, 4  ;;  %v1077_v22 = vshll.u32 %v3180_v14, 16  ;;  %v2166_v29 = vld [vmem:[%s2556_s27 + $0x60] sm:$0xe] }
  0x98   : > { %v991_v7 = vrot.slane %v989_v49, 5  ;;  %v1065_v11 = vrot.slane %v1064_v27, 4  ;;  %v968_v35 = vor.u32 %v967_v10, %v964_v62  ;;  %v971_v18 = vshll.u32 %v3141_v23, 16  ;;  %v3221_v62 = vpop.permute.xlu0 %1289 }
  0x99   : > { %1477 = vrot.lane.b32.xlu1 %v2230_v59, %s2489_s11  ;;  %v1069_v31 = vrot.slane %v1067_v4, 5  ;;  %v1079_v48 = vrot.slane %v1077_v22, 5  ;;  %v977_v44 = vrot.slane %v975_v46, 4  ;;  %v981_v13 = vshll.u32 %v3191_v37, 16 }
  0x9a   : > { %v969_v17 = vrot.slane %v968_v35, 4  ;;  %v973_v12 = vrot.slane %v971_v18, 5  ;;  %v1088_v19 = vor.u32 %v1087_v52, %v1084_v1  ;;  %v1091_v26 = vshll.u32 %v3156_v38, 16  ;;  %v3223_v10 = vpop.permute.xlu1 %1299 }
  0x9b   : > { %1469 = vrot.lane.b32.xlu0 %v2226_v53, %s2489_s11  ;;  %v1070_v28 = vsel %vm2670_vm5, %v1065_v11, %v1069_v31  ;;  %v1074_v30 = vor.u32 %v1073_v45, %v1069_v31  ;;  %v983_v59 = vrot.slane %v981_v13, 5  ;;  %v1097_v33 = vrot.slane %v1095_v0, 4 }
  0x9c   : > { %v974_v36 = vsel %vm2670_vm5, %v969_v17, %v973_v12  ;;  %v978_v24 = vor.u32 %v977_v44, %v973_v12  ;;  %v1089_v25 = vrot.slane %v1088_v19, 4  ;;  %v1093_v34 = vrot.slane %v1091_v26, 5  ;;  %v2163_v12 = vld [vmem:[%s2556_s27 + $0x3c] sm:$0xe] }
  0x9d   : > { %1479 = vrot.lane.b32.xlu1 %v2231_v8, %s2489_s11  ;;  %v1075_v42 = vrot.slane %v1074_v30, 4  ;;  %v1101_v43 = vshll.u32 %v3204_v21, 16  ;;  %v992_v46 = vor.u32 %v991_v7, %v988_v3  ;;  %v995_v60 = vshll.u32 %v3176_v61, 16  ;;  %v2162_v3 = vld [vmem:[%s2556_s27 + $0x30] sm:$0xe] }
  0x9e   : > { %v979_v51 = vrot.slane %v978_v24, 4  ;;  %v1094_v53 = vsel %vm2670_vm5, %v1089_v25, %v1093_v34  ;;  %v1098_v55 = vor.u32 %v1097_v33, %v1093_v34  ;;  %v1001_v56 = vrot.slane %v999_v54, 4  ;;  %v2167_v7 = vld [vmem:[%s2556_s27 + $0x6c] sm:$0xe] }
  0x9f   : > { %1471 = vrot.lane.b32.xlu0 %v2227_v40, %s2489_s11  ;;  %v1080_v0 = vsel %vm2670_vm5, %v1075_v42, %v1079_v48  ;;  %v1103_v1 = vrot.slane %v1101_v43, 5  ;;  %v993_v52 = vrot.slane %v992_v46, 4  ;;  %v997_v8 = vrot.slane %v995_v60, 5 }
  0xa0   : > { %v2238_v15 = vcombine.low %v1070_v28, %v1080_v0  ;;  %v984_v49 = vsel %vm2670_vm5, %v979_v51, %v983_v59  ;;  %v1099_v27 = vrot.slane %v1098_v55, 4  ;;  %v1005_v54 = vshll.u32 %v3215_v41, 16  ;;  %v3246_v59 = vpop.permute.xlu0 %1291 }
  0xa1   : > { %v2234_v4 = vcombine.low %v974_v36, %v984_v49  ;;  %v998_v45 = vsel %vm2670_vm5, %v993_v52, %v997_v8  ;;  %v1002_v40 = vor.u32 %v1001_v56, %v997_v8  ;;  %v2174_v22 = vrot.slane %v2166_v29, 9 }
  0xa2   : > { %1517 = vrot.lane.b32.xlu1 %v2238_v15, %s2490_s23  ;;  %v1104_v11 = vsel %vm2670_vm5, %v1099_v27, %v1103_v1  ;;  %v1007_v35 = vrot.slane %v1005_v54, 5  ;;  %v1181_v18 = vrot.slane %v3127_v5, 5  ;;  %v1184_v31 = vrot.slane %v3180_v14, 5  ;;  %v3248_v5 = vpop.permute.xlu1 %1251 }
  0xa3   : > { %1509 = vrot.lane.b32.xlu0 %v2234_v4, %s2490_s23  ;;  %v2239_v48 = vcombine.low %v1094_v53, %v1104_v11  ;;  %v1003_v44 = vrot.slane %v1002_v40, 4  ;;  %v2170_v13 = vrot.slane %v2162_v3, 9  ;;  %v1153_v17 = vrot.slane %v3141_v23, 5 }
  0xa4   : > { %v1182_v19 = vsel %vm2604_vm2, %v2174_v22, %v1181_v18  ;;  %v1183_v26 = vrot.slane %v1181_v18, 4  ;;  %v1156_v28 = vrot.slane %v3191_v37, 5  ;;  %v2175_v30 = vrot.slane %v2167_v7, 9  ;;  %v2433_v22 = vld [vmem:[%s2556_s27 + $0x34] sm:$0xf] }
  0xa5   : > { %v1008_v14 = vsel %vm2670_vm5, %v1003_v44, %v1007_v35  ;;  %v1154_v33 = vsel %vm2604_vm2, %v2170_v13, %v1153_v17  ;;  %v1155_v36 = vrot.slane %v1153_v17, 4  ;;  %v1188_v23 = vrot.slane %v3156_v38, 5  ;;  %v2434_v7 = vld [vmem:[%s2556_s27 + $0x30] sm:$0xf] }
  0xa6   : > { %1519 = vrot.lane.b32.xlu1 %v2239_v48, %s2490_s23  ;;  %v2235_v24 = vcombine.low %v998_v45, %v1008_v14  ;;  %v1185_v37 = vsel %vm2604_vm2, %v1183_v26, %v1184_v31  ;;  %v1191_v25 = vrot.slane %v3204_v21, 5  ;;  %v2171_v34 = vrot.slane %v2163_v12, 9  ;;  %v1250_v29 = vpop.permute.xlu0 %1249  ;;  %v2435_v31 = vld [vmem:[%s2556_s27 + $0x4] sm:$0xf]  ;;  %v2436_v48 = vld [vmem:[%s2556_s27] sm:$0xf] }
  0xa7   : > { %v2246_v42 = vcombine.low %v1182_v19, %v1185_v37  ;;  %v1157_v58 = vsel %vm2604_vm2, %v1155_v36, %v1156_v28  ;;  %v1189_v43 = vsel %vm2604_vm2, %v2175_v30, %v1188_v23  ;;  %v1190_v46 = vrot.slane %v1188_v23, 4  ;;  %v2438_v23 = vld [vmem:[%s2556_s27 + $0x3c] sm:$0xf] }
  0xa8   : > { %1511 = vrot.lane.b32.xlu0 %v2235_v24, %s2490_s23  ;;  %v2242_v38 = vcombine.low %v1154_v33, %v1157_v58  ;;  %v1160_v60 = vrot.slane %v3176_v61, 5  ;;  %v1163_v51 = vrot.slane %v3215_v41, 5  ;;  %v2430_v41 = vld [vmem:[%s3474_s1 + $0x20] ss:$0 sps:$4 sm:$0xff]   ;;  %v2180_v11 = vcombine.low %v2434_v7, %v2433_v22 }
  0xa9   : > { %v1192_v53 = vsel %vm2604_vm2, %v1190_v46, %v1191_v25  ;;  %2353 = vmatprep.subr.msk.bf16.mxu0 %vm1765_vm6, %v2430_v41  ;;  %2354 = vmatprep.subr.msk.bf16.mxu1 %vm1765_vm6, %v2430_v41  ;;  %v1767_v15 = vsel %vm1765_vm6, %v2430_v41, 0  ;;  %v2176_v44 = vcombine.low %v2436_v48, %v2435_v31  ;;  %v2439_v46 = vld [vmem:[%s2556_s27 + $0x10] sm:$0xf] }
  0xaa   : > { %1557 = vrot.lane.b32.xlu1 %v2246_v42, %s2491_s24  ;;  %v2247_v21 = vcombine.low %v1189_v43, %v1192_v53  ;;  %v1161_v55 = vsel %vm2604_vm2, %v2171_v34, %v1160_v60  ;;  %v1162_v56 = vrot.slane %v1160_v60, 4  ;;  %v3271_v0 = vpop.permute.xlu1 %1259  ;;  %2326 = vmatpush3.bf16.msra.mxu0 %v1767_v15 }
  0xab   : > { %2352 = vmatpush3.bf16.msra.mxu1 %v1767_v15  ;;  %v1564_v19 = vsel %vm1561_vm7, %v2176_v44, %v1250_v29 }
  0xac   : > { %1549 = vrot.lane.b32.xlu0 %v2242_v38, %s2491_s24  ;;  %v1164_v61 = vsel %vm2604_vm2, %v1162_v56, %v1163_v51  ;;  %v1588_v14 = vsel %vm1586_vm8, %v1564_v19, %v3221_v62  ;;  %v2440_v38 = vld [vmem:[%s2556_s27 + $0xc] sm:$0xf] }
  0xad   : > { %v2243_v1 = vcombine.low %v1161_v55, %v1164_v61  ;;  %v1605_v37 = vsel %vm1603_vm9, %v1588_v14, %v3164_v47  ;;  %v2177_v60 = vcombine.low %v2440_v38, %v2439_v46 }
  0xae   : > { %1559 = vrot.lane.b32.xlu1 %v2247_v21, %s2491_s24 }
  0xaf   : > { %v1386_v52 = vpop.permute.xlu1 %1385  ;;  %v1567_v29 = vsel %vm1561_vm7, %v2177_v60, %v3248_v5  ;;  %v2179_v60 = vcombine.low %v2956_v32, %v2964_v6 }
  0xb0   : > { %1551 = vrot.lane.b32.xlu0 %v2243_v1, %s2491_s24  ;;  %v1258_v8 = vpop.permute.xlu0 %1257  ;;  %v1590_v1 = vsel %vm1586_vm8, %v1567_v29, %v3246_v59 }
  0xb1   : > { %v1576_v13 = vsel %vm1561_vm7, %v2180_v11, %v1258_v8  ;;  %v1607_v15 = vsel %vm1603_vm9, %v1590_v1, %v3197_v9 }
  0xb2   : > { %v1596_v12 = vsel %vm1586_vm8, %v1576_v13, %v3199_v20  ;;  %v2437_v20 = vld [vmem:[%s2556_s27 + $0x40] sm:$0xf] }
  0xb3   : > { %v1613_v28 = vsel %vm1603_vm9, %v1596_v12, %v3120_v63  ;;  %v2181_v24 = vcombine.low %v2438_v23, %v2437_v20 }
  0xb4   : > { %v1378_v39 = vpop.permute.xlu0 %1377  ;;  %v1630_v36 = vsel %vm1620_vm10, %v1613_v28, %v1386_v52 }
  0xb5   : > { %v1388_v49 = vpop.permute.xlu1 %1387  ;;  %v1622_v62 = vsel %vm1620_vm10, %v1605_v37, %v1378_v39  ;;  %v1579_v53 = vsel %vm1561_vm7, %v2181_v24, %v3271_v0  ;;  %v2441_v24 = vld [vmem:[%s2556_s27 + $0x48] sm:$0xf]  ;;  %v2442_v37 = vld [vmem:[%s2556_s27 + $0x4c] sm:$0xf] }
  0xb6   : > { %v1598_v61 = vsel %vm1586_vm8, %v1579_v53, %v3223_v10 }
  0xb7   : > { %v1615_v0 = vsel %vm1603_vm9, %v1598_v61, %v3166_v50 }
  0xb8   : > { %v3281_v27 = vpop.permute.xlu0 %1379  ;;  %v1632_v52 = vsel %vm1620_vm10, %v1615_v0, %v1388_v49 }
  0xb9   : > { %v1426_v54 = vpop.permute.xlu1 %1425  ;;  %v1624_v10 = vsel %vm1620_vm10, %v1607_v15, %v3281_v27 }
  0xba   : > { %v1647_v63 = vsel %vm1637_vm11, %v1630_v36, %v1426_v54 }
  0xbc   : > { %v1418_v3 = vpop.permute.xlu0 %1417 }
  0xbd   : > { %v1428_v4 = vpop.permute.xlu1 %1427  ;;  %v1639_v42 = vsel %vm1637_vm11, %v1622_v62, %v1418_v3 }
  0xbe   : > { %v1649_v8 = vsel %vm1637_vm11, %v1632_v52, %v1428_v4 }
  0xc0   : > { %v3283_v45 = vpop.permute.xlu0 %1419 }
  0xc1   : > { %v1474_v40 = vpop.permute.xlu1 %1473  ;;  %v1641_v50 = vsel %vm1637_vm11, %v1624_v10, %v3283_v45 }
  0xc2   : > { %v1664_v34 = vsel %vm1654_vm12, %v1647_v63, %v1474_v40  ;;  %v2182_v63 = vcombine.low %v2441_v24, %v2442_v37 }
  0xc4   : > { %v1466_v35 = vpop.permute.xlu0 %1465 }
  0xc5   : > { %v1476_v18 = vpop.permute.xlu1 %1475  ;;  %v1656_v51 = vsel %vm1654_vm12, %v1639_v42, %v1466_v35 }
  0xc6   : > { %v1666_v39 = vsel %vm1654_vm12, %v1649_v8, %v1476_v18 }
  0xc8   : > { %v1468_v17 = vpop.permute.xlu0 %1467 }
  0xc9   : > { %v1658_v49 = vsel %vm1654_vm12, %v1641_v50, %v1468_v17 }
  0xca   : > { %v1514_v26 = vpop.permute.xlu1 %1513 }
  0xcb   : > { %v1681_v58 = vsel %vm1671_vm13, %v1664_v34, %v1514_v26 }
  0xcc   : > { %v1506_v30 = vpop.permute.xlu0 %1505 }
  0xcd   : > { %v1673_v21 = vsel %vm1671_vm13, %v1656_v51, %v1506_v30 }
  0xce   : > { %v1516_v33 = vpop.permute.xlu1 %1515 }
  0xcf   : > { %v1683_v54 = vsel %vm1671_vm13, %v1666_v39, %v1516_v33 }
  0xd0   : > { %v1508_v25 = vpop.permute.xlu0 %1507 }
  0xd1   : > { %v1675_v9 = vsel %vm1671_vm13, %v1658_v49, %v1508_v25  ;;  %v2443_v25 = vld [vmem:[%s2556_s27 + $0x18] sm:$0xf]  ;;  %s2073_s27 = sshll.u32 %s2466_s15, 3 }
  0xd2   : > { %v1554_v43 = vpop.permute.xlu1 %1553  ;;  %v2178_v62 = vcombine.low %v2443_v25, %v2912_v16  ;;  %p243_p6 = scmp.lt.s32.totalorder %s2073_s27, 15 }
  0xd3   : > { %v1698_v47 = vsel %vm1688_vm14, %v1681_v58, %v1554_v43  ;;  %v2183_v43 = vcombine.low %v2934_v57, %v2943_v2 }
  0xd4   : > { %v1546_v55 = vpop.permute.xlu0 %1545  ;;  %2335 = vmatprep.mubr.msk.bf16.mxu1 %vm1748_vm15, %v1698_v47  ;;  %s3495_s27 = smov (!%p243_p6, %s2073_s27), 15 }
  0xd5   : > { %v1690_v56 = vsel %vm1688_vm14, %v1673_v21, %v1546_v55  ;;  %s2074_s28 = sshll.u32 %s3495_s27, 1 }
  0xd6   : > { %2327 = vmatprep.mubr.msk.bf16.mxu0 %vm1748_vm15, %v1690_v56  ;;  %s247_s30 = sadd.s32 %s2075_s29, %s2074_s28 }
  0xd7   : > { %s2076_s5 = sshll.u32 %s247_s30, 2  ;;  %s2080_s15 = sshll.u32 %s247_s30, 3 }
  0xd8   : > { %s3390_s8 = scalar_lea.vmem %s3476_s3, %s2076_s5  ;;  %s3407_s12 = scalar_lea.vmem %s3477_s4, %s2080_s15 }
  0xda   : > { %v1262_v41 = vpop.permute.xlu1 %1261 }
  0xdb   : > { %v1582_v58 = vsel %vm1561_vm7, %v2182_v63, %v1262_v41 }
  0xdd   : > { %v1254_v5 = vpop.permute.xlu0 %1253 }
  0xde   : > { %v1556_v59 = vpop.permute.xlu1 %1555  ;;  %v1570_v38 = vsel %vm1561_vm7, %v2178_v62, %v1254_v5 }
  0xdf   : > { %v1700_v3 = vsel %vm1688_vm14, %v1683_v54, %v1556_v59 }
  0xe0   : > { %2336 = vmatmul.mubr.msk.bf16.vlgmr.msra.gmra.mrb[0].mxu1 %vm1748_vm15, %v1700_v3 }
  0xe1   : > { %v1548_v4 = vpop.permute.xlu0 %1547 }
  0xe2   : > { %v1692_v40 = vsel %vm1688_vm14, %v1675_v9, %v1548_v4 }
  0xe3   : > { %2328 = vmatmul.mubr.msk.bf16.vlgmr.msra.gmra.mrb[0].mxu0 %vm1748_vm15, %v1692_v40 }
  0xe6   : > { %v1264_v27 = vpop.permute.xlu1 %1263 }
  0xe7   : > { %v1585_v21 = vsel %vm1561_vm7, %v2183_v43, %v1264_v27 }
  0xe9   : > { %v1256_v22 = vpop.permute.xlu0 %1255 }
  0xea   : > { %v1302_v7 = vpop.permute.xlu1 %1301  ;;  %v1573_v6 = vsel %vm1561_vm7, %v2179_v60, %v1256_v22 }
  0xeb   : > { %v1600_v46 = vsel %vm1586_vm8, %v1582_v58, %v1302_v7 }
  0xed   : > { %v1294_v11 = vpop.permute.xlu0 %1293 }
  0xee   : > { %v1304_v35 = vpop.permute.xlu1 %1303  ;;  %v1592_v53 = vsel %vm1586_vm8, %v1570_v38, %v1294_v11 }
  0xef   : > { %v1602_v56 = vsel %vm1586_vm8, %v1585_v21, %v1304_v35 }
  0xf1   : > { %v1296_v18 = vpop.permute.xlu0 %1295 }
  0xf2   : > { %v1350_v45 = vpop.permute.xlu1 %1349  ;;  %v1594_v52 = vsel %vm1586_vm8, %v1573_v6, %v1296_v18  ;;  %v2301_v18 = vld [vmem:[%s3390_s8 + $0x28] sm:$0xff]  }
  0xf3   : > { %v1617_v51 = vsel %vm1603_vm9, %v1600_v46, %v1350_v45  ;;  %v2300_v45 = vld [vmem:[%s3390_s8 + $0x20] sm:$0xff]  }
  0xf5   : > { %v1342_v31 = vpop.permute.xlu0 %1341 }
  0xf6   : > { %v1352_v48 = vpop.permute.xlu1 %1351  ;;  %v1609_v55 = vsel %vm1603_vm9, %v1592_v53, %v1342_v31  ;;  %v3397_v31 = vld [vmem:[%s3475_s2] ss:$0 sm:$0xff] }
  0xf7   : > { %v1619_v61 = vsel %vm1603_vm9, %v1602_v56, %v1352_v48  ;;  %v2297_v48 = vld [vmem:[%s3390_s8 + $0x8] sm:$0xff]  }
  0xf9   : > { %v1344_v44 = vpop.permute.xlu0 %1343 }
  0xfa   : > { %v1611_v5 = vsel %vm1603_vm9, %v1594_v52, %v1344_v44  ;;  %v2287_v44 = vunpack.c.l.bf16 %v2301_v18  ;;  %v2303_v52 = vld [vmem:[%s3390_s8 + $0x38] sm:$0xff]  }
  0xfb   : > { %v1390_v13 = vpop.permute.xlu1 %1389 }
  0xfc   : > { %v1634_v16 = vsel %vm1620_vm10, %v1617_v51, %v1390_v13 }
  0xfd   : > { %v1382_v17 = vpop.permute.xlu0 %1381 }
  0xfe   : > { %v1626_v29 = vsel %vm1620_vm10, %v1609_v55, %v1382_v17  ;;  %v2266_v17 = vld [vmem:[%s3390_s8] sm:$0xff]  }
  0xff   : > { %v1392_v12 = vpop.permute.xlu1 %1391  ;;  %v2267_v24 = vunpack.c.l.bf16 %v2266_v17  ;;  %v2268_v51 = vunpack.c.h.bf16 %v2266_v17 }
 0x100   : > { %v1636_v8 = vsel %vm1620_vm10, %v1619_v61, %v1392_v12  ;;  %v2283_v12 = vunpack.c.l.bf16 %v2300_v45 }
 0x101   : > { %v1384_v19 = vpop.permute.xlu0 %1383 }
 0x102   : > { %v1628_v50 = vsel %vm1620_vm10, %v1611_v5, %v1384_v19  ;;  %v2298_v5 = vld [vmem:[%s3390_s8 + $0x10] sm:$0xff]  }
 0x103   : > { %v1430_v26 = vpop.permute.xlu1 %1429 }
 0x104   : > { %v1651_v57 = vsel %vm1637_vm11, %v1634_v16, %v1430_v26 }
 0x105   : > { %v1422_v28 = vpop.permute.xlu0 %1421 }
 0x106   : > { %v1643_v1 = vsel %vm1637_vm11, %v1626_v29, %v1422_v28  ;;  %v2288_v28 = vunpack.c.h.bf16 %v2301_v18 }
 0x107   : > { %v1432_v30 = vpop.permute.xlu1 %1431 }
 0x108   : > { %v1653_v10 = vsel %vm1637_vm11, %v1636_v8, %v1432_v30  ;;  %v2271_v30 = vunpack.c.l.bf16 %v2297_v48  ;;  %v2302_v8 = vld [vmem:[%s3390_s8 + $0x30] sm:$0xff]  }
 0x109   : > { %v1424_v14 = vpop.permute.xlu0 %1423 }
 0x10a   : > { %v1645_v9 = vsel %vm1637_vm11, %v1628_v50, %v1424_v14 }
 0x10b   : > { %v1478_v33 = vpop.permute.xlu1 %1477 }
 0x10c   : > { %v1668_v32 = vsel %vm1654_vm12, %v1651_v57, %v1478_v33 }
 0x10d   : > { %v1470_v36 = vpop.permute.xlu0 %1469 }
 0x10e   : > { %v1660_v15 = vsel %vm1654_vm12, %v1643_v1, %v1470_v36  ;;  %v2284_v36 = vunpack.c.h.bf16 %v2300_v45 }
 0x10f   : > { %v1480_v20 = vpop.permute.xlu1 %1479 }
 0x110   : > { %v1670_v3 = vsel %vm1654_vm12, %v1653_v10, %v1480_v20 }
 0x111   : > { %v1472_v23 = vpop.permute.xlu0 %1471 }
 0x112   : > { %v1662_v27 = vsel %vm1654_vm12, %v1645_v9, %v1472_v23 }
 0x114   : > { %v1518_v34 = vpop.permute.xlu1 %1517 }
 0x115   : > { %v1510_v42 = vpop.permute.xlu0 %1509  ;;  %v1685_v0 = vsel %vm1671_vm13, %v1668_v32, %v1518_v34 }
 0x116   : > { %v1677_v54 = vsel %vm1671_vm13, %v1660_v15, %v1510_v42  ;;  %v2272_v42 = vunpack.c.h.bf16 %v2297_v48  ;;  %v2299_v15 = vld [vmem:[%s3390_s8 + $0x18] sm:$0xff]  }
 0x117   : > { %v2280_v18 = vunpack.c.h.bf16 %v2299_v15 }
 0x118   : > { %v1520_v47 = vpop.permute.xlu1 %1519 }
 0x119   : > { %v1687_v4 = vsel %vm1671_vm13, %v1670_v3, %v1520_v47 }
 0x11a   : > { %v1512_v2 = vpop.permute.xlu0 %1511 }
 0x11b   : > { %v1679_v7 = vsel %vm1671_vm13, %v1662_v27, %v1512_v2 }
 0x11c   : > { %v1558_v41 = vpop.permute.xlu1 %1557 }
 0x11d   : > { %v1702_v39 = vsel %vm1688_vm14, %v1685_v0, %v1558_v41 }
 0x11e   : > { %v1550_v59 = vpop.permute.xlu0 %1549  ;;  %2339 = vmatprep.mubr.msk.bf16.mxu1 %vm1748_vm15, %v1702_v39  ;;  %v2295_v39 = vunpack.c.l.bf16 %v2303_v52 }
 0x11f   : > { %v1694_v49 = vsel %vm1688_vm14, %v1677_v54, %v1550_v59  ;;  %v2291_v54 = vunpack.c.l.bf16 %v2302_v8  ;;  %v2279_v59 = vunpack.c.l.bf16 %v2299_v15 }
 0x120   : > { %2331 = vmatprep.mubr.msk.bf16.mxu0 %vm1748_vm15, %v1694_v49  ;;  %v1560_v40 = vpop.permute.xlu1 %1559  ;;  %v2296_v49 = vunpack.c.h.bf16 %v2303_v52 }
 0x121   : > { %v1704_v22 = vsel %vm1688_vm14, %v1687_v4, %v1560_v40  ;;  %v2275_v4 = vunpack.c.l.bf16 %v2298_v5 }
 0x122   : > { %v1552_v11 = vpop.permute.xlu0 %1551  ;;  %2340 = vmatmul.mubr.msk.bf16.gmra.mrb[4].mxu1 %vm1748_vm15, %v1704_v22  ;;  %v2292_v22 = vunpack.c.h.bf16 %v2302_v8 }
 0x123   : > { %v1696_v35 = vsel %vm1688_vm14, %v1679_v7, %v1552_v11 }
 0x124   : > { %2332 = vmatmul.mubr.msk.bf16.gmra.mrb[4].mxu0 %vm1748_vm15, %v1696_v35 }
 0x1b3   : > { %v2337_v13 = vpop.f32.mrb[0].mxu1 }
 0x1b4   : > { %v1844_v19 = vadd.f32 %v2337_v13, %v3397_v31  ;;  %v1835_v26 = vpop.f32.mrb[1].mxu1 }
 0x1b5   : > { %v1836_v14 = vadd.f32 %v3397_v31, %v1835_v26  ;;  %v2338_v33 = vpop.f32.mrb[2].mxu1 }
 0x1b6   : > { %v2329_v20 = vpop.f32.mrb[0].mxu0  ;;  %v1908_v23 = vadd.f32 %v2287_v44, %v1844_v19  ;;  %v1847_v37 = vadd.f32 %v2338_v33, %v3397_v31  ;;  %v1838_v63 = vpop.f32.mrb[3].mxu1 }
 0x1b7   : > { %v1812_v25 = vadd.f32 %v2329_v20, %v3397_v31  ;;  %v1803_v62 = vpop.f32.mrb[1].mxu0  ;;  %v1906_v34 = vadd.f32 %v2283_v12, %v1836_v14  ;;  %v1839_v58 = vadd.f32 %v3397_v31, %v1838_v63  ;;  %v2276_v12 = vunpack.c.h.bf16 %v2298_v5 }
 0x1b8   : > { %v1924_v43 = vmax.f32 %v1908_v23, 0.0  ;;  %v1804_v46 = vadd.f32 %v3397_v31, %v1803_v62  ;;  %v2330_v38 = vpop.f32.mrb[2].mxu0  ;;  %v1909_v60 = vadd.f32 %v2288_v28, %v1847_v37 }
 0x1b9   : > { %v1900_v47 = vadd.f32 %v2271_v30, %v1812_v25  ;;  %v1922_v53 = vmax.f32 %v1906_v34, 0.0  ;;  %v1815_v16 = vadd.f32 %v2330_v38, %v3397_v31  ;;  %v1806_v21 = vpop.f32.mrb[3].mxu0  ;;  %v1907_v55 = vadd.f32 %v2284_v36, %v1839_v58 }
 0x1ba   : > { %1940 = vst.msk [vmem:[%s3407_s12 + $0x50] sm:$0xff] %vm1561_vm7, %v1924_v43  ;;  %v1898_v57 = vadd.f32 %v2267_v24, %v1804_v46  ;;  %v1925_v2 = vmax.f32 %v1909_v60, 0.0  ;;  %v1807_v56 = vadd.f32 %v3397_v31, %v1806_v21 }
 0x1bb   : > { %v1916_v29 = vmax.f32 %v1900_v47, 0.0  ;;  %1938 = vst.msk [vmem:[%s3407_s12 + $0x40] sm:$0xff] %vm1561_vm7, %v1922_v53  ;;  %v1901_v32 = vadd.f32 %v2272_v42, %v1815_v16  ;;  %v1923_v6 = vmax.f32 %v1907_v55, 0.0 }
 0x1bc   : > { %v1914_v61 = vmax.f32 %v1898_v57, 0.0  ;;  %1941 = vst.msk [vmem:[%s3407_s12 + $0x58] sm:$0xff] %vm1561_vm7, %v1925_v2  ;;  %v1899_v1 = vadd.f32 %v2268_v51, %v1807_v56 }
 0x1bd   : > { %1932 = vst.msk [vmem:[%s3407_s12 + $0x10] sm:$0xff] %vm1561_vm7, %v1916_v29  ;;  %v1917_v0 = vmax.f32 %v1901_v32, 0.0  ;;  %1939 = vst.msk [vmem:[%s3407_s12 + $0x48] sm:$0xff] %vm1561_vm7, %v1923_v6 }
 0x1be   : > { %1930 = vst.msk [vmem:[%s3407_s12] sm:$0xff] %vm1561_vm7, %v1914_v61  ;;  %v1915_v41 = vmax.f32 %v1899_v1, 0.0 }
 0x1bf   : > { %1933 = vst.msk [vmem:[%s3407_s12 + $0x18] sm:$0xff] %vm1561_vm7, %v1917_v0 }
 0x1c0   : > { %1931 = vst.msk [vmem:[%s3407_s12 + $0x8] sm:$0xff] %vm1561_vm7, %v1915_v41 }
 0x1f5   : > { %v2341_v10 = vpop.f32.mrb[4].mxu1 }
 0x1f6   : > { %v1860_v50 = vadd.f32 %v2341_v10, %v3397_v31  ;;  %v1851_v3 = vpop.f32.mrb[5].mxu1 }
 0x1f7   : > { %v2333_v9 = vpop.f32.mrb[4].mxu0  ;;  %v1852_v40 = vadd.f32 %v3397_v31, %v1851_v3  ;;  %v2342_v27 = vpop.f32.mrb[6].mxu1 }
 0x1f8   : > { %v1828_v7 = vadd.f32 %v2333_v9, %v3397_v31  ;;  %v1912_v11 = vadd.f32 %v2295_v39, %v1860_v50  ;;  %v1819_v35 = vpop.f32.mrb[5].mxu0  ;;  %v1863_v45 = vadd.f32 %v2342_v27, %v3397_v31  ;;  %v1854_v48 = vpop.f32.mrb[7].mxu1 }
 0x1f9   : > { %v1820_v44 = vadd.f32 %v3397_v31, %v1819_v35  ;;  %v1910_v13 = vadd.f32 %v2291_v54, %v1852_v40  ;;  %v2334_v17 = vpop.f32.mrb[6].mxu0  ;;  %v1855_v19 = vadd.f32 %v3397_v31, %v1854_v48 }
 0x1fa   : > { %v1904_v26 = vadd.f32 %v2279_v59, %v1828_v7  ;;  %v1928_v28 = vmax.f32 %v1912_v11, 0.0  ;;  %v1831_v30 = vadd.f32 %v2334_v17, %v3397_v31  ;;  %v1913_v14 = vadd.f32 %v2296_v49, %v1863_v45  ;;  %v1822_v33 = vpop.f32.mrb[7].mxu0 }
 0x1fb   : > { %v1902_v36 = vadd.f32 %v2275_v4, %v1820_v44  ;;  %v1926_v20 = vmax.f32 %v1910_v13, 0.0  ;;  %v1823_v23 = vadd.f32 %v3397_v31, %v1822_v33  ;;  %v1911_v24 = vadd.f32 %v2292_v22, %v1855_v19 }
 0x1fc   : > { %v1920_v37 = vmax.f32 %v1904_v26, 0.0  ;;  %1944 = vst.msk [vmem:[%s3407_s12 + $0x70] sm:$0xff] %vm1561_vm7, %v1928_v28  ;;  %v1905_v63 = vadd.f32 %v2280_v18, %v1831_v30  ;;  %v1929_v25 = vmax.f32 %v1913_v14, 0.0 }
 0x1fd   : > { %v1918_v62 = vmax.f32 %v1902_v36, 0.0  ;;  %1942 = vst.msk [vmem:[%s3407_s12 + $0x60] sm:$0xff] %vm1561_vm7, %v1926_v20  ;;  %v1903_v34 = vadd.f32 %v2276_v12, %v1823_v23  ;;  %v1927_v42 = vmax.f32 %v1911_v24, 0.0 }
 0x1fe   : > { %1936 = vst.msk [vmem:[%s3407_s12 + $0x30] sm:$0xff] %vm1561_vm7, %v1920_v37  ;;  %v1921_v58 = vmax.f32 %v1905_v63, 0.0  ;;  %1945 = vst.msk [vmem:[%s3407_s12 + $0x78] sm:$0xff] %vm1561_vm7, %v1929_v25 }
 0x1ff   : > { %1934 = vst.msk [vmem:[%s3407_s12 + $0x20] sm:$0xff] %vm1561_vm7, %v1918_v62  ;;  %v1919_v31 = vmax.f32 %v1903_v34, 0.0  ;;  %1943 = vst.msk [vmem:[%s3407_s12 + $0x68] sm:$0xff] %vm1561_vm7, %v1927_v42 }
 0x200   : > { %1937 = vst.msk [vmem:[%s3407_s12 + $0x38] sm:$0xff] %vm1561_vm7, %v1921_v58 }
 0x201   : > { %1935 = vst.msk [vmem:[%s3407_s12 + $0x28] sm:$0xff] %vm1561_vm7, %v1919_v31 }
 0x202 PF: > { %s14_s19 = sadd.s32 1, %s2482_s19   ;;  %s3482_s15 = smov %s2474_s17 }
 0x203   : > { %p11_p7 = scmp.ge.s32.totalorder %s14_s19, 6   ;;  %s3483_s16 = smov %s2478_s18 }
 0x204   : > { %s3484_s17 = smov %s3487_s20  ;;  %s3485_s18 = smov %s3491_s21 }
 0x205   :  { %13 = sbr.rel (!%p11_p7) target bundleno = 3 (0x3), region = 72 }

</bundles_post_ra>
